<compile_context>
chip_gen: v7x
topology: tpu7x:2x2x1
jax: 0.10.0
libtpu: 0.0.40
codegen_flags: <defaults>
</compile_context>

<pallas_src>
from functools import partial

import jax
import jax.numpy as jnp
from jax.experimental import pallas as pl
from jax.experimental.pallas import tpu as pltpu


def _round_up(v, m):
    return ((v + m - 1) // m) * m


def g2gat_kernel(x_ref, w_in_ref, rhs_ref, bgat_ref, adj0_ref, att_bias_ref,
                 deg_inv_ref, w_fc_ref, b_fc_ref, out_ref, *,
                 num_layers, h_real, negative_slope=0.2):
    f32 = jnp.float32
    bf16 = jnp.bfloat16

    # input_fc: [N, Cin] @ [Cin, H_pad] -> [N, H_pad]   (bf16 MXU, f32 acc)
    h = jnp.dot(x_ref[...].astype(bf16), w_in_ref[...],
                preferred_element_type=f32)

    adj0 = adj0_ref[...]            # (N, N) bf16, adj0[i, j] = #edges i -> j
    att_bias = att_bias_ref[...]    # (N_dst, N_src) f32 additive 0 / -1e30
    deg_inv = deg_inv_ref[...]      # (N, 1) f32, 1 / (out_degree + 1e-10)

    h_pad = h.shape[1]
    lane = jax.lax.broadcasted_iota(jnp.int32, (1, h_pad), 1)
    hp_col_mask = (lane < h_real).astype(f32)    # zero alpha / padding lanes
    col_sq = (lane == h_real).astype(f32)        # spare lane carrying ||x||^2
    col_one = (lane == h_real + 1).astype(f32)   # spare lane carrying degrees

    # num_layers is small (2 here); static unroll.  For deep stacks switch to
    # lax.fori_loop with dynamic rhs_ref[l] / bgat_ref[l] indexing.
    for l in range(num_layers):
        # One MXU pass: hp (cols < H), alpha_src (col H), alpha_dst (col H+1).
        hp_ext = jnp.dot(h.astype(bf16), rhs_ref[l],
                         preferred_element_type=f32)
        a_src = hp_ext[:, h_real:h_real + 1]       # (N, 1) per-source alpha
        a_dst = hp_ext[:, h_real + 1:h_real + 2]   # (N, 1) per-dst alpha
        hp = hp_ext * hp_col_mask                  # clean transformed features

        # masked softmax over source nodes (mask folded in as additive bias)
        logits = a_dst + jnp.transpose(a_src)      # (N_dst, N_src)
        leaky = jnp.where(logits > 0, logits, negative_slope * logits)
        masked = leaky + att_bias
        m = jnp.max(masked, axis=-1, keepdims=True)
        e = jnp.exp(masked - m)                    # off-graph entries -> 0.0
        attn = e * pl.reciprocal(jnp.sum(e, axis=-1, keepdims=True),
                                 approx=True)      # EUP, not a VPU divide

        x_new = jnp.dot(attn.astype(bf16), hp.astype(bf16),
                        preferred_element_type=f32) + bgat_ref[l]
        x_new = jnp.maximum(x_new, 0.0)            # F.relu

        # compute_g2_tau (p=2) via neighbor aggregation (no NxN d2 matrix):
        #   sum_j A[i,j] ||x_i - x_j||^2
        #     = deg_i * sq_i + (A @ sq)_i - 2 * x_i . (A @ x)_i
        sq = jnp.sum(x_new * x_new, axis=-1, keepdims=True)
        x_ext = x_new + sq * col_sq + col_one      # [x | sq | 1 | 0...]
        agg = jnp.dot(adj0, x_ext.astype(bf16), preferred_element_type=f32)
        adj_sq = agg[:, h_real:h_real + 1]         # (A @ sq)_i
        deg = agg[:, h_real + 1:h_real + 2]        # out-degree (A @ 1)_i
        cross = jnp.sum(x_new * agg, axis=-1, keepdims=True)  # pad lanes are 0
        tau = jnp.tanh((deg * sq + adj_sq - 2.0 * cross) * deg_inv)

        # gated update: (1 - tau) * h + tau * x_new
        h = h + tau * (x_new - h)

    # final fc (lane-dense padded output; real columns sliced by the wrapper)
    out_ref[...] = (jnp.dot(h.astype(bf16), w_fc_ref[...],
                            preferred_element_type=f32) + b_fc_ref[...])


def g2gat_forward(x, edge_index, params):
    f32, bf16 = jnp.float32, jnp.bfloat16
    N, Cin = x.shape
    w_in = params["w_in"]        # (Cin, H)
    w_gat = params["w_gat"]      # (L, H, H)
    a_src = params["att_src"]    # (L, 1, H)
    a_dst = params["att_dst"]    # (L, 1, H)
    b_gat = params["b_gat"]      # (L, 1, H)
    w_fc = params["w_fc"]        # (H, O)
    b_fc = params["b_fc"]        # (1, O)
    L, H, _ = w_gat.shape
    O = w_fc.shape[1]

    # Pad everything to vreg / MXU granularity (lane-dense, full passes).
    N_pad = _round_up(N, 128)
    C_pad = _round_up(Cin, 128)
    H_pad = _round_up(H + 2, 128)   # slack lanes hold alpha / sq / degree cols
    O_pad = _round_up(O, 128)

    # Dense (src x dst) adjacency with edge multiplicity; padded rows/cols = 0,
    # so padded nodes never contribute to softmax, degrees, or tau.
    row, col = edge_index[0], edge_index[1]
    adj0_f32 = jnp.zeros((N_pad, N_pad), f32).at[row, col].add(1.0)

    # GAT mask (incoming edges + self loops, PyG default) as an additive bias,
    # built host-side: no in-kernel transpose / iota / select / mask multiply.
    eye = jnp.eye(N_pad, dtype=bool)
    att_bias = jnp.where(jnp.logical_or(adj0_f32.T > 0, eye),
                         0.0, -1e30).astype(f32)

    # Exact degree reciprocal (out-edges, matching compute_g2_tau's bincount).
    deg_inv = (1.0 / (jnp.sum(adj0_f32, axis=-1, keepdims=True)
                      + 1e-10)).astype(f32)

    # Edge counts are small integers -> exact in bf16; feeds the MXU directly.
    adj0 = adj0_f32.astype(bf16)

    x_p = jnp.zeros((N_pad, C_pad), f32).at[:N, :Cin].set(x)
    w_in_p = jnp.zeros((C_pad, H_pad), bf16).at[:Cin, :H].set(w_in.astype(bf16))

    # Fold the attention projections into the layer matmul:
    #   rhs[:, :H] = W,  rhs[:, H] = W a_src^T,  rhs[:, H+1] = W a_dst^T
    rhs = jnp.zeros((L, H_pad, H_pad), f32)
    rhs = rhs.at[:, :H, :H].set(w_gat)
    rhs = rhs.at[:, :H, H].set(jnp.einsum("lhk,lk->lh", w_gat, a_src[:, 0, :]))
    rhs = rhs.at[:, :H, H + 1].set(jnp.einsum("lhk,lk->lh", w_gat,
                                              a_dst[:, 0, :]))
    rhs = rhs.astype(bf16)

    b_gat_p = jnp.zeros((L, 1, H_pad), f32).at[:, :, :H].set(b_gat)
    w_fc_p = jnp.zeros((H_pad, O_pad), bf16).at[:H, :O].set(w_fc.astype(bf16))
    b_fc_p = jnp.zeros((1, O_pad), f32).at[:, :O].set(b_fc)

    args = (x_p, w_in_p, rhs, b_gat_p, adj0, att_bias, deg_inv, w_fc_p, b_fc_p)
    vmem = pl.BlockSpec(memory_space=pltpu.MemorySpace.VMEM)

    out_full = pl.pallas_call(
        partial(g2gat_kernel, num_layers=L, h_real=H),
        out_shape=jax.ShapeDtypeStruct((N_pad, O_pad), f32),
        in_specs=[vmem] * len(args),
        out_specs=vmem,
        compiler_params=pltpu.CompilerParams(
            vmem_limit_bytes=32 * 1024 * 1024),
    )(*args)
    return out_full[:N, :O]


def init_params(key, in_channels, hidden_channels, out_channels, num_layers):
    ks = jax.random.split(key, 7)
    scale = 0.1
    return {
        "w_in": scale * jax.random.normal(
            ks[0], (in_channels, hidden_channels), jnp.float32),
        "w_gat": scale * jax.random.normal(
            ks[1], (num_layers, hidden_channels, hidden_channels), jnp.float32),
        "att_src": scale * jax.random.normal(
            ks[2], (num_layers, 1, hidden_channels), jnp.float32),
        "att_dst": scale * jax.random.normal(
            ks[3], (num_layers, 1, hidden_channels), jnp.float32),
        "b_gat": jnp.zeros((num_layers, 1, hidden_channels), jnp.float32),
        "w_fc": scale * jax.random.normal(
            ks[4], (hidden_channels, out_channels), jnp.float32),
        "b_fc": scale * jax.random.normal(
            ks[5], (1, out_channels), jnp.float32),
    }


def make_edge_index(num_nodes):
    # small deterministic graph: bidirectional ring + chords, no duplicate edges
    rows, cols = [], []
    for i in range(num_nodes):
        for off in (1, 3):
            j = (i + off) % num_nodes
            rows += [i, j]
            cols += [j, i]
    return jnp.array([rows, cols], dtype=jnp.int32)


if __name__ == "__main__":
    N, IN_C, HID, OUT_C, LAYERS = 16, 8, 32, 4, 2

    key = jax.random.PRNGKey(0)
    kx, kp = jax.random.split(key)
    x = jax.random.normal(kx, (N, IN_C), jnp.float32)
    edge_index = make_edge_index(N)
    params = init_params(kp, IN_C, HID, OUT_C, LAYERS)

    out = g2gat_forward(x, edge_index, params)
    jax.block_until_ready(out)
    assert out.shape == (N, OUT_C)
    assert bool(jnp.all(jnp.isfinite(out)))
    print("KERNEL_OK")
</pallas_src>

<mosaic_0001>
module attributes {stable_mosaic.version = 11 : i64} {
  func.func @g2gat_kernel(%arg0: memref<128x128xf32, #tpu.memory_space<vmem>>, %arg1: memref<128x128xbf16, #tpu.memory_space<vmem>>, %arg2: memref<2x128x128xbf16, #tpu.memory_space<vmem>>, %arg3: memref<2x1x128xf32, #tpu.memory_space<vmem>>, %arg4: memref<128x128xbf16, #tpu.memory_space<vmem>>, %arg5: memref<128x128xf32, #tpu.memory_space<vmem>>, %arg6: memref<128x1xf32, #tpu.memory_space<vmem>>, %arg7: memref<128x128xbf16, #tpu.memory_space<vmem>>, %arg8: memref<1x128xf32, #tpu.memory_space<vmem>>, %arg9: memref<128x128xf32, #tpu.memory_space<vmem>>) attributes {dimension_semantics = [], scalar_prefetch = 0 : i64, scratch_operands = 0 : i64, tpu.core_type = #tpu.core_type<tc>} {
    %c0 = arith.constant 0 : index
    %c0_0 = arith.constant 0 : index
    %0 = vector.load %arg0[%c0, %c0_0] : memref<128x128xf32, #tpu.memory_space<vmem>>, vector<128x128xf32>
    %1 = arith.truncf %0 : vector<128x128xf32> to vector<128x128xbf16>
    %c0_1 = arith.constant 0 : index
    %c0_2 = arith.constant 0 : index
    %2 = vector.load %arg1[%c0_1, %c0_2] : memref<128x128xbf16, #tpu.memory_space<vmem>>, vector<128x128xbf16>
    %cst = arith.constant dense<0.000000e+00> : vector<128x128xf32>
    %3 = tpu.matmul %1, %2, %cst {dimension_numbers = #tpu.dot_dimension_numbers<[1], [0], [0], [1], [0, 0, 1, 1], [], []>} : vector<128x128xbf16>, vector<128x128xbf16>, vector<128x128xf32> -> vector<128x128xf32>
    %c0_3 = arith.constant 0 : index
    %c0_4 = arith.constant 0 : index
    %4 = vector.load %arg4[%c0_3, %c0_4] : memref<128x128xbf16, #tpu.memory_space<vmem>>, vector<128x128xbf16>
    %c0_5 = arith.constant 0 : index
    %c0_6 = arith.constant 0 : index
    %5 = vector.load %arg5[%c0_5, %c0_6] : memref<128x128xf32, #tpu.memory_space<vmem>>, vector<128x128xf32>
    %c0_7 = arith.constant 0 : index
    %c0_8 = arith.constant 0 : index
    %6 = vector.load %arg6[%c0_7, %c0_8] : memref<128x1xf32, #tpu.memory_space<vmem>>, vector<128x1xf32>
    %7 = tpu.iota {dimensions = array<i32: 1>} : vector<1x128xi32>
    %c32_i32 = arith.constant 32 : i32
    %8 = vector.broadcast %c32_i32 : i32 to vector<1x128xi32>
    %9 = arith.cmpi slt, %7, %8 : vector<1x128xi32>
    %10 = arith.extui %9 : vector<1x128xi1> to vector<1x128xi32>
    %11 = arith.sitofp %10 : vector<1x128xi32> to vector<1x128xf32>
    %c32_i32_9 = arith.constant 32 : i32
    %12 = vector.broadcast %c32_i32_9 : i32 to vector<1x128xi32>
    %13 = arith.cmpi eq, %7, %12 : vector<1x128xi32>
    %14 = arith.extui %13 : vector<1x128xi1> to vector<1x128xi32>
    %15 = arith.sitofp %14 : vector<1x128xi32> to vector<1x128xf32>
    %c33_i32 = arith.constant 33 : i32
    %16 = vector.broadcast %c33_i32 : i32 to vector<1x128xi32>
    %17 = arith.cmpi eq, %7, %16 : vector<1x128xi32>
    %18 = arith.extui %17 : vector<1x128xi1> to vector<1x128xi32>
    %19 = arith.sitofp %18 : vector<1x128xi32> to vector<1x128xf32>
    %20 = arith.truncf %3 : vector<128x128xf32> to vector<128x128xbf16>
    %c0_10 = arith.constant 0 : index
    %c0_11 = arith.constant 0 : index
    %c0_12 = arith.constant 0 : index
    %21 = vector.load %arg2[%c0_10, %c0_11, %c0_12] : memref<2x128x128xbf16, #tpu.memory_space<vmem>>, vector<1x128x128xbf16>
    %22 = vector.shape_cast %21 : vector<1x128x128xbf16> to vector<128x128xbf16>
    %cst_13 = arith.constant dense<0.000000e+00> : vector<128x128xf32>
    %23 = tpu.matmul %20, %22, %cst_13 {dimension_numbers = #tpu.dot_dimension_numbers<[1], [0], [0], [1], [0, 0, 1, 1], [], []>} : vector<128x128xbf16>, vector<128x128xbf16>, vector<128x128xf32> -> vector<128x128xf32>
    %24 = vector.extract_strided_slice %23 {offsets = [0, 32], sizes = [128, 1], strides = [1, 1]} : vector<128x128xf32> to vector<128x1xf32>
    %25 = vector.extract_strided_slice %23 {offsets = [0, 33], sizes = [128, 1], strides = [1, 1]} : vector<128x128xf32> to vector<128x1xf32>
    %26 = vector.broadcast %11 : vector<1x128xf32> to vector<128x128xf32>
    %27 = arith.mulf %23, %26 : vector<128x128xf32>
    %28 = tpu.transpose %24, [1, 0] : vector<128x1xf32> -> vector<1x128xf32>
    %29 = vector.broadcast %25 : vector<128x1xf32> to vector<128x128xf32>
    %30 = vector.broadcast %28 : vector<1x128xf32> to vector<128x128xf32>
    %31 = arith.addf %29, %30 : vector<128x128xf32>
    %cst_14 = arith.constant 0.000000e+00 : f32
    %32 = vector.broadcast %cst_14 : f32 to vector<128x128xf32>
    %33 = arith.cmpf ogt, %31, %32 : vector<128x128xf32>
    %cst_15 = arith.constant 2.000000e-01 : f32
    %34 = vector.broadcast %cst_15 : f32 to vector<128x128xf32>
    %35 = arith.mulf %34, %31 : vector<128x128xf32>
    %36 = arith.select %33, %31, %35 : vector<128x128xi1>, vector<128x128xf32>
    %37 = arith.addf %36, %5 : vector<128x128xf32>
    %cst_16 = arith.constant dense<0xFF800000> : vector<128xf32>
    %38 = vector.multi_reduction <maximumf>, %37, %cst_16 [1] : vector<128x128xf32> to vector<128xf32>
    %39 = vector.shape_cast %38 : vector<128xf32> to vector<128x1xf32>
    %40 = vector.broadcast %39 : vector<128x1xf32> to vector<128x128xf32>
    %41 = arith.subf %37, %40 : vector<128x128xf32>
    %42 = math.exp %41 : vector<128x128xf32>
    %cst_17 = arith.constant dense<0.000000e+00> : vector<128xf32>
    %43 = vector.multi_reduction <add>, %42, %cst_17 [1] : vector<128x128xf32> to vector<128xf32>
    %44 = vector.shape_cast %43 : vector<128xf32> to vector<128x1xf32>
    %45 = tpu.reciprocal %44 {approx = true} : vector<128x1xf32> -> vector<128x1xf32>
    %46 = vector.broadcast %45 : vector<128x1xf32> to vector<128x128xf32>
    %47 = arith.mulf %42, %46 : vector<128x128xf32>
    %48 = arith.truncf %47 : vector<128x128xf32> to vector<128x128xbf16>
    %49 = arith.truncf %27 : vector<128x128xf32> to vector<128x128xbf16>
    %cst_18 = arith.constant dense<0.000000e+00> : vector<128x128xf32>
    %50 = tpu.matmul %48, %49, %cst_18 {dimension_numbers = #tpu.dot_dimension_numbers<[1], [0], [0], [1], [0, 0, 1, 1], [], []>} : vector<128x128xbf16>, vector<128x128xbf16>, vector<128x128xf32> -> vector<128x128xf32>
    %c0_19 = arith.constant 0 : index
    %c0_20 = arith.constant 0 : index
    %c0_21 = arith.constant 0 : index
    %51 = vector.load %arg3[%c0_19, %c0_20, %c0_21] : memref<2x1x128xf32, #tpu.memory_space<vmem>>, vector<1x1x128xf32>
    %52 = vector.shape_cast %51 : vector<1x1x128xf32> to vector<1x128xf32>
    %53 = vector.broadcast %52 : vector<1x128xf32> to vector<128x128xf32>
    %54 = arith.addf %50, %53 : vector<128x128xf32>
    %cst_22 = arith.constant 0.000000e+00 : f32
    %55 = vector.broadcast %cst_22 : f32 to vector<128x128xf32>
    %56 = arith.maximumf %54, %55 : vector<128x128xf32>
    %57 = arith.mulf %56, %56 : vector<128x128xf32>
    %cst_23 = arith.constant dense<0.000000e+00> : vector<128xf32>
    %58 = vector.multi_reduction <add>, %57, %cst_23 [1] : vector<128x128xf32> to vector<128xf32>
    %59 = vector.shape_cast %58 : vector<128xf32> to vector<128x1xf32>
    %60 = vector.broadcast %59 : vector<128x1xf32> to vector<128x128xf32>
    %61 = vector.broadcast %15 : vector<1x128xf32> to vector<128x128xf32>
    %62 = arith.mulf %60, %61 : vector<128x128xf32>
    %63 = arith.addf %56, %62 : vector<128x128xf32>
    %64 = vector.broadcast %19 : vector<1x128xf32> to vector<128x128xf32>
    %65 = arith.addf %63, %64 : vector<128x128xf32>
    %66 = arith.truncf %65 : vector<128x128xf32> to vector<128x128xbf16>
    %cst_24 = arith.constant dense<0.000000e+00> : vector<128x128xf32>
    %67 = tpu.matmul %4, %66, %cst_24 {dimension_numbers = #tpu.dot_dimension_numbers<[1], [0], [0], [1], [0, 0, 1, 1], [], []>} : vector<128x128xbf16>, vector<128x128xbf16>, vector<128x128xf32> -> vector<128x128xf32>
    %68 = vector.extract_strided_slice %67 {offsets = [0, 32], sizes = [128, 1], strides = [1, 1]} : vector<128x128xf32> to vector<128x1xf32>
    %69 = vector.extract_strided_slice %67 {offsets = [0, 33], sizes = [128, 1], strides = [1, 1]} : vector<128x128xf32> to vector<128x1xf32>
    %70 = arith.mulf %56, %67 : vector<128x128xf32>
    %cst_25 = arith.constant dense<0.000000e+00> : vector<128xf32>
    %71 = vector.multi_reduction <add>, %70, %cst_25 [1] : vector<128x128xf32> to vector<128xf32>
    %72 = vector.shape_cast %71 : vector<128xf32> to vector<128x1xf32>
    %73 = arith.mulf %69, %59 : vector<128x1xf32>
    %74 = arith.addf %73, %68 : vector<128x1xf32>
    %cst_26 = arith.constant 2.000000e+00 : f32
    %75 = vector.broadcast %cst_26 : f32 to vector<128x1xf32>
    %76 = arith.mulf %75, %72 : vector<128x1xf32>
    %77 = arith.subf %74, %76 : vector<128x1xf32>
    %78 = arith.mulf %77, %6 : vector<128x1xf32>
    %79 = math.tanh %78 : vector<128x1xf32>
    %80 = arith.subf %56, %3 : vector<128x128xf32>
    %81 = vector.broadcast %79 : vector<128x1xf32> to vector<128x128xf32>
    %82 = arith.mulf %81, %80 : vector<128x128xf32>
    %83 = arith.addf %3, %82 : vector<128x128xf32>
    %84 = arith.truncf %83 : vector<128x128xf32> to vector<128x128xbf16>
    %c1 = arith.constant 1 : index
    %c0_27 = arith.constant 0 : index
    %c0_28 = arith.constant 0 : index
    %85 = vector.load %arg2[%c1, %c0_27, %c0_28] : memref<2x128x128xbf16, #tpu.memory_space<vmem>>, vector<1x128x128xbf16>
    %86 = vector.shape_cast %85 : vector<1x128x128xbf16> to vector<128x128xbf16>
    %cst_29 = arith.constant dense<0.000000e+00> : vector<128x128xf32>
    %87 = tpu.matmul %84, %86, %cst_29 {dimension_numbers = #tpu.dot_dimension_numbers<[1], [0], [0], [1], [0, 0, 1, 1], [], []>} : vector<128x128xbf16>, vector<128x128xbf16>, vector<128x128xf32> -> vector<128x128xf32>
    %88 = vector.extract_strided_slice %87 {offsets = [0, 32], sizes = [128, 1], strides = [1, 1]} : vector<128x128xf32> to vector<128x1xf32>
    %89 = vector.extract_strided_slice %87 {offsets = [0, 33], sizes = [128, 1], strides = [1, 1]} : vector<128x128xf32> to vector<128x1xf32>
    %90 = vector.broadcast %11 : vector<1x128xf32> to vector<128x128xf32>
    %91 = arith.mulf %87, %90 : vector<128x128xf32>
    %92 = tpu.transpose %88, [1, 0] : vector<128x1xf32> -> vector<1x128xf32>
    %93 = vector.broadcast %89 : vector<128x1xf32> to vector<128x128xf32>
    %94 = vector.broadcast %92 : vector<1x128xf32> to vector<128x128xf32>
    %95 = arith.addf %93, %94 : vector<128x128xf32>
    %cst_30 = arith.constant 0.000000e+00 : f32
    %96 = vector.broadcast %cst_30 : f32 to vector<128x128xf32>
    %97 = arith.cmpf ogt, %95, %96 : vector<128x128xf32>
    %cst_31 = arith.constant 2.000000e-01 : f32
    %98 = vector.broadcast %cst_31 : f32 to vector<128x128xf32>
    %99 = arith.mulf %98, %95 : vector<128x128xf32>
    %100 = arith.select %97, %95, %99 : vector<128x128xi1>, vector<128x128xf32>
    %101 = arith.addf %100, %5 : vector<128x128xf32>
    %cst_32 = arith.constant dense<0xFF800000> : vector<128xf32>
    %102 = vector.multi_reduction <maximumf>, %101, %cst_32 [1] : vector<128x128xf32> to vector<128xf32>
    %103 = vector.shape_cast %102 : vector<128xf32> to vector<128x1xf32>
    %104 = vector.broadcast %103 : vector<128x1xf32> to vector<128x128xf32>
    %105 = arith.subf %101, %104 : vector<128x128xf32>
    %106 = math.exp %105 : vector<128x128xf32>
    %cst_33 = arith.constant dense<0.000000e+00> : vector<128xf32>
    %107 = vector.multi_reduction <add>, %106, %cst_33 [1] : vector<128x128xf32> to vector<128xf32>
    %108 = vector.shape_cast %107 : vector<128xf32> to vector<128x1xf32>
    %109 = tpu.reciprocal %108 {approx = true} : vector<128x1xf32> -> vector<128x1xf32>
    %110 = vector.broadcast %109 : vector<128x1xf32> to vector<128x128xf32>
    %111 = arith.mulf %106, %110 : vector<128x128xf32>
    %112 = arith.truncf %111 : vector<128x128xf32> to vector<128x128xbf16>
    %113 = arith.truncf %91 : vector<128x128xf32> to vector<128x128xbf16>
    %cst_34 = arith.constant dense<0.000000e+00> : vector<128x128xf32>
    %114 = tpu.matmul %112, %113, %cst_34 {dimension_numbers = #tpu.dot_dimension_numbers<[1], [0], [0], [1], [0, 0, 1, 1], [], []>} : vector<128x128xbf16>, vector<128x128xbf16>, vector<128x128xf32> -> vector<128x128xf32>
    %c1_35 = arith.constant 1 : index
    %c0_36 = arith.constant 0 : index
    %c0_37 = arith.constant 0 : index
    %115 = vector.load %arg3[%c1_35, %c0_36, %c0_37] : memref<2x1x128xf32, #tpu.memory_space<vmem>>, vector<1x1x128xf32>
    %116 = vector.shape_cast %115 : vector<1x1x128xf32> to vector<1x128xf32>
    %117 = vector.broadcast %116 : vector<1x128xf32> to vector<128x128xf32>
    %118 = arith.addf %114, %117 : vector<128x128xf32>
    %cst_38 = arith.constant 0.000000e+00 : f32
    %119 = vector.broadcast %cst_38 : f32 to vector<128x128xf32>
    %120 = arith.maximumf %118, %119 : vector<128x128xf32>
    %121 = arith.mulf %120, %120 : vector<128x128xf32>
    %cst_39 = arith.constant dense<0.000000e+00> : vector<128xf32>
    %122 = vector.multi_reduction <add>, %121, %cst_39 [1] : vector<128x128xf32> to vector<128xf32>
    %123 = vector.shape_cast %122 : vector<128xf32> to vector<128x1xf32>
    %124 = vector.broadcast %123 : vector<128x1xf32> to vector<128x128xf32>
    %125 = vector.broadcast %15 : vector<1x128xf32> to vector<128x128xf32>
    %126 = arith.mulf %124, %125 : vector<128x128xf32>
    %127 = arith.addf %120, %126 : vector<128x128xf32>
    %128 = vector.broadcast %19 : vector<1x128xf32> to vector<128x128xf32>
    %129 = arith.addf %127, %128 : vector<128x128xf32>
    %130 = arith.truncf %129 : vector<128x128xf32> to vector<128x128xbf16>
    %cst_40 = arith.constant dense<0.000000e+00> : vector<128x128xf32>
    %131 = tpu.matmul %4, %130, %cst_40 {dimension_numbers = #tpu.dot_dimension_numbers<[1], [0], [0], [1], [0, 0, 1, 1], [], []>} : vector<128x128xbf16>, vector<128x128xbf16>, vector<128x128xf32> -> vector<128x128xf32>
    %132 = vector.extract_strided_slice %131 {offsets = [0, 32], sizes = [128, 1], strides = [1, 1]} : vector<128x128xf32> to vector<128x1xf32>
    %133 = vector.extract_strided_slice %131 {offsets = [0, 33], sizes = [128, 1], strides = [1, 1]} : vector<128x128xf32> to vector<128x1xf32>
    %134 = arith.mulf %120, %131 : vector<128x128xf32>
    %cst_41 = arith.constant dense<0.000000e+00> : vector<128xf32>
    %135 = vector.multi_reduction <add>, %134, %cst_41 [1] : vector<128x128xf32> to vector<128xf32>
    %136 = vector.shape_cast %135 : vector<128xf32> to vector<128x1xf32>
    %137 = arith.mulf %133, %123 : vector<128x1xf32>
    %138 = arith.addf %137, %132 : vector<128x1xf32>
    %cst_42 = arith.constant 2.000000e+00 : f32
    %139 = vector.broadcast %cst_42 : f32 to vector<128x1xf32>
    %140 = arith.mulf %139, %136 : vector<128x1xf32>
    %141 = arith.subf %138, %140 : vector<128x1xf32>
    %142 = arith.mulf %141, %6 : vector<128x1xf32>
    %143 = math.tanh %142 : vector<128x1xf32>
    %144 = arith.subf %120, %83 : vector<128x128xf32>
    %145 = vector.broadcast %143 : vector<128x1xf32> to vector<128x128xf32>
    %146 = arith.mulf %145, %144 : vector<128x128xf32>
    %147 = arith.addf %83, %146 : vector<128x128xf32>
    %148 = arith.truncf %147 : vector<128x128xf32> to vector<128x128xbf16>
    %c0_43 = arith.constant 0 : index
    %c0_44 = arith.constant 0 : index
    %149 = vector.load %arg7[%c0_43, %c0_44] : memref<128x128xbf16, #tpu.memory_space<vmem>>, vector<128x128xbf16>
    %cst_45 = arith.constant dense<0.000000e+00> : vector<128x128xf32>
    %150 = tpu.matmul %148, %149, %cst_45 {dimension_numbers = #tpu.dot_dimension_numbers<[1], [0], [0], [1], [0, 0, 1, 1], [], []>} : vector<128x128xbf16>, vector<128x128xbf16>, vector<128x128xf32> -> vector<128x128xf32>
    %c0_46 = arith.constant 0 : index
    %c0_47 = arith.constant 0 : index
    %151 = vector.load %arg8[%c0_46, %c0_47] : memref<1x128xf32, #tpu.memory_space<vmem>>, vector<1x128xf32>
    %152 = vector.broadcast %151 : vector<1x128xf32> to vector<128x128xf32>
    %153 = arith.addf %150, %152 : vector<128x128xf32>
    %c0_48 = arith.constant 0 : index
    %c0_49 = arith.constant 0 : index
    %154 = vector.load %arg9[%c0_48, %c0_49] : memref<128x128xf32, #tpu.memory_space<vmem>>, vector<128x128xf32>
    tpu.vector_store %arg9[%c0_48, %c0_49], %153 {strides = array<i32>} : memref<128x128xf32, #tpu.memory_space<vmem>>, vector<128x128xf32>,
    return
  }
}

</mosaic_0001>

<bundles_post_ra>
// kernel: tpu_custom_call.1
= control target key start
LH: loop header
LB: loop body
LE: loop exit
PB: predicated region body
PF: predicated region fallthrough
CT: control target
= control target key end

     0   :  { %14 = vsyncpa [#allocation3], 0  ;;  %s5607_s0 = inlined_call_operand.vmem [shape: f32[128,128], index: 0, kind: input, shape index: {}]   ;;  %s5608_s1 = inlined_call_operand.hbm [shape: bf16[128,128], index: 1, kind: input, shape index: {}]   ;;  %s5609_s2 = inlined_call_operand.hbm [shape: bf16[2,128,128], index: 2, kind: input, shape index: {}]   ;;  %s5610_s3 = inlined_call_operand.vmem [shape: f32[2,1,128], index: 3, kind: input, shape index: {}]   ;;  %s5611_s4 = inlined_call_operand.hbm [shape: bf16[128,128], index: 4, kind: input, shape index: {}]   ;;  %s5612_s5 = inlined_call_operand.hbm [shape: f32[128,128], index: 5, kind: input, shape index: {}]   ;;  %s5613_s6 = inlined_call_operand.vmem [shape: f32[128,1], index: 6, kind: input, shape index: {}]   ;;  %s5614_s7 = inlined_call_operand.hbm [shape: bf16[128,128], index: 7, kind: input, shape index: {}]   ;;  %s5615_s8 = inlined_call_operand.vmem [shape: f32[1,128], index: 8, kind: input, shape index: {}]   ;;  %s5616_s9 = inlined_call_operand.hbm [shape: f32[128,128], index: 9, kind: output, shape index: {}]  }
   0x1   :  { %15 = vsyncpa [#allocation6], 0 }
   0x2   :  { %16 = vsyncpa [#allocation9], 0 }
   0x3   :  { %17 = vsyncpa [#allocation4], 0  ;;  %s4006_s30 = smov [#allocation5]   ;;  %s4007_s11 = smov [#allocation8]  }
   0x4   :  { %s37_s10 = sshll.u32 %s4006_s30, 4  ;;  %s63_s12 = sshll.u32 %s4007_s11, 4  ;;  %s38_s10 = int_to_ptr.vmem [resolvable:$true] %s37_s10  ;;  %s4071_s12 = int_to_ptr.vmem [resolvable:$true] %s63_s12 }
   0x5   :  { %s3866_s15 = scalar_lea.hbm %s5609_s2, 2048 }
   0x6   :  { %p3867_p0 = scmp.ne.s32.totalorder %s5609_s2, %s3866_s15  ;;  %p3870_p1 = scmp.lt.u32.totalorder %s3866_s15, %s5609_s2 }
   0x8   :  { %p3872_p2 = pnand %p3870_p1, %p3867_p0 }
   0xa   :  { %3875 = shalt.err (!%p3872_p2)
}
   0xb   :  { %s3876_s20 = scalar_lea.vmem %s38_s10, 2048  ;;  %p3881_p4 = scmp.lt.s32.totalorder %s38_s10, %s38_s10 }
   0xc   :  { %p3877_p3 = scmp.ne.s32.totalorder %s38_s10, %s3876_s20  ;;  %p3882_p5 = scmp.lt.s32.totalorder %s3876_s20, %s3876_s20 }
   0xe   :  { %p3883_p6 = por %p3882_p5, %p3881_p4 }
  0x10   :  { %p3884_p7 = pnand %p3883_p6, %p3877_p3 }
  0x12   :  { %3887 = shalt.err (!%p3884_p7)
}
  0x13   :  { %s4008_s21 = smov 64   ;;  %s4009_s22 = smov 4  }
  0x14   :  { %43 = dma.hbm_to_vmem [thread:$0]  %s5609_s2, 2048, %s38_s10, [#allocation6], %s4008_s21, %s4008_s21, %s4009_s22  }
  0x15   :  { %s3888_s27 = scalar_lea.hbm %s5612_s5, 2048 }
  0x16   :  { %p3889_p8 = scmp.ne.s32.totalorder %s5612_s5, %s3888_s27  ;;  %p3892_p9 = scmp.lt.u32.totalorder %s3888_s27, %s5612_s5 }
  0x18   :  { %p3894_p10 = pnand %p3892_p9, %p3889_p8 }
  0x1a   :  { %3897 = shalt.err (!%p3894_p10)
}
  0x1b   :  { %s3898_s13 = scalar_lea.vmem %s4071_s12, 2048  ;;  %p3903_p12 = scmp.lt.s32.totalorder %s4071_s12, %s4071_s12 }
  0x1c   :  { %p3899_p11 = scmp.ne.s32.totalorder %s4071_s12, %s3898_s13  ;;  %p3904_p13 = scmp.lt.s32.totalorder %s3898_s13, %s3898_s13 }
  0x1e   :  { %p3905_p0 = por %p3904_p13, %p3903_p12 }
  0x20   :  { %p3906_p1 = pnand %p3905_p0, %p3899_p11 }
  0x22   :  { %3909 = shalt.err (!%p3906_p1)
}
  0x23   :  { %s4010_s2 = smov 128   ;;  %s4011_s10 = smov 8  }
  0x24   :  { %69 = dma.hbm_to_vmem [thread:$0]  %s5612_s5, 2048, %s4071_s12, [#allocation9], %s4010_s2, %s4010_s2, %s4011_s10  }
  0x25   :  { %s4012_s16 = smov [#allocation2]   ;;  %s4013_s18 = smov [#allocation7]  }
  0x26   :  { %s25_s17 = sshll.u32 %s4012_s16, 4  ;;  %s51_s19 = sshll.u32 %s4013_s18, 4  ;;  %s26_s17 = int_to_ptr.vmem [resolvable:$true] %s25_s17  ;;  %s4108_s19 = int_to_ptr.vmem [resolvable:$true] %s51_s19 }
  0x27   :  { %s3910_s24 = scalar_lea.hbm %s5608_s1, 1024 }
  0x28   :  { %p3911_p2 = scmp.ne.s32.totalorder %s5608_s1, %s3910_s24  ;;  %p3914_p3 = scmp.lt.u32.totalorder %s3910_s24, %s5608_s1 }
  0x2a   :  { %p3916_p4 = pnand %p3914_p3, %p3911_p2 }
  0x2c   :  { %3919 = shalt.err (!%p3916_p4)
}
  0x2d   :  { %s3920_s5 = scalar_lea.vmem %s26_s17, 1024  ;;  %p3925_p6 = scmp.lt.s32.totalorder %s26_s17, %s26_s17 }
  0x2e   :  { %p3921_p5 = scmp.ne.s32.totalorder %s26_s17, %s3920_s5  ;;  %p3926_p7 = scmp.lt.s32.totalorder %s3920_s5, %s3920_s5 }
  0x30   :  { %p3927_p8 = por %p3926_p7, %p3925_p6 }
  0x32   :  { %p3928_p9 = pnand %p3927_p8, %p3921_p5 }
  0x34   :  { %3931 = shalt.err (!%p3928_p9)
}
  0x35   :  { %31 = dma.hbm_to_vmem [thread:$0]  %s5608_s1, 1024, %s26_s17, [#allocation3], %s4008_s21, %s4008_s21, %s4009_s22  }
  0x36   :  { %s3932_s13 = scalar_lea.hbm %s5611_s4, 1024 }
  0x37   :  { %p3933_p10 = scmp.ne.s32.totalorder %s5611_s4, %s3932_s13  ;;  %p3936_p11 = scmp.lt.u32.totalorder %s3932_s13, %s5611_s4 }
  0x39   :  { %p3938_p12 = pnand %p3936_p11, %p3933_p10 }
  0x3b   :  { %3941 = shalt.err (!%p3938_p12)
}
  0x3c   :  { %s3942_s20 = scalar_lea.vmem %s4108_s19, 1024  ;;  %p3947_p0 = scmp.lt.s32.totalorder %s4108_s19, %s4108_s19 }
  0x3d   :  { %p3943_p13 = scmp.ne.s32.totalorder %s4108_s19, %s3942_s20  ;;  %p3948_p1 = scmp.lt.s32.totalorder %s3942_s20, %s3942_s20 }
  0x3f   :  { %p3949_p2 = por %p3948_p1, %p3947_p0 }
  0x41   :  { %p3950_p3 = pnand %p3949_p2, %p3943_p13 }
  0x43   :  { %3953 = shalt.err (!%p3950_p3)
}
  0x44   :  { %57 = dma.hbm_to_vmem [thread:$0]  %s5611_s4, 1024, %s4108_s19, [#allocation6], %s4008_s21, %s4008_s21, %s4009_s22  }
  0x45   :  { %s4014_s23 = smov [#allocation10]   ;;  %s3954_s27 = scalar_lea.hbm %s5614_s7, 1024 }
  0x46   :  { %s77_s24 = sshll.u32 %s4014_s23, 4  ;;  %p3955_p4 = scmp.ne.s32.totalorder %s5614_s7, %s3954_s27  ;;  %s78_s24 = int_to_ptr.vmem [resolvable:$true] %s77_s24 }
  0x47   :  { %p3958_p5 = scmp.lt.u32.totalorder %s3954_s27, %s5614_s7 }
  0x49   :  { %p3960_p6 = pnand %p3958_p5, %p3955_p4 }
  0x4b   :  { %3963 = shalt.err (!%p3960_p6)
}
  0x4c   :  { %s3964_s30 = scalar_lea.vmem %s78_s24, 1024  ;;  %p3969_p8 = scmp.lt.s32.totalorder %s78_s24, %s78_s24 }
  0x4d   :  { %p3965_p7 = scmp.ne.s32.totalorder %s78_s24, %s3964_s30  ;;  %p3970_p9 = scmp.lt.s32.totalorder %s3964_s30, %s3964_s30 }
  0x4f   :  { %p3971_p10 = por %p3970_p9, %p3969_p8 }
  0x51   :  { %p3972_p11 = pnand %p3971_p10, %p3965_p7 }
  0x53   :  { %3975 = shalt.err (!%p3972_p11)
}
  0x54   :  { %83 = dma.hbm_to_vmem [thread:$0]  %s5614_s7, 1024, %s78_s24, [#allocation9], %s4008_s21, %s4008_s21, %s4009_s22  }
  0x55   :  { %3998 = dma.done.wait [#allocation3], 1024  }
  0x56   :  { %3999 = vsyncadd [#allocation3], 4294966272 }
  0x57   :  { %4000 = dma.done.wait [#allocation6], 3072  }
  0x58   :  { %4001 = vsyncadd [#allocation6], 4294964224 }
  0x59   :  { %4002 = dma.done.wait [#allocation9], 3072  }
  0x5a   :  { %4003 = vsyncadd [#allocation9], 4294964224  ;;  %v3611_v0 = vld [vmem:[#allocation2] sm:$0xff]   ;;  %v3612_v1 = vld [vmem:[#allocation2 + $0x8] sm:$0xff]   ;;  %s4018_s25 = smov 33   ;;  %s4019_s27 = smov 1  }
  0x5b   :  { %3338 = vmatprep.subr.bf16.mxu0 %v3611_v0  ;;  %v3613_v2 = vld [vmem:[#allocation2 + $0x10] sm:$0xff]   ;;  %v3614_v3 = vld [vmem:[#allocation2 + $0x18] sm:$0xff]   ;;  %v102_v4 = vld [vmem:[%s5607_s0] sm:$0xff] }
  0x5c   :  { %3339 = vmatpush3.bf16.msra.mxu0 %v3611_v0  ;;  %v103_v5 = vld [vmem:[%s5607_s0 + $0x8] sm:$0xff]  ;;  %v3615_v7 = vld [vmem:[#allocation2 + $0x20] sm:$0xff]   ;;  %v3621_v11 = vld [vmem:[#allocation5 + $0x10] sm:$0xff]   ;;  %v4015_v0 = vmov 33  }
  0x5d   :  { %3340 = vmatprep.subr.bf16.mxu0 %v3612_v1  ;;  %v118_v6 = vpack.c.bf16 %v103_v5, %v102_v4  ;;  %v3619_v8 = vld [vmem:[#allocation5] sm:$0xff]   ;;  %v3620_v9 = vld [vmem:[#allocation5 + $0x8] sm:$0xff]   ;;  %v3617_v12 = vld [vmem:[#allocation2 + $0x30] sm:$0xff]   ;;  %3610 = vset.pattern.permute.xlu1 %v4015_v0 }
  0x5e   :  { %v3616_v10 = vld [vmem:[#allocation2 + $0x28] sm:$0xff]   ;;  %3370 = vmatprep.subr.bf16.mxu1 %v3619_v8  ;;  %v3622_v13 = vld [vmem:[#allocation5 + $0x18] sm:$0xff]   ;;  %v3623_v15 = vld [vmem:[#allocation5 + $0x20] sm:$0xff]   ;;  %3609 = vset.pattern.permute.xlu0 %v4015_v0 }
  0x5f   :  { %3354 = vmatprep.mubr.bf16.mxu0 %v118_v6  ;;  %3371 = vmatpush3.bf16.msra.mxu1 %v3619_v8  ;;  %v3618_v14 = vld [vmem:[#allocation2 + $0x38] sm:$0xff]   ;;  %v104_v16 = vld [vmem:[%s5607_s0 + $0x10] sm:$0xff]  ;;  %v106_v18 = vld [vmem:[%s5607_s0 + $0x20] sm:$0xff] }
  0x60   :  { %3341 = vmatpush3.bf16.msra.mxu0 %v3612_v1  ;;  %3372 = vmatprep.subr.bf16.mxu1 %v3620_v9  ;;  %v105_v17 = vld [vmem:[%s5607_s0 + $0x18] sm:$0xff]  ;;  %v107_v19 = vld [vmem:[%s5607_s0 + $0x28] sm:$0xff]  ;;  %v3625_v23 = vld [vmem:[#allocation5 + $0x30] sm:$0xff]   ;;  %v335_v1 = vlaneseq }
  0x61   :  { %3342 = vmatprep.subr.bf16.mxu0 %v3613_v2  ;;  %v3624_v20 = vld [vmem:[#allocation5 + $0x28] sm:$0xff]   ;;  %v119_v21 = vpack.c.bf16 %v105_v17, %v104_v16  ;;  %v120_v22 = vpack.c.bf16 %v107_v19, %v106_v18  ;;  %v108_v24 = vld [vmem:[%s5607_s0 + $0x30] sm:$0xff]  ;;  %v109_v25 = vld [vmem:[%s5607_s0 + $0x38] sm:$0xff] }
  0x62   :  { %v110_v26 = vld [vmem:[%s5607_s0 + $0x40] sm:$0xff]  ;;  %v111_v27 = vld [vmem:[%s5607_s0 + $0x48] sm:$0xff]  ;;  %v121_v28 = vpack.c.bf16 %v109_v25, %v108_v24  ;;  %v112_v30 = vld [vmem:[%s5607_s0 + $0x50] sm:$0xff] }
  0x63   :  { %3373 = vmatpush3.bf16.msra.mxu1 %v3620_v9  ;;  %v122_v29 = vpack.c.bf16 %v111_v27, %v110_v26  ;;  %v113_v31 = vld [vmem:[%s5607_s0 + $0x58] sm:$0xff]  ;;  %v114_v32 = vld [vmem:[%s5607_s0 + $0x60] sm:$0xff]  ;;  %v115_v33 = vld [vmem:[%s5607_s0 + $0x68] sm:$0xff] }
  0x64   :  { %3343 = vmatpush3.bf16.msra.mxu0 %v3613_v2  ;;  %3374 = vmatprep.subr.bf16.mxu1 %v3621_v11  ;;  %v123_v34 = vpack.c.bf16 %v113_v31, %v112_v30  ;;  %v124_v35 = vpack.c.bf16 %v115_v33, %v114_v32  ;;  %v116_v36 = vld [vmem:[%s5607_s0 + $0x70] sm:$0xff]  ;;  %v117_v37 = vld [vmem:[%s5607_s0 + $0x78] sm:$0xff]  ;;  %v4257_v2 = vand.u32 127, %v335_v1  ;;  %s4017_s0 = smov 96  }
  0x65   :  { %3344 = vmatprep.subr.bf16.mxu0 %v3614_v3  ;;  %v125_v38 = vpack.c.bf16 %v117_v37, %v116_v36  ;;  %v3626_v39 = vld [vmem:[#allocation5 + $0x38] sm:$0xff]  }
  0x66   :  { %vm337_vm0 = vcmp.lt.s32.totalorder %v4257_v2, 32 }
  0x67   :  { %3375 = vmatpush3.bf16.msra.mxu1 %v3621_v11 }
  0x68   :  { %3345 = vmatpush3.bf16.msra.mxu0 %v3614_v3  ;;  %3376 = vmatprep.subr.bf16.mxu1 %v3622_v13  ;;  %v4016_v3 = vmov 0.0  }
  0x69   :  { %3346 = vmatprep.subr.bf16.mxu0 %v3615_v7  ;;  %v4261_v4 = vsel %vm337_vm0, 1.0, %v4016_v3 }
  0x6a   :  { %5739 = vst [vmem:[#allocation32_spill] sm:$0xff] %v4261_v4 }
  0x6b   :  { %3377 = vmatpush3.bf16.msra.mxu1 %v3622_v13 }
  0x6c   :  { %3347 = vmatpush3.bf16.msra.mxu0 %v3615_v7  ;;  %3378 = vmatprep.subr.bf16.mxu1 %v3623_v15 }
  0x6d   :  { %3348 = vmatprep.subr.bf16.mxu0 %v3616_v10 }
  0x6f   :  { %3379 = vmatpush3.bf16.msra.mxu1 %v3623_v15 }
  0x70   :  { %3349 = vmatpush3.bf16.msra.mxu0 %v3616_v10  ;;  %3380 = vmatprep.subr.bf16.mxu1 %v3624_v20 }
  0x71   :  { %3350 = vmatprep.subr.bf16.mxu0 %v3617_v12 }
  0x73   :  { %3381 = vmatpush3.bf16.msra.mxu1 %v3624_v20 }
  0x74   :  { %3351 = vmatpush3.bf16.msra.mxu0 %v3617_v12  ;;  %3382 = vmatprep.subr.bf16.mxu1 %v3625_v23 }
  0x75   :  { %3352 = vmatprep.subr.bf16.mxu0 %v3618_v14 }
  0x77   :  { %3383 = vmatpush3.bf16.msra.mxu1 %v3625_v23 }
  0x78   :  { %3353 = vmatpush3.bf16.msra.mxu0 %v3618_v14  ;;  %3384 = vmatprep.subr.bf16.mxu1 %v3626_v39 }
  0x7b   :  { %3355 = vmatmul.mubr.bf16.vlgmr.msra.gmra.mrb[0].mxu0 %v119_v21  ;;  %3385 = vmatpush3.bf16.msra.mxu1 %v3626_v39 }
  0x7c   :  { %3358 = vmatprep.mubr.bf16.mxu0 %v120_v22 }
  0x83   :  { %3359 = vmatmul.mubr.bf16.gmra.mrb[4].mxu0 %v121_v28 }
  0x84   :  { %3362 = vmatprep.mubr.bf16.mxu0 %v122_v29 }
  0x8b   :  { %3363 = vmatmul.mubr.bf16.gmra.mrb[8].mxu0 %v123_v34 }
  0x8c   :  { %3366 = vmatprep.mubr.bf16.mxu0 %v124_v35 }
  0x93   :  { %3367 = vmatmul.mubr.bf16.gmra.mrb[12].mxu0 %v125_v38 }
 0x14e   :  { %v4208_v40 = vpop.f32.mrb[0].mxu0 }
 0x14f   :  { %5723 = vst [vmem:[#allocation16_spill] sm:$0xff] %v4208_v40  ;;  %v4210_v41 = vpop.f32.mrb[1].mxu0 }
 0x150   :  { %5724 = vst [vmem:[#allocation17_spill] sm:$0xff] %v4210_v41  ;;  %v4212_v42 = vpop.f32.mrb[2].mxu0 }
 0x151   :  { %5725 = vst [vmem:[#allocation18_spill] sm:$0xff] %v4212_v42  ;;  %v347_v43 = vpack.c.bf16 %v4212_v42, %v4208_v40  ;;  %v4216_v44 = vpop.f32.mrb[3].mxu0 }
 0x152   :  { %5726 = vst [vmem:[#allocation19_spill] sm:$0xff] %v4216_v44  ;;  %v346_v45 = vpack.c.bf16 %v4216_v44, %v4210_v41 }
 0x154   :  { %3386 = vmatprep.mubr.bf16.mxu1 %v346_v45 }
 0x155   :  { %3387 = vmatmul.mubr.bf16.vlgmr.msra.gmra.mrb[0].mxu1 %v347_v43 }
 0x156   :  { %v4220_v46 = vpop.f32.mrb[4].mxu0 }
 0x157   :  { %5727 = vst [vmem:[#allocation20_spill] sm:$0xff] %v4220_v46  ;;  %v4222_v47 = vpop.f32.mrb[5].mxu0 }
 0x158   :  { %5728 = vst [vmem:[#allocation21_spill] sm:$0xff] %v4222_v47  ;;  %v4224_v48 = vpop.f32.mrb[6].mxu0 }
 0x159   :  { %5729 = vst [vmem:[#allocation22_spill] sm:$0xff] %v4224_v48  ;;  %v349_v49 = vpack.c.bf16 %v4224_v48, %v4220_v46  ;;  %v4228_v50 = vpop.f32.mrb[7].mxu0 }
 0x15a   :  { %5730 = vst [vmem:[#allocation23_spill] sm:$0xff] %v4228_v50  ;;  %v348_v51 = vpack.c.bf16 %v4228_v50, %v4222_v47 }
 0x15c   :  { %3390 = vmatprep.mubr.bf16.mxu1 %v348_v51 }
 0x15d   :  { %3391 = vmatmul.mubr.bf16.gmra.mrb[4].mxu1 %v349_v49 }
 0x15e   :  { %v4232_v52 = vpop.f32.mrb[8].mxu0 }
 0x15f   :  { %5731 = vst [vmem:[#allocation24_spill] sm:$0xff] %v4232_v52  ;;  %v4234_v53 = vpop.f32.mrb[9].mxu0 }
 0x160   :  { %5732 = vst [vmem:[#allocation25_spill] sm:$0xff] %v4234_v53  ;;  %v4236_v54 = vpop.f32.mrb[10].mxu0 }
 0x161   :  { %5733 = vst [vmem:[#allocation26_spill] sm:$0xff] %v4236_v54  ;;  %v351_v55 = vpack.c.bf16 %v4236_v54, %v4232_v52  ;;  %v4240_v56 = vpop.f32.mrb[11].mxu0 }
 0x162   :  { %5734 = vst [vmem:[#allocation27_spill] sm:$0xff] %v4240_v56  ;;  %v350_v57 = vpack.c.bf16 %v4240_v56, %v4234_v53 }
 0x164   :  { %3394 = vmatprep.mubr.bf16.mxu1 %v350_v57 }
 0x165   :  { %3395 = vmatmul.mubr.bf16.gmra.mrb[8].mxu1 %v351_v55 }
 0x166   :  { %v4244_v58 = vpop.f32.mrb[12].mxu0 }
 0x167   :  { %5735 = vst [vmem:[#allocation28_spill] sm:$0xff] %v4244_v58  ;;  %v4246_v59 = vpop.f32.mrb[13].mxu0 }
 0x168   :  { %5736 = vst [vmem:[#allocation29_spill] sm:$0xff] %v4246_v59  ;;  %v4248_v60 = vpop.f32.mrb[14].mxu0 }
 0x169   :  { %5737 = vst [vmem:[#allocation30_spill] sm:$0xff] %v4248_v60  ;;  %v353_v61 = vpack.c.bf16 %v4248_v60, %v4244_v58  ;;  %v4252_v62 = vpop.f32.mrb[15].mxu0 }
 0x16a   :  { %5738 = vst [vmem:[#allocation31_spill] sm:$0xff] %v4252_v62  ;;  %v352_v63 = vpack.c.bf16 %v4252_v62, %v4246_v59 }
 0x16c   :  { %3398 = vmatprep.mubr.bf16.mxu1 %v352_v63 }
 0x16d   :  { %3399 = vmatmul.mubr.bf16.gmra.mrb[12].mxu1 %v353_v61 }
 0x228   :  { %v4263_v5 = vpop.f32.mrb[0].mxu1 }
 0x229   :  { %551 = vrot.lane.b32.xlu1 %v4263_v5, %s4017_s0  ;;  %v4267_v6 = vpop.f32.mrb[1].mxu1  ;;  %v517_v8 = vmul.f32 %v4263_v5, %v4261_v4 }
 0x22a   :  { %547 = vrot.lane.b32.xlu0 %v4267_v6, %s4017_s0  ;;  %v4271_v7 = vpop.f32.mrb[2].mxu1  ;;  %v515_v11 = vmul.f32 %v4261_v4, %v4267_v6 }
 0x22b   :  { %v518_v9 = vmul.f32 %v4271_v7, %v4261_v4  ;;  %v455_v10 = vpop.f32.mrb[3].mxu1 }
 0x22c   :  { %v516_v12 = vmul.f32 %v4261_v4, %v455_v10 }
 0x22d   :  { %553 = vrot.lane.b32.xlu1 %v4271_v7, %s4017_s0  ;;  %v928_v13 = vpack.c.bf16 %v518_v9, %v517_v8 }
 0x22e   :  { %549 = vrot.lane.b32.xlu0 %v455_v10, %s4017_s0  ;;  %v927_v14 = vpack.c.bf16 %v516_v12, %v515_v11 }
 0x230   :  { %v3392_v15 = vpop.f32.mrb[4].mxu1  ;;  %3402 = vmatprep.subr.bf16.mxu0 %v927_v14 }
 0x231   :  { %v468_v16 = vpop.f32.mrb[5].mxu1  ;;  %3403 = vmatpush3.bf16.msra.mxu0 %v927_v14  ;;  %v521_v18 = vmul.f32 %v3392_v15, %v4261_v4 }
 0x232   :  { %3404 = vmatprep.subr.bf16.mxu0 %v928_v13  ;;  %555 = vrot.lane.b32.xlu0 %v468_v16, %s4017_s0  ;;  %v3393_v17 = vpop.f32.mrb[6].mxu1  ;;  %v519_v21 = vmul.f32 %v4261_v4, %v468_v16 }
 0x233   :  { %v522_v19 = vmul.f32 %v3393_v17, %v4261_v4  ;;  %561 = vrot.lane.b32.xlu1 %v3393_v17, %s4017_s0  ;;  %v471_v20 = vpop.f32.mrb[7].mxu1 }
 0x234   :  { %v520_v22 = vmul.f32 %v4261_v4, %v471_v20 }
 0x235   :  { %3405 = vmatpush3.bf16.msra.mxu0 %v928_v13  ;;  %v930_v23 = vpack.c.bf16 %v522_v19, %v521_v18 }
 0x236   :  { %559 = vrot.lane.b32.xlu0 %v3392_v15, %s4017_s0  ;;  %v929_v24 = vpack.c.bf16 %v520_v22, %v519_v21 }
 0x237   :  { %557 = vrot.lane.b32.xlu1 %v471_v20, %s4017_s0 }
 0x238   :  { %v3396_v25 = vpop.f32.mrb[8].mxu1  ;;  %3406 = vmatprep.subr.bf16.mxu0 %v929_v24 }
 0x239   :  { %v484_v26 = vpop.f32.mrb[9].mxu1  ;;  %3407 = vmatpush3.bf16.msra.mxu0 %v929_v24  ;;  %v525_v28 = vmul.f32 %v3396_v25, %v4261_v4 }
 0x23a   :  { %3408 = vmatprep.subr.bf16.mxu0 %v930_v23  ;;  %563 = vrot.lane.b32.xlu0 %v484_v26, %s4017_s0  ;;  %v3397_v27 = vpop.f32.mrb[10].mxu1  ;;  %v523_v31 = vmul.f32 %v4261_v4, %v484_v26 }
 0x23b   :  { %v526_v29 = vmul.f32 %v3397_v27, %v4261_v4  ;;  %569 = vrot.lane.b32.xlu1 %v3397_v27, %s4017_s0  ;;  %v487_v30 = vpop.f32.mrb[11].mxu1 }
 0x23c   :  { %v524_v32 = vmul.f32 %v4261_v4, %v487_v30 }
 0x23d   :  { %3409 = vmatpush3.bf16.msra.mxu0 %v930_v23  ;;  %v932_v33 = vpack.c.bf16 %v526_v29, %v525_v28 }
 0x23e   :  { %567 = vrot.lane.b32.xlu0 %v3396_v25, %s4017_s0  ;;  %v931_v34 = vpack.c.bf16 %v524_v32, %v523_v31  ;;  %v303_v32 = vld [vmem:[#allocation8] sm:$0xff] }
 0x23f   :  { %565 = vrot.lane.b32.xlu1 %v487_v30, %s4017_s0 }
 0x240   :  { %v3400_v35 = vpop.f32.mrb[12].mxu1  ;;  %3410 = vmatprep.subr.bf16.mxu0 %v931_v34 }
 0x241   :  { %v529_v36 = vmul.f32 %v3400_v35, %v4261_v4  ;;  %v500_v37 = vpop.f32.mrb[13].mxu1  ;;  %3411 = vmatpush3.bf16.msra.mxu0 %v931_v34 }
 0x242   :  { %v527_v38 = vmul.f32 %v4261_v4, %v500_v37  ;;  %3412 = vmatprep.subr.bf16.mxu0 %v932_v33  ;;  %571 = vrot.lane.b32.xlu0 %v500_v37, %s4017_s0  ;;  %v3401_v39 = vpop.f32.mrb[14].mxu1 }
 0x243   :  { %632 = vperm.xlu1 %3610, %v455_v10   ;;  %v530_v43 = vmul.f32 %v3401_v39, %v4261_v4  ;;  %v503_v45 = vpop.f32.mrb[15].mxu1 }
 0x244   :  { %v528_v49 = vmul.f32 %v4261_v4, %v503_v45  ;;  %v3628_v4 = vld [vmem:[#allocation7 + $0x8] sm:$0xff]  }
 0x245   :  { %3413 = vmatpush3.bf16.msra.mxu0 %v932_v33  ;;  %v934_v51 = vpack.c.bf16 %v530_v43, %v529_v36 }
 0x246   :  { %575 = vrot.lane.b32.xlu0 %v3400_v35, %s4017_s0  ;;  %v933_v55 = vpack.c.bf16 %v528_v49, %v527_v38  ;;  %v304_v38 = vld [vmem:[#allocation8 + $0x8] sm:$0xff] }
 0x247   :  { %636 = vperm.xlu1 %3610, %v4263_v5  }
 0x248   :  { %3414 = vmatprep.subr.bf16.mxu0 %v933_v55 }
 0x249   :  { %3415 = vmatpush3.bf16.msra.mxu0 %v933_v55 }
 0x24a   :  { %628 = vperm.xlu0 %3609, %v4267_v6   ;;  %3416 = vmatprep.subr.bf16.mxu0 %v934_v51 }
 0x24b   :  { %644 = vperm.xlu1 %3610, %v468_v16  }
 0x24d   :  { %3417 = vmatpush3.bf16.msra.mxu0 %v934_v51  ;;  %v305_v51 = vld [vmem:[#allocation8 + $0x10] sm:$0xff] }
 0x24e   :  { %640 = vperm.xlu0 %3609, %v4271_v7  }
 0x24f   :  { %652 = vperm.xlu1 %3610, %v3392_v15  }
 0x252   :  { %648 = vperm.xlu0 %3609, %v471_v20  }
 0x253   :  { %660 = vperm.xlu1 %3610, %v484_v26  }
 0x256   :  { %656 = vperm.xlu0 %3609, %v3393_v17  }
 0x257   :  { %668 = vperm.xlu1 %3610, %v3396_v25   ;;  %v4319_v25 = vshrl.u32 %v335_v1, 7 }
 0x259   :  { %5740 = vst [vmem:[#allocation33_spill] sm:$0xff] %v4319_v25  ;;  %v5617_v26 = vsub.s32 0, %v4319_v25 }
 0x25a   :  { %664 = vperm.xlu0 %3609, %v487_v30  }
 0x25b   :  { %684 = vperm.xlu1 %3610, %v3400_v35  }
 0x25e   :  { %672 = vperm.xlu0 %3609, %v3397_v27  }
 0x25f   :  { %676 = vperm.xlu1 %3610, %v500_v37  }
 0x262   :  { %688 = vperm.xlu0 %3609, %v3401_v39  }
 0x263   :  { %577 = vrot.lane.b32.xlu1 %v3401_v39, %s4017_s0 }
 0x266   :  { %680 = vperm.xlu0 %3609, %v503_v45  }
 0x267   :  { %573 = vrot.lane.b32.xlu1 %v503_v45, %s4017_s0 }
 0x29b   :  { %v552_v61 = vpop.permute.xlu1 %551 }
 0x29c   :  { %v548_v57 = vpop.permute.xlu0 %547 }
 0x29d   :  { %595 = vxpose.xlu1.b32.start [1/16] (narrow) %v548_v57, 8 }
 0x29f   :  { %v554_v0 = vpop.permute.xlu1 %553 }
 0x2a0   :  { %v550_v63 = vpop.permute.xlu0 %549 }
 0x2a1   :  { %596 = vxpose.xlu1.b32.cont [2/16] (narrow) %v550_v63, 8 }
 0x2a4   :  { %v556_v6 = vpop.permute.xlu0 %555 }
 0x2a5   :  { %597 = vxpose.xlu1.b32.cont [3/16] (narrow) %v552_v61, 8  ;;  %v562_v5 = vpop.permute.xlu1 %561 }
 0x2a8   :  { %v560_v8 = vpop.permute.xlu0 %559 }
 0x2a9   :  { %598 = vxpose.xlu1.b32.cont [4/16] (narrow) %v554_v0, 8  ;;  %v558_v7 = vpop.permute.xlu1 %557 }
 0x2ac   :  { %v564_v10 = vpop.permute.xlu0 %563 }
 0x2ad   :  { %599 = vxpose.xlu1.b32.cont [5/16] (narrow) %v556_v6, 8  ;;  %v570_v9 = vpop.permute.xlu1 %569 }
 0x2b0   :  { %v568_v13 = vpop.permute.xlu0 %567 }
 0x2b1   :  { %600 = vxpose.xlu1.b32.cont [6/16] (narrow) %v558_v7, 8  ;;  %v566_v11 = vpop.permute.xlu1 %565 }
 0x2b4   :  { %v572_v16 = vpop.permute.xlu0 %571 }
 0x2b5   :  { %601 = vxpose.xlu1.b32.cont [7/16] (narrow) %v560_v8, 8 }
 0x2b8   :  { %v576_v24 = vpop.permute.xlu0 %575 }
 0x2b9   :  { %602 = vxpose.xlu1.b32.cont [8/16] (narrow) %v562_v5, 8  ;;  %v306_v5 = vld [vmem:[#allocation8 + $0x18] sm:$0xff] }
 0x2bd   :  { %603 = vxpose.xlu1.b32.cont [9/16] (narrow) %v564_v10, 8  ;;  %v307_v10 = vld [vmem:[#allocation8 + $0x20] sm:$0xff] }
 0x2c1   :  { %604 = vxpose.xlu1.b32.cont [10/16] (narrow) %v566_v11, 8 }
 0x2c2   :  { %v633_v12 = vpop.permute.xlu1 %632 }
 0x2c5   :  { %605 = vxpose.xlu1.b32.cont [11/16] (narrow) %v568_v13, 8 }
 0x2c6   :  { %v637_v14 = vpop.permute.xlu1 %636 }
 0x2c9   :  { %606 = vxpose.xlu1.b32.cont [12/16] (narrow) %v570_v9, 8  ;;  %v629_v29 = vpop.permute.xlu0 %628 }
 0x2ca   :  { %v645_v15 = vpop.permute.xlu1 %644 }
 0x2cd   :  { %607 = vxpose.xlu1.b32.cont [13/16] (narrow) %v572_v16, 8  ;;  %v641_v36 = vpop.permute.xlu0 %640  ;;  %v308_v16 = vld [vmem:[#allocation8 + $0x28] sm:$0xff] }
 0x2ce   :  { %v653_v17 = vpop.permute.xlu1 %652 }
 0x2d1   :  { %v649_v63 = vpop.permute.xlu0 %648 }
 0x2d2   :  { %v4310_v18 = vpop.permute.xlu1 %660 }
 0x2d6   :  { %v4312_v19 = vpop.permute.xlu1 %668 }
 0x2da   :  { %v4314_v20 = vpop.permute.xlu1 %684 }
 0x2de   :  { %v4316_v21 = vpop.permute.xlu1 %676 }
 0x2e2   :  { %v578_v22 = vpop.permute.xlu1 %577 }
 0x2e6   :  { %v574_v23 = vpop.permute.xlu1 %573 }
 0x2e7   :  { %608 = vxpose.xlu1.b32.cont [14/16] (narrow) %v574_v23, 8 }
 0x2eb   :  { %609 = vxpose.xlu1.b32.cont [15/16] (narrow) %v576_v24, 8 }
 0x2ef   :  { %610 = vxpose.xlu1.b32.end [16/16] (narrow) %v578_v22, 8 }
 0x333   :  { %v611_v27 = vpop.trf.xlu1 }
 0x334   :  { %v4324_v28 = vrot.slane %v611_v27, %v5617_v26 }
 0x336   :  { %v695_v30 = vadd.f32 %v4324_v28, %v629_v29  ;;  %v696_v31 = vadd.f32 %v4324_v28, %v633_v12  ;;  %v697_v35 = vadd.f32 %v4324_v28, %v637_v14  ;;  %v698_v45 = vadd.f32 %v4324_v28, %v641_v36  ;;  %v657_v14 = vpop.permute.xlu0 %656  ;;  %v309_v29 = vld [vmem:[#allocation8 + $0x30] sm:$0xff] }
 0x337   :  { %v699_v61 = vadd.f32 %v4324_v28, %v645_v15  ;;  %v700_v8 = vadd.f32 %v4324_v28, %v649_v63  ;;  %v701_v13 = vadd.f32 %v4324_v28, %v653_v17  ;;  %v702_v24 = vadd.f32 %v4324_v28, %v657_v14  ;;  %v314_v14 = vld [vmem:[#allocation8 + $0x58] sm:$0xff] }
 0x338   :  { %vm711_vm1 = vcmp.gt.f32.partialorder %v695_v30, 0.0  ;;  %v727_v33 = vmul.f32 0.2, %v695_v30  ;;  %v728_v34 = vmul.f32 0.2, %v696_v31  ;;  %vm712_vm2 = vcmp.gt.f32.partialorder %v696_v31, 0.0 }
 0x339   :  { %v729_v43 = vmul.f32 0.2, %v697_v35  ;;  %vm713_vm3 = vcmp.gt.f32.partialorder %v697_v35, 0.0  ;;  %v730_v57 = vmul.f32 0.2, %v698_v45  ;;  %vm714_vm4 = vcmp.gt.f32.partialorder %v698_v45, 0.0 }
 0x33a   :  { %v743_v1 = vsel %vm711_vm1, %v695_v30, %v727_v33  ;;  %v744_v39 = vsel %vm712_vm2, %v696_v31, %v728_v34  ;;  %v731_v7 = vmul.f32 0.2, %v699_v61  ;;  %vm715_vm5 = vcmp.gt.f32.partialorder %v699_v61, 0.0  ;;  %v310_v34 = vld [vmem:[#allocation8 + $0x38] sm:$0xff] }
 0x33b   :  { %v4329_v37 = vadd.f32 %v743_v1, %v303_v32  ;;  %v4333_v49 = vadd.f32 %v744_v39, %v304_v38  ;;  %v745_v55 = vsel %vm713_vm3, %v697_v35, %v729_v43  ;;  %v746_v6 = vsel %vm714_vm4, %v698_v45, %v730_v57  ;;  %v665_v32 = vpop.permute.xlu0 %664  ;;  %v311_v43 = vld [vmem:[#allocation8 + $0x40] sm:$0xff]  ;;  %v312_v57 = vld [vmem:[#allocation8 + $0x48] sm:$0xff] }
 0x33c   :  { %v4337_v0 = vadd.f32 %v745_v55, %v305_v51  ;;  %v4341_v9 = vadd.f32 %v746_v6, %v306_v5  ;;  %v747_v11 = vsel %vm715_vm5, %v699_v61, %v731_v7  ;;  %v732_v12 = vmul.f32 0.2, %v700_v8 }
 0x33d   :  { %775 = vmax.xlane.f32.xlu0 %v4329_v37  ;;  %vm716_vm6 = vcmp.gt.f32.partialorder %v700_v8, 0.0  ;;  %v4345_v15 = vadd.f32 %v747_v11, %v307_v10  ;;  %v733_v23 = vmul.f32 0.2, %v701_v13  ;;  %vm717_vm7 = vcmp.gt.f32.partialorder %v701_v13, 0.0 }
 0x33e   :  { %v748_v22 = vsel %vm716_vm6, %v700_v8, %v732_v12  ;;  %v734_v31 = vmul.f32 0.2, %v702_v24  ;;  %v703_v17 = vadd.f32 %v4324_v28, %v4310_v18  ;;  %vm718_vm8 = vcmp.gt.f32.partialorder %v702_v24, 0.0  ;;  %v313_v8 = vld [vmem:[#allocation8 + $0x50] sm:$0xff] }
 0x33f   :  { %v4349_v27 = vadd.f32 %v748_v22, %v308_v16  ;;  %v749_v30 = vsel %vm717_vm7, %v701_v13, %v733_v23  ;;  %v704_v36 = vadd.f32 %v4324_v28, %v665_v32  ;;  %v673_v38 = vpop.permute.xlu0 %672  ;;  %v705_v51 = vadd.f32 %v4324_v28, %v4312_v19  ;;  %v316_v32 = vld [vmem:[#allocation8 + $0x68] sm:$0xff] }
 0x340   :  { %v4354_v33 = vadd.f32 %v749_v30, %v309_v29  ;;  %v750_v35 = vsel %vm718_vm8, %v702_v24, %v734_v31  ;;  %v735_v1 = vmul.f32 0.2, %v703_v17  ;;  %vm719_vm9 = vcmp.gt.f32.partialorder %v703_v17, 0.0  ;;  %v315_v29 = vld [vmem:[#allocation8 + $0x60] sm:$0xff] }
 0x341   :  { %777 = vmax.xlane.f32.xlu0 %v4333_v49  ;;  %v4358_v39 = vadd.f32 %v750_v35, %v310_v34  ;;  %v736_v18 = vmul.f32 0.2, %v704_v36  ;;  %vm720_vm10 = vcmp.gt.f32.partialorder %v704_v36, 0.0  ;;  %v737_v63 = vmul.f32 0.2, %v705_v51 }
 0x342   :  { %v751_v45 = vsel %vm719_vm9, %v703_v17, %v735_v1  ;;  %v706_v5 = vadd.f32 %v4324_v28, %v673_v38  ;;  %vm721_vm11 = vcmp.gt.f32.partialorder %v705_v51, 0.0  ;;  %v707_v19 = vadd.f32 %v4324_v28, %v4316_v21  ;;  %v317_v38 = vld [vmem:[#allocation8 + $0x70] sm:$0xff] }
 0x343   :  { %v4363_v55 = vadd.f32 %v751_v45, %v311_v43  ;;  %v752_v61 = vsel %vm720_vm10, %v704_v36, %v736_v18  ;;  %v689_v6 = vpop.permute.xlu0 %688  ;;  %v753_v10 = vsel %vm721_vm11, %v705_v51, %v737_v63  ;;  %v709_v21 = vadd.f32 %v4324_v28, %v4314_v20  ;;  %v318_v18 = vld [vmem:[#allocation8 + $0x78] sm:$0xff] }
 0x344   :  { %v4367_v7 = vadd.f32 %v752_v61, %v312_v57  ;;  %v738_v11 = vmul.f32 0.2, %v706_v5  ;;  %vm722_vm12 = vcmp.gt.f32.partialorder %v706_v5, 0.0  ;;  %v4372_v13 = vadd.f32 %v753_v10, %v313_v8 }
 0x345   :  { %779 = vmax.xlane.f32.xlu0 %v4337_v0  ;;  %v739_v22 = vmul.f32 0.2, %v707_v19  ;;  %vm723_vm13 = vcmp.gt.f32.partialorder %v707_v19, 0.0  ;;  %v741_v35 = vmul.f32 0.2, %v709_v21  ;;  %v710_v1 = vadd.f32 %v4324_v28, %v689_v6 }
 0x346   :  { %v754_v16 = vsel %vm722_vm12, %v706_v5, %v738_v11  ;;  %vm725_vm15 = vcmp.gt.f32.partialorder %v709_v21, 0.0  ;;  %vm340_vm1 = vcmp.eq.s32.totalorder %v4257_v2, 32  ;;  %vm343_vm2 = vcmp.eq.s32.totalorder %v4257_v2, 33 }
 0x347   :  { %v681_v12 = vpop.permute.xlu0 %680  ;;  %v4376_v24 = vadd.f32 %v754_v16, %v314_v14  ;;  %v755_v30 = vsel %vm723_vm13, %v707_v19, %v739_v22  ;;  %v757_v43 = vsel %vm725_vm15, %v709_v21, %v741_v35  ;;  %v742_v45 = vmul.f32 0.2, %v710_v1 }
 0x348   :  { %v708_v23 = vadd.f32 %v4324_v28, %v681_v12  ;;  %v4381_v17 = vadd.f32 %v755_v30, %v315_v29  ;;  %vm726_vm0 = vcmp.gt.f32.partialorder %v710_v1, 0.0  ;;  %v4388_v20 = vadd.f32 %v757_v43, %v317_v38 }
 0x349   :  { %781 = vmax.xlane.f32.xlu0 %v4341_v9  ;;  %v758_v51 = vsel %vm726_vm0, %v710_v1, %v742_v45 }
 0x34a   :  { %v740_v31 = vmul.f32 0.2, %v708_v23  ;;  %vm724_vm14 = vcmp.gt.f32.partialorder %v708_v23, 0.0  ;;  %v4391_v57 = vadd.f32 %v758_v51, %v318_v18 }
 0x34c   :  { %v756_v34 = vsel %vm724_vm14, %v708_v23, %v740_v31 }
 0x34d   :  { %783 = vmax.xlane.f32.xlu0 %v4345_v15  ;;  %v4385_v36 = vadd.f32 %v756_v34, %v316_v32 }
 0x351   :  { %785 = vmax.xlane.f32.xlu0 %v4349_v27 }
 0x355   :  { %787 = vmax.xlane.f32.xlu0 %v4354_v33 }
 0x359   :  { %789 = vmax.xlane.f32.xlu0 %v4358_v39 }
 0x35d   :  { %791 = vmax.xlane.f32.xlu0 %v4363_v55 }
 0x361   :  { %793 = vmax.xlane.f32.xlu0 %v4367_v7 }
 0x365   :  { %795 = vmax.xlane.f32.xlu0 %v4372_v13 }
 0x369   :  { %797 = vmax.xlane.f32.xlu0 %v4376_v24 }
 0x36d   :  { %799 = vmax.xlane.f32.xlu0 %v4381_v17 }
 0x371   :  { %801 = vmax.xlane.f32.xlu0 %v4385_v36 }
 0x375   :  { %803 = vmax.xlane.f32.xlu0 %v4388_v20 }
 0x379   :  { %805 = vmax.xlane.f32.xlu0 %v4391_v57 }
 0x3ca   :  { %v776_v28 = vpop.xlane.xlu0 %775 }
 0x3cb   :  { %v807_v61 = vsub.f32 %v4329_v37, %v776_v28 }
 0x3cd   :  { %v823_v63 = vmul.f32 1.442695, %v807_v61 }
 0x3ce   :  { %v778_v5 = vpop.xlane.xlu0 %777 }
 0x3cf   :  { %3651 = vpow2.f32 %v823_v63  ;;  %v808_v6 = vsub.f32 %v4333_v49, %v778_v5 }
 0x3d1   :  { %v825_v8 = vmul.f32 1.442695, %v808_v6 }
 0x3d2   :  { %v780_v10 = vpop.xlane.xlu0 %779 }
 0x3d3   :  { %3653 = vpow2.f32 %v825_v8  ;;  %v809_v11 = vsub.f32 %v4337_v0, %v780_v10 }
 0x3d5   :  { %v827_v19 = vmul.f32 1.442695, %v809_v11 }
 0x3d6   :  { %v782_v12 = vpop.xlane.xlu0 %781 }
 0x3d7   :  { %3655 = vpow2.f32 %v827_v19  ;;  %v810_v14 = vsub.f32 %v4341_v9, %v782_v12 }
 0x3d9   :  { %v4398_v16 = vpop.eup %3651  ;;  %v829_v22 = vmul.f32 1.442695, %v810_v14 }
 0x3da   :  { %855 = vadd.xlane.f32.xlu0 %v4398_v16  ;;  %v784_v37 = vpop.xlane.xlu0 %783 }
 0x3db   :  { %3657 = vpow2.f32 %v829_v22  ;;  %v811_v23 = vsub.f32 %v4345_v15, %v784_v37 }
 0x3dd   :  { %v4402_v49 = vpop.eup %3653  ;;  %v831_v29 = vmul.f32 1.442695, %v811_v23 }
 0x3de   :  { %857 = vadd.xlane.f32.xlu0 %v4402_v49  ;;  %v786_v0 = vpop.xlane.xlu0 %785 }
 0x3df   :  { %3659 = vpow2.f32 %v831_v29  ;;  %v812_v30 = vsub.f32 %v4349_v27, %v786_v0 }
 0x3e1   :  { %v4406_v31 = vpop.eup %3655  ;;  %v833_v9 = vmul.f32 1.442695, %v812_v30 }
 0x3e2   :  { %859 = vadd.xlane.f32.xlu1 %v4406_v31  ;;  %v788_v21 = vpop.xlane.xlu0 %787 }
 0x3e3   :  { %3661 = vpow2.f32 %v833_v9  ;;  %v813_v32 = vsub.f32 %v4354_v33, %v788_v21 }
 0x3e5   :  { %v4410_v34 = vpop.eup %3657  ;;  %v835_v15 = vmul.f32 1.442695, %v813_v32 }
 0x3e6   :  { %861 = vadd.xlane.f32.xlu0 %v4410_v34  ;;  %v790_v35 = vpop.xlane.xlu0 %789 }
 0x3e7   :  { %3663 = vpow2.f32 %v835_v15  ;;  %v814_v1 = vsub.f32 %v4358_v39, %v790_v35 }
 0x3e9   :  { %v4414_v38 = vpop.eup %3659  ;;  %v837_v27 = vmul.f32 1.442695, %v814_v1 }
 0x3ea   :  { %863 = vadd.xlane.f32.xlu0 %v4414_v38  ;;  %v792_v43 = vpop.xlane.xlu0 %791 }
 0x3eb   :  { %3665 = vpow2.f32 %v837_v27  ;;  %v815_v45 = vsub.f32 %v4363_v55, %v792_v43 }
 0x3ed   :  { %v4418_v18 = vpop.eup %3661  ;;  %v839_v33 = vmul.f32 1.442695, %v815_v45 }
 0x3ee   :  { %865 = vadd.xlane.f32.xlu0 %v4418_v18  ;;  %v794_v51 = vpop.xlane.xlu0 %793 }
 0x3ef   :  { %3667 = vpow2.f32 %v839_v33  ;;  %v816_v28 = vsub.f32 %v4367_v7, %v794_v51 }
 0x3f1   :  { %v4422_v61 = vpop.eup %3663  ;;  %v841_v39 = vmul.f32 1.442695, %v816_v28 }
 0x3f2   :  { %867 = vadd.xlane.f32.xlu0 %v4422_v61  ;;  %v796_v63 = vpop.xlane.xlu0 %795 }
 0x3f3   :  { %3669 = vpow2.f32 %v841_v39  ;;  %v817_v5 = vsub.f32 %v4372_v13, %v796_v63 }
 0x3f5   :  { %v4426_v6 = vpop.eup %3665  ;;  %v843_v55 = vmul.f32 1.442695, %v817_v5 }
 0x3f6   :  { %869 = vadd.xlane.f32.xlu0 %v4426_v6  ;;  %v798_v8 = vpop.xlane.xlu0 %797 }
 0x3f7   :  { %3671 = vpow2.f32 %v843_v55  ;;  %v818_v10 = vsub.f32 %v4376_v24, %v798_v8 }
 0x3f9   :  { %v4430_v11 = vpop.eup %3667  ;;  %v845_v7 = vmul.f32 1.442695, %v818_v10 }
 0x3fa   :  { %871 = vadd.xlane.f32.xlu0 %v4430_v11  ;;  %v800_v19 = vpop.xlane.xlu0 %799 }
 0x3fb   :  { %3673 = vpow2.f32 %v845_v7  ;;  %v819_v12 = vsub.f32 %v4381_v17, %v800_v19 }
 0x3fd   :  { %v4434_v14 = vpop.eup %3669  ;;  %v847_v13 = vmul.f32 1.442695, %v819_v12 }
 0x3fe   :  { %873 = vadd.xlane.f32.xlu0 %v4434_v14  ;;  %v802_v22 = vpop.xlane.xlu0 %801 }
 0x3ff   :  { %3675 = vpow2.f32 %v847_v13  ;;  %v820_v37 = vsub.f32 %v4385_v36, %v802_v22 }
 0x401   :  { %v4438_v23 = vpop.eup %3671  ;;  %v849_v24 = vmul.f32 1.442695, %v820_v37 }
 0x402   :  { %875 = vadd.xlane.f32.xlu0 %v4438_v23  ;;  %v804_v29 = vpop.xlane.xlu0 %803 }
 0x403   :  { %3677 = vpow2.f32 %v849_v24  ;;  %v821_v0 = vsub.f32 %v4388_v20, %v804_v29 }
 0x405   :  { %v4442_v30 = vpop.eup %3673  ;;  %v851_v17 = vmul.f32 1.442695, %v821_v0 }
 0x406   :  { %877 = vadd.xlane.f32.xlu0 %v4442_v30  ;;  %v806_v9 = vpop.xlane.xlu0 %805 }
 0x407   :  { %3679 = vpow2.f32 %v851_v17  ;;  %v822_v21 = vsub.f32 %v4391_v57, %v806_v9 }
 0x409   :  { %v4446_v32 = vpop.eup %3675  ;;  %v853_v36 = vmul.f32 1.442695, %v822_v21 }
 0x40a   :  { %879 = vadd.xlane.f32.xlu0 %v4446_v32 }
 0x40b   :  { %3681 = vpow2.f32 %v853_v36 }
 0x40d   :  { %v4449_v15 = vpop.eup %3677 }
 0x40e   :  { %881 = vadd.xlane.f32.xlu1 %v4449_v15 }
 0x411   :  { %v4452_v20 = vpop.eup %3679 }
 0x412   :  { %883 = vadd.xlane.f32.xlu0 %v4452_v20 }
 0x415   :  { %v4455_v35 = vpop.eup %3681 }
 0x416   :  { %885 = vadd.xlane.f32.xlu1 %v4455_v35 }
 0x467   :  { %v856_v1 = vpop.xlane.xlu0 %855 }
 0x468   :  { %3683 = vrcp.f32 %v856_v1 }
 0x46b   :  { %v858_v57 = vpop.xlane.xlu0 %857 }
 0x46c   :  { %3685 = vrcp.f32 %v858_v57 }
 0x46f   :  { %v860_v27 = vpop.xlane.xlu1 %859 }
 0x470   :  { %3687 = vrcp.f32 %v860_v27 }
 0x472   :  { %v3684_v45 = vpop.eup %3683 }
 0x473   :  { %v862_v43 = vpop.xlane.xlu0 %861  ;;  %v903_v28 = vmul.f32 %v3684_v45, %v4398_v16 }
 0x474   :  { %3689 = vrcp.f32 %v862_v43 }
 0x476   :  { %v3686_v33 = vpop.eup %3685 }
 0x477   :  { %v864_v51 = vpop.xlane.xlu0 %863  ;;  %v904_v39 = vmul.f32 %v3686_v33, %v4402_v49 }
 0x478   :  { %3691 = vrcp.f32 %v864_v51 }
 0x479   :  { %v919_v63 = vpack.c.bf16 %v904_v39, %v903_v28 }
 0x47a   :  { %v3688_v55 = vpop.eup %3687 }
 0x47b   :  { %3418 = vmatprep.mubr.bf16.mxu0 %v919_v63  ;;  %v866_v5 = vpop.xlane.xlu0 %865  ;;  %v905_v10 = vmul.f32 %v3688_v55, %v4406_v31 }
 0x47c   :  { %3693 = vrcp.f32 %v866_v5 }
 0x47e   :  { %v3690_v8 = vpop.eup %3689 }
 0x47f   :  { %v906_v7 = vmul.f32 %v3690_v8, %v4410_v34  ;;  %v868_v19 = vpop.xlane.xlu0 %867 }
 0x480   :  { %3695 = vrcp.f32 %v868_v19 }
 0x481   :  { %v920_v12 = vpack.c.bf16 %v906_v7, %v905_v10 }
 0x482   :  { %v3692_v22 = vpop.eup %3691 }
 0x483   :  { %v870_v13 = vpop.xlane.xlu0 %869  ;;  %3419 = vmatmul.mubr.bf16.vlgmr.msra.gmra.mrb[16].mxu0 %v920_v12  ;;  %v907_v37 = vmul.f32 %v3692_v22, %v4414_v38 }
 0x484   :  { %3697 = vrcp.f32 %v870_v13  ;;  %v4477_v13 = vld [vmem:[%s5610_s3] ss:$0 sm:$0xff] }
 0x486   :  { %v3694_v16 = vpop.eup %3693 }
 0x487   :  { %v872_v49 = vpop.xlane.xlu0 %871  ;;  %v908_v24 = vmul.f32 %v3694_v16, %v4418_v18 }
 0x488   :  { %3699 = vrcp.f32 %v872_v49 }
 0x489   :  { %v921_v29 = vpack.c.bf16 %v908_v24, %v907_v37 }
 0x48a   :  { %v3696_v31 = vpop.eup %3695 }
 0x48b   :  { %v874_v0 = vpop.xlane.xlu0 %873  ;;  %3422 = vmatprep.mubr.bf16.mxu0 %v921_v29  ;;  %v909_v9 = vmul.f32 %v3696_v31, %v4422_v61 }
 0x48c   :  { %3701 = vrcp.f32 %v874_v0 }
 0x48e   :  { %v3698_v34 = vpop.eup %3697 }
 0x48f   :  { %v876_v17 = vpop.xlane.xlu0 %875  ;;  %v910_v21 = vmul.f32 %v3698_v34, %v4426_v6 }
 0x490   :  { %3703 = vrcp.f32 %v876_v17 }
 0x491   :  { %v922_v36 = vpack.c.bf16 %v910_v21, %v909_v9 }
 0x492   :  { %v3700_v57 = vpop.eup %3699 }
 0x493   :  { %v878_v1 = vpop.xlane.xlu0 %877  ;;  %3423 = vmatmul.mubr.bf16.gmra.mrb[20].mxu0 %v922_v36  ;;  %v911_v27 = vmul.f32 %v3700_v57, %v4430_v11 }
 0x494   :  { %3705 = vrcp.f32 %v878_v1 }
 0x496   :  { %v3702_v38 = vpop.eup %3701 }
 0x497   :  { %v880_v18 = vpop.xlane.xlu0 %879  ;;  %v912_v43 = vmul.f32 %v3702_v38, %v4434_v14 }
 0x498   :  { %3707 = vrcp.f32 %v880_v18 }
 0x499   :  { %v923_v45 = vpack.c.bf16 %v912_v43, %v911_v27 }
 0x49a   :  { %v3704_v51 = vpop.eup %3703 }
 0x49b   :  { %v882_v33 = vpop.xlane.xlu1 %881  ;;  %3426 = vmatprep.mubr.bf16.mxu0 %v923_v45  ;;  %v913_v28 = vmul.f32 %v3704_v51, %v4438_v23 }
 0x49c   :  { %3709 = vrcp.f32 %v882_v33 }
 0x49e   :  { %v3706_v61 = vpop.eup %3705 }
 0x49f   :  { %v884_v6 = vpop.xlane.xlu0 %883  ;;  %v914_v39 = vmul.f32 %v3706_v61, %v4442_v30 }
 0x4a0   :  { %3711 = vrcp.f32 %v884_v6 }
 0x4a1   :  { %v924_v63 = vpack.c.bf16 %v914_v39, %v913_v28 }
 0x4a2   :  { %v3708_v55 = vpop.eup %3707 }
 0x4a3   :  { %v886_v5 = vpop.xlane.xlu1 %885  ;;  %3427 = vmatmul.mubr.bf16.gmra.mrb[24].mxu0 %v924_v63  ;;  %v915_v14 = vmul.f32 %v3708_v55, %v4446_v32 }
 0x4a4   :  { %3713 = vrcp.f32 %v886_v5 }
 0x4a6   :  { %v3710_v11 = vpop.eup %3709 }
 0x4a7   :  { %v916_v8 = vmul.f32 %v3710_v11, %v4449_v15 }
 0x4a9   :  { %v925_v10 = vpack.c.bf16 %v916_v8, %v915_v14 }
 0x4aa   :  { %v3712_v7 = vpop.eup %3711 }
 0x4ab   :  { %3430 = vmatprep.mubr.bf16.mxu0 %v925_v10  ;;  %v917_v12 = vmul.f32 %v3712_v7, %v4452_v20 }
 0x4ae   :  { %v3714_v19 = vpop.eup %3713 }
 0x4af   :  { %v918_v23 = vmul.f32 %v3714_v19, %v4455_v35 }
 0x4b1   :  { %v926_v30 = vpack.c.bf16 %v918_v23, %v917_v12 }
 0x4b3   :  { %3431 = vmatmul.mubr.bf16.gmra.mrb[28].mxu0 %v926_v30 }
 0x556   :  { %v3420_v22 = vpop.f32.mrb[16].mxu0 }
 0x557   :  { %v985_v32 = vadd.f32 %v3420_v22, %v4477_v13  ;;  %v976_v16 = vpop.f32.mrb[17].mxu0 }
 0x558   :  { %v977_v15 = vadd.f32 %v4477_v13, %v976_v16  ;;  %v3421_v49 = vpop.f32.mrb[18].mxu0 }
 0x559   :  { %v4481_v37 = vmax.f32 %v985_v32, 0.0  ;;  %v979_v24 = vpop.f32.mrb[19].mxu0  ;;  %v988_v20 = vadd.f32 %v3421_v49, %v4477_v13 }
 0x55a   :  { %v980_v35 = vadd.f32 %v4477_v13, %v979_v24  ;;  %v4485_v29 = vmax.f32 %v977_v15, 0.0 }
 0x55b   :  { %5741 = vst [vmem:[#allocation34_spill] sm:$0xff] %v4481_v37  ;;  %v1057_v0 = vmul.f32 %v4481_v37, %v4481_v37  ;;  %v4491_v34 = vmax.f32 %v988_v20, 0.0 }
 0x55c   :  { %5742 = vst [vmem:[#allocation35_spill] sm:$0xff] %v4485_v29  ;;  %v4489_v31 = vmax.f32 %v980_v35, 0.0  ;;  %v1055_v9 = vmul.f32 %v4485_v29, %v4485_v29 }
 0x55d   :  { %1075 = vadd.xlane.f32.xlu0 %v1057_v0  ;;  %5744 = vst [vmem:[#allocation37_spill] sm:$0xff] %v4491_v34  ;;  %v1058_v21 = vmul.f32 %v4491_v34, %v4491_v34 }
 0x55e   :  { %5743 = vst [vmem:[#allocation36_spill] sm:$0xff] %v4489_v31  ;;  %v1056_v17 = vmul.f32 %v4489_v31, %v4489_v31 }
 0x560   :  { %1073 = vadd.xlane.f32.xlu1 %v1056_v17 }
 0x561   :  { %1071 = vadd.xlane.f32.xlu0 %v1055_v9 }
 0x564   :  { %1077 = vadd.xlane.f32.xlu1 %v1058_v21 }
 0x566   :  { %v3424_v36 = vpop.f32.mrb[20].mxu0 }
 0x567   :  { %v1001_v1 = vadd.f32 %v3424_v36, %v4477_v13  ;;  %v992_v57 = vpop.f32.mrb[21].mxu0 }
 0x568   :  { %v993_v38 = vadd.f32 %v4477_v13, %v992_v57  ;;  %v3425_v18 = vpop.f32.mrb[22].mxu0 }
 0x569   :  { %v4501_v27 = vmax.f32 %v1001_v1, 0.0  ;;  %v995_v43 = vpop.f32.mrb[23].mxu0  ;;  %v1004_v45 = vadd.f32 %v3425_v18, %v4477_v13 }
 0x56a   :  { %v996_v33 = vadd.f32 %v4477_v13, %v995_v43  ;;  %v4505_v51 = vmax.f32 %v993_v38, 0.0 }
 0x56b   :  { %5745 = vst [vmem:[#allocation38_spill] sm:$0xff] %v4501_v27  ;;  %v1061_v61 = vmul.f32 %v4501_v27, %v4501_v27  ;;  %v4511_v28 = vmax.f32 %v1004_v45, 0.0 }
 0x56c   :  { %5746 = vst [vmem:[#allocation39_spill] sm:$0xff] %v4505_v51  ;;  %v4509_v6 = vmax.f32 %v996_v33, 0.0  ;;  %v1059_v63 = vmul.f32 %v4505_v51, %v4505_v51 }
 0x56d   :  { %1083 = vadd.xlane.f32.xlu0 %v1061_v61  ;;  %5748 = vst [vmem:[#allocation41_spill] sm:$0xff] %v4511_v28  ;;  %v1062_v5 = vmul.f32 %v4511_v28, %v4511_v28 }
 0x56e   :  { %5747 = vst [vmem:[#allocation40_spill] sm:$0xff] %v4509_v6  ;;  %v1060_v39 = vmul.f32 %v4509_v6, %v4509_v6 }
 0x570   :  { %1081 = vadd.xlane.f32.xlu1 %v1060_v39  ;;  %v4559_v39 = vld [vmem:[#allocation7] sm:$0xff]  }
 0x571   :  { %1079 = vadd.xlane.f32.xlu0 %v1059_v63  ;;  %5753 = vst [vmem:[#allocation46_spill] sm:$0xff] %v4559_v39  ;;  %3450 = vmatprep.mubr.bf16.mxu1 %v4559_v39  ;;  %v320_v63 = vld [vmem:[%s5613_s6 + $0x8] sm:$0xff] }
 0x574   :  { %1085 = vadd.xlane.f32.xlu1 %v1062_v5  ;;  %v319_v5 = vld [vmem:[%s5613_s6] sm:$0xff] }
 0x576   :  { %v3428_v55 = vpop.f32.mrb[24].mxu0 }
 0x577   :  { %v1017_v11 = vadd.f32 %v3428_v55, %v4477_v13  ;;  %v1008_v14 = vpop.f32.mrb[25].mxu0  ;;  %v321_v55 = vld [vmem:[%s5613_s6 + $0x10] sm:$0xff] }
 0x578   :  { %v1009_v8 = vadd.f32 %v4477_v13, %v1008_v14  ;;  %v3429_v10 = vpop.f32.mrb[26].mxu0  ;;  %v324_v14 = vld [vmem:[%s5613_s6 + $0x28] sm:$0xff] }
 0x579   :  { %v4521_v7 = vmax.f32 %v1017_v11, 0.0  ;;  %v1011_v19 = vpop.f32.mrb[27].mxu0  ;;  %v1020_v12 = vadd.f32 %v3429_v10, %v4477_v13  ;;  %v322_v11 = vld [vmem:[%s5613_s6 + $0x18] sm:$0xff]  ;;  %v325_v10 = vld [vmem:[%s5613_s6 + $0x30] sm:$0xff] }
 0x57a   :  { %v1012_v23 = vadd.f32 %v4477_v13, %v1011_v19  ;;  %v4525_v30 = vmax.f32 %v1009_v8, 0.0  ;;  %v323_v8 = vld [vmem:[%s5613_s6 + $0x20] sm:$0xff]  ;;  %v326_v19 = vld [vmem:[%s5613_s6 + $0x38] sm:$0xff] }
 0x57b   :  { %5749 = vst [vmem:[#allocation42_spill] sm:$0xff] %v4521_v7  ;;  %v1065_v22 = vmul.f32 %v4521_v7, %v4521_v7  ;;  %v4531_v16 = vmax.f32 %v1020_v12, 0.0  ;;  %v327_v12 = vld [vmem:[%s5613_s6 + $0x40] sm:$0xff] }
 0x57c   :  { %5750 = vst [vmem:[#allocation43_spill] sm:$0xff] %v4525_v30  ;;  %v4529_v32 = vmax.f32 %v1012_v23, 0.0  ;;  %v1063_v49 = vmul.f32 %v4525_v30, %v4525_v30  ;;  %v328_v23 = vld [vmem:[%s5613_s6 + $0x48] sm:$0xff] }
 0x57d   :  { %1091 = vadd.xlane.f32.xlu0 %v1065_v22  ;;  %5751 = vst [vmem:[#allocation44_spill] sm:$0xff] %v4531_v16  ;;  %v1066_v24 = vmul.f32 %v4531_v16, %v4531_v16  ;;  %v329_v22 = vld [vmem:[%s5613_s6 + $0x50] sm:$0xff] }
 0x57e   :  { %v1064_v15 = vmul.f32 %v4529_v32, %v4529_v32 }
 0x580   :  { %1089 = vadd.xlane.f32.xlu1 %v1064_v15  ;;  %v330_v15 = vld [vmem:[%s5613_s6 + $0x58] sm:$0xff] }
 0x581   :  { %1087 = vadd.xlane.f32.xlu0 %v1063_v49  ;;  %v331_v49 = vld [vmem:[%s5613_s6 + $0x60] sm:$0xff] }
 0x584   :  { %1093 = vadd.xlane.f32.xlu1 %v1066_v24  ;;  %v332_v24 = vld [vmem:[%s5613_s6 + $0x68] sm:$0xff] }
 0x586   :  { %v3432_v20 = vpop.f32.mrb[28].mxu0 }
 0x587   :  { %v1033_v35 = vadd.f32 %v3432_v20, %v4477_v13  ;;  %v1024_v0 = vpop.f32.mrb[29].mxu0 }
 0x588   :  { %v1025_v17 = vadd.f32 %v4477_v13, %v1024_v0  ;;  %v3433_v9 = vpop.f32.mrb[30].mxu0 }
 0x589   :  { %v4541_v21 = vmax.f32 %v1033_v35, 0.0  ;;  %v1027_v36 = vpop.f32.mrb[31].mxu0  ;;  %v1036_v1 = vadd.f32 %v3433_v9, %v4477_v13  ;;  %v4622_v35 = vsel %vm340_vm1, 1.0, %v4016_v3 }
 0x58a   :  { %v1028_v57 = vadd.f32 %v4477_v13, %v1027_v36  ;;  %v4545_v38 = vmax.f32 %v1025_v17, 0.0  ;;  %5754 = vst [vmem:[#allocation47_spill] sm:$0xff] %v4622_v35 }
 0x58b   :  { %v1069_v18 = vmul.f32 %v4541_v21, %v4541_v21  ;;  %v4551_v45 = vmax.f32 %v1036_v1, 0.0 }
 0x58c   :  { %5752 = vst [vmem:[#allocation45_spill] sm:$0xff] %v4545_v38  ;;  %v4549_v43 = vmax.f32 %v1028_v57, 0.0  ;;  %v1067_v61 = vmul.f32 %v4545_v38, %v4545_v38 }
 0x58d   :  { %1099 = vadd.xlane.f32.xlu0 %v1069_v18  ;;  %v1070_v13 = vmul.f32 %v4551_v45, %v4551_v45 }
 0x58e   :  { %v1068_v33 = vmul.f32 %v4549_v43, %v4549_v43 }
 0x590   :  { %1097 = vadd.xlane.f32.xlu1 %v1068_v33 }
 0x591   :  { %1095 = vadd.xlane.f32.xlu0 %v1067_v61  ;;  %v4640_v61 = vsel %vm343_vm2, 1.0, %v4016_v3 }
 0x592   :  { %5755 = vst [vmem:[#allocation48_spill] sm:$0xff] %v4640_v61 }
 0x594   :  { %1101 = vadd.xlane.f32.xlu1 %v1070_v13 }
 0x5a5   :  { %1498 = vrot.lane.b32.xlu1 %v320_v63, %s4018_s25 }
 0x5a7   :  { %1496 = vrot.lane.b32.xlu0 %v319_v5, %s4018_s25 }
 0x5a9   :  { %1500 = vrot.lane.b32.xlu1 %v321_v55, %s4018_s25 }
 0x5ab   :  { %1502 = vrot.lane.b32.xlu0 %v322_v11, %s4018_s25 }
 0x5ad   :  { %1506 = vrot.lane.b32.xlu1 %v324_v14, %s4018_s25 }
 0x5af   :  { %1504 = vrot.lane.b32.xlu0 %v323_v8, %s4018_s25 }
 0x5b1   :  { %1508 = vrot.lane.b32.xlu1 %v325_v10, %s4018_s25 }
 0x5b3   :  { %1510 = vrot.lane.b32.xlu0 %v326_v19, %s4018_s25 }
 0x5b5   :  { %1512 = vrot.lane.b32.xlu1 %v327_v12, %s4018_s25 }
 0x5b7   :  { %1514 = vrot.lane.b32.xlu0 %v328_v23, %s4018_s25 }
 0x5b9   :  { %1516 = vrot.lane.b32.xlu1 %v329_v22, %s4018_s25 }
 0x5bb   :  { %1518 = vrot.lane.b32.xlu0 %v330_v15, %s4018_s25 }
 0x5bd   :  { %1520 = vrot.lane.b32.xlu1 %v331_v49, %s4018_s25 }
 0x5bf   :  { %1522 = vrot.lane.b32.xlu0 %v332_v24, %s4018_s25 }
 0x5ea   :  { %v4619_v20 = vpop.xlane.xlu0 %1075 }
 0x5eb   :  { %v1105_v17 = vmul.f32 %v4622_v35, %v4619_v20 }
 0x5ed   :  { %v4624_v0 = vpop.xlane.xlu1 %1073  ;;  %v1121_v13 = vadd.f32 %v1105_v17, %v4481_v37 }
 0x5ee   :  { %v1104_v9 = vmul.f32 %v4622_v35, %v4624_v0  ;;  %v4630_v36 = vpop.xlane.xlu0 %1071 }
 0x5ef   :  { %v1103_v1 = vmul.f32 %v4622_v35, %v4630_v36  ;;  %v1137_v14 = vadd.f32 %v4640_v61, %v1121_v13 }
 0x5f0   :  { %v1120_v57 = vadd.f32 %v1104_v9, %v4489_v31 }
 0x5f1   :  { %v1119_v18 = vadd.f32 %v1103_v1, %v4485_v29  ;;  %v4637_v33 = vpop.xlane.xlu1 %1077 }
 0x5f2   :  { %v1106_v63 = vmul.f32 %v4622_v35, %v4637_v33  ;;  %v1136_v5 = vadd.f32 %v4640_v61, %v1120_v57 }
 0x5f3   :  { %v1135_v2 = vadd.f32 %v4640_v61, %v1119_v18 }
 0x5f4   :  { %v1122_v55 = vadd.f32 %v1106_v63, %v4491_v34 }
 0x5f5   :  { %v1151_v11 = vpack.c.bf16 %v1136_v5, %v1135_v2 }
 0x5f6   :  { %v1138_v8 = vadd.f32 %v4640_v61, %v1122_v55 }
 0x5f7   :  { %3434 = vmatprep.subr.bf16.mxu1 %v1151_v11 }
 0x5f8   :  { %3435 = vmatpush3.bf16.msra.mxu1 %v1151_v11  ;;  %v1152_v3 = vpack.c.bf16 %v1138_v8, %v1137_v14 }
 0x5fa   :  { %3436 = vmatprep.subr.bf16.mxu1 %v1152_v3  ;;  %v4650_v10 = vpop.xlane.xlu0 %1083 }
 0x5fb   :  { %v1109_v12 = vmul.f32 %v4622_v35, %v4650_v10 }
 0x5fc   :  { %3437 = vmatpush3.bf16.msra.mxu1 %v1152_v3 }
 0x5fd   :  { %v4652_v19 = vpop.xlane.xlu1 %1081  ;;  %v1125_v9 = vadd.f32 %v1109_v12, %v4501_v27 }
 0x5fe   :  { %v1108_v23 = vmul.f32 %v4622_v35, %v4652_v19  ;;  %v4658_v22 = vpop.xlane.xlu0 %1079 }
 0x5ff   :  { %v1107_v15 = vmul.f32 %v4622_v35, %v4658_v22  ;;  %v1141_v5 = vadd.f32 %v4640_v61, %v1125_v9 }
 0x600   :  { %v1124_v49 = vadd.f32 %v1108_v23, %v4509_v6 }
 0x601   :  { %v1123_v24 = vadd.f32 %v1107_v15, %v4505_v51  ;;  %v4664_v17 = vpop.xlane.xlu1 %1085 }
 0x602   :  { %v1110_v1 = vmul.f32 %v4622_v35, %v4664_v17  ;;  %v1140_v57 = vadd.f32 %v4640_v61, %v1124_v49 }
 0x603   :  { %v1139_v18 = vadd.f32 %v4640_v61, %v1123_v24 }
 0x604   :  { %v1126_v13 = vadd.f32 %v1110_v1, %v4511_v28 }
 0x605   :  { %v1153_v63 = vpack.c.bf16 %v1140_v57, %v1139_v18 }
 0x606   :  { %v1142_v2 = vadd.f32 %v4640_v61, %v1126_v13 }
 0x607   :  { %3438 = vmatprep.subr.bf16.mxu1 %v1153_v63 }
 0x608   :  { %3439 = vmatpush3.bf16.msra.mxu1 %v1153_v63  ;;  %v1154_v55 = vpack.c.bf16 %v1142_v2, %v1141_v5 }
 0x60a   :  { %3440 = vmatprep.subr.bf16.mxu1 %v1154_v55  ;;  %v4674_v11 = vpop.xlane.xlu0 %1091 }
 0x60b   :  { %v1113_v8 = vmul.f32 %v4622_v35, %v4674_v11 }
 0x60c   :  { %3441 = vmatpush3.bf16.msra.mxu1 %v1154_v55 }
 0x60d   :  { %v4676_v14 = vpop.xlane.xlu1 %1089  ;;  %v1129_v9 = vadd.f32 %v1113_v8, %v4521_v7 }
 0x60e   :  { %v1112_v3 = vmul.f32 %v4622_v35, %v4676_v14  ;;  %v4682_v12 = vpop.xlane.xlu0 %1087 }
 0x60f   :  { %v1111_v23 = vmul.f32 %v4622_v35, %v4682_v12  ;;  %v1145_v5 = vadd.f32 %v4640_v61, %v1129_v9 }
 0x610   :  { %v1128_v15 = vadd.f32 %v1112_v3, %v4529_v32 }
 0x611   :  { %v1127_v49 = vadd.f32 %v1111_v23, %v4525_v30  ;;  %v4688_v24 = vpop.xlane.xlu1 %1093 }
 0x612   :  { %v1114_v1 = vmul.f32 %v4622_v35, %v4688_v24  ;;  %v1144_v57 = vadd.f32 %v4640_v61, %v1128_v15 }
 0x613   :  { %v1143_v18 = vadd.f32 %v4640_v61, %v1127_v49 }
 0x614   :  { %v1130_v13 = vadd.f32 %v1114_v1, %v4531_v16 }
 0x615   :  { %v1155_v63 = vpack.c.bf16 %v1144_v57, %v1143_v18 }
 0x616   :  { %v1146_v2 = vadd.f32 %v4640_v61, %v1130_v13 }
 0x617   :  { %3442 = vmatprep.subr.bf16.mxu1 %v1155_v63 }
 0x618   :  { %3443 = vmatpush3.bf16.msra.mxu1 %v1155_v63  ;;  %v1156_v55 = vpack.c.bf16 %v1146_v2, %v1145_v5 }
 0x61a   :  { %3444 = vmatprep.subr.bf16.mxu1 %v1156_v55  ;;  %v4698_v3 = vpop.xlane.xlu0 %1099 }
 0x61b   :  { %v1117_v23 = vmul.f32 %v4622_v35, %v4698_v3 }
 0x61c   :  { %3445 = vmatpush3.bf16.msra.mxu1 %v1156_v55 }
 0x61d   :  { %v4700_v8 = vpop.xlane.xlu1 %1097  ;;  %v1133_v13 = vadd.f32 %v1117_v23, %v4541_v21  ;;  %v3629_v23 = vld [vmem:[#allocation7 + $0x10] sm:$0xff]  }
 0x61e   :  { %5756 = vst [vmem:[#allocation49_spill] sm:$0xff] %v4700_v8  ;;  %v1116_v15 = vmul.f32 %v4622_v35, %v4700_v8  ;;  %v4706_v49 = vpop.xlane.xlu0 %1095 }
 0x61f   :  { %v1115_v9 = vmul.f32 %v4622_v35, %v4706_v49  ;;  %v1149_v25 = vadd.f32 %v4640_v61, %v1133_v13  ;;  %v3634_v13 = vld [vmem:[#allocation7 + $0x38] sm:$0xff]  }
 0x620   :  { %v1132_v1 = vadd.f32 %v1116_v15, %v4549_v43 }
 0x621   :  { %v1131_v57 = vadd.f32 %v1115_v9, %v4545_v38  ;;  %v4712_v18 = vpop.xlane.xlu1 %1101 }
 0x622   :  { %v1118_v63 = vmul.f32 %v4622_v35, %v4712_v18  ;;  %v1148_v5 = vadd.f32 %v4640_v61, %v1132_v1  ;;  %v3630_v35 = vld [vmem:[#allocation7 + $0x18] sm:$0xff]   ;;  %v3631_v1 = vld [vmem:[#allocation7 + $0x20] sm:$0xff]  }
 0x623   :  { %v1147_v2 = vadd.f32 %v4640_v61, %v1131_v57  ;;  %v3632_v57 = vld [vmem:[#allocation7 + $0x28] sm:$0xff]  }
 0x624   :  { %v1134_v55 = vadd.f32 %v1118_v63, %v4551_v45  ;;  %v3633_v63 = vld [vmem:[#allocation7 + $0x30] sm:$0xff]  }
 0x625   :  { %v1157_v26 = vpack.c.bf16 %v1148_v5, %v1147_v2 }
 0x626   :  { %v1150_v15 = vadd.f32 %v4640_v61, %v1134_v55 }
 0x627   :  { %3446 = vmatprep.subr.bf16.mxu1 %v1157_v26 }
 0x628   :  { %3447 = vmatpush3.bf16.msra.mxu1 %v1157_v26  ;;  %v1158_v9 = vpack.c.bf16 %v1150_v15, %v1149_v25 }
 0x62a   :  { %3448 = vmatprep.subr.bf16.mxu1 %v1158_v9 }
 0x62c   :  { %3449 = vmatpush3.bf16.msra.mxu1 %v1158_v9 }
 0x62f   :  { %3451 = vmatmul.mubr.bf16.vlgmr.msra.gmra.mrb[16].mxu1 %v3628_v4 }
 0x630   :  { %3454 = vmatprep.mubr.bf16.mxu1 %v3629_v23 }
 0x637   :  { %3455 = vmatmul.mubr.bf16.gmra.mrb[20].mxu1 %v3630_v35 }
 0x638   :  { %3458 = vmatprep.mubr.bf16.mxu1 %v3631_v1 }
 0x63f   :  { %3459 = vmatmul.mubr.bf16.gmra.mrb[24].mxu1 %v3632_v57 }
 0x640   :  { %3462 = vmatprep.mubr.bf16.mxu1 %v3633_v63 }
 0x647   :  { %3463 = vmatmul.mubr.bf16.gmra.mrb[28].mxu1 %v3634_v13 }
 0x702   :  { %v4722_v5 = vpop.f32.mrb[16].mxu1 }
 0x703   :  { %1388 = vrot.lane.b32.xlu1 %v4722_v5, %s4019_s27  ;;  %v4726_v25 = vpop.f32.mrb[17].mxu1  ;;  %v1306_v60 = vmul.f32 %v4722_v5, %v4481_v37 }
 0x704   :  { %1384 = vrot.lane.b32.xlu0 %v4726_v25, %s4019_s27  ;;  %v4730_v4 = vpop.f32.mrb[18].mxu1  ;;  %v1352_v47 = vmul.f32 %v4726_v25, %v4630_v36 }
 0x705   :  { %v4732_v26 = vpop.f32.mrb[19].mxu1  ;;  %v1307_v58 = vmul.f32 %v4730_v4, %v4491_v34 }
 0x706   :  { %v1305_v62 = vmul.f32 %v4732_v26, %v4489_v31 }
 0x707   :  { %1386 = vrot.lane.b32.xlu1 %v4732_v26, %s4019_s27 }
 0x70a   :  { %v4736_v35 = vpop.f32.mrb[20].mxu1 }
 0x70b   :  { %v4738_v2 = vpop.f32.mrb[21].mxu1 }
 0x70c   :  { %v4740_v55 = vpop.f32.mrb[22].mxu1  ;;  %v1356_v36 = vmul.f32 %v4738_v2, %v4658_v22 }
 0x70d   :  { %v4742_v15 = vpop.f32.mrb[23].mxu1 }
 0x70e   :  { %v1309_v59 = vmul.f32 %v4742_v15, %v4509_v6 }
 0x712   :  { %v4744_v9 = vpop.f32.mrb[24].mxu1 }
 0x713   :  { %v4746_v23 = vpop.f32.mrb[25].mxu1 }
 0x714   :  { %v4748_v1 = vpop.f32.mrb[26].mxu1 }
 0x715   :  { %v4750_v57 = vpop.f32.mrb[27].mxu1 }
 0x71a   :  { %v4752_v63 = vpop.f32.mrb[28].mxu1 }
 0x71b   :  { %v4754_v13 = vpop.f32.mrb[29].mxu1 }
 0x71c   :  { %v4756_v61 = vpop.f32.mrb[30].mxu1 }
 0x71d   :  { %v4758_v39 = vpop.f32.mrb[31].mxu1  ;;  %v1319_v34 = vmul.f32 %v4756_v61, %v4551_v45 }
 0x723   :  { %1324 = vadd.xlane.f32.xlu0 %v1306_v60  ;;  %v1304_v60 = vmul.f32 %v4726_v25, %v4485_v29 }
 0x72b   :  { %1326 = vadd.xlane.f32.xlu1 %v1307_v58  ;;  %v1310_v58 = vmul.f32 %v4736_v35, %v4501_v27 }
 0x72f   :  { %1322 = vadd.xlane.f32.xlu1 %v1305_v62  ;;  %v1311_v62 = vmul.f32 %v4740_v55, %v4511_v28 }
 0x739   :  { %1390 = vrot.lane.b32.xlu0 %v4730_v4, %s4019_s27 }
 0x740   :  { %1396 = vrot.lane.b32.xlu1 %v4736_v35, %s4019_s27 }
 0x744   :  { %1392 = vrot.lane.b32.xlu1 %v4738_v2, %s4019_s27 }
 0x758   :  { %1320 = vadd.xlane.f32.xlu0 %v1304_v60  ;;  %v1308_v60 = vmul.f32 %v4738_v2, %v4505_v51  ;;  %v1360_v2 = vmul.f32 %v4746_v23, %v4682_v12 }
 0x75c   :  { %1332 = vadd.xlane.f32.xlu0 %v1310_v58  ;;  %v1312_v58 = vmul.f32 %v4746_v23, %v4525_v30 }
 0x768   :  { %1334 = vadd.xlane.f32.xlu1 %v1311_v62  ;;  %v4794_v62 = vpop.permute.xlu0 %1496 }
 0x76c   :  { %1330 = vadd.xlane.f32.xlu1 %v1309_v59  ;;  %v1315_v59 = vmul.f32 %v4748_v1, %v4531_v16  ;;  %v4796_v54 = vpop.permute.xlu0 %1502 }
 0x770   :  { %v4798_v52 = vpop.permute.xlu0 %1504 }
 0x772   :  { %1398 = vrot.lane.b32.xlu0 %v4740_v55, %s4019_s27 }
 0x77d   :  { %1404 = vrot.lane.b32.xlu1 %v4744_v9, %s4019_s27 }
 0x781   :  { %1400 = vrot.lane.b32.xlu1 %v4746_v23, %s4019_s27 }
 0x791   :  { %1328 = vadd.xlane.f32.xlu0 %v1308_v60  ;;  %v4802_v60 = vpop.permute.xlu1 %1498 }
 0x795   :  { %v4808_v56 = vpop.permute.xlu1 %1500 }
 0x796   :  { %5757 = vst [vmem:[#allocation50_spill] sm:$0xff] %v4808_v56 }
 0x799   :  { %v4814_v30 = vpop.permute.xlu1 %1506 }
 0x79d   :  { %v4818_v28 = vpop.permute.xlu1 %1508 }
 0x7a1   :  { %v4822_v27 = vpop.permute.xlu1 %1512 }
 0x7a5   :  { %1336 = vadd.xlane.f32.xlu1 %v1312_v58  ;;  %v4806_v58 = vpop.permute.xlu0 %1510  ;;  %v4824_v6 = vpop.permute.xlu1 %1516 }
 0x7a7   :  { %1394 = vrot.lane.b32.xlu0 %v4742_v15, %s4019_s27 }
 0x7a9   :  { %1342 = vadd.xlane.f32.xlu1 %v1315_v59  ;;  %v1314_v59 = vmul.f32 %v4744_v9, %v4521_v7  ;;  %v4812_v16 = vpop.permute.xlu0 %1514  ;;  %v4832_v7 = vpop.permute.xlu1 %1520 }
 0x7ad   :  { %v4816_v53 = vpop.permute.xlu0 %1518  ;;  %v1389_v31 = vpop.permute.xlu1 %1388 }
 0x7b1   :  { %v4820_v48 = vpop.permute.xlu0 %1522 }
 0x7b2   :  { %5758 = vst [vmem:[#allocation51_spill] sm:$0xff] %v4820_v48 }
 0x7b5   :  { %v1385_v46 = vpop.permute.xlu0 %1384 }
 0x7b6   :  { %v1432_v37 = vadd.f32 %v1385_v46, %v1352_v47  ;;  %v333_v46 = vld [vmem:[%s5613_s6 + $0x70] sm:$0xff]  ;;  %v1313_v47 = vmul.f32 %v4750_v57, %v4529_v32 }
 0x7b9   :  { %v1325_v50 = vpop.xlane.xlu0 %1324 }
 0x7ba   :  { %1412 = vrot.lane.b32.xlu1 %v4752_v63, %s4019_s27  ;;  %v1450_v44 = vmul.f32 2.0, %v1325_v50 }
 0x7bd   :  { %v4834_v51 = vpop.permute.xlu0 %1390 }
 0x7be   :  { %1408 = vrot.lane.b32.xlu1 %v4754_v13, %s4019_s27 }
 0x7c6   :  { %1340 = vadd.xlane.f32.xlu0 %v1314_v59  ;;  %v1316_v59 = vmul.f32 %v4754_v13, %v4545_v38  ;;  %v1354_v38 = vmul.f32 %v4722_v5, %v4619_v20  ;;  %v1358_v20 = vmul.f32 %v4736_v35, %v4650_v10 }
 0x7c8   :  { %v1434_v41 = vadd.f32 %v1389_v31, %v1354_v38 }
 0x7ca   :  { %v1466_v48 = vsub.f32 %v1434_v41, %v1450_v44  ;;  %v1318_v41 = vmul.f32 %v4752_v63, %v4541_v21  ;;  %v1387_v44 = vpop.permute.xlu1 %1386 }
 0x7cc   :  { %v1546_v8 = vmul.f32 %v4808_v56, %v1466_v48 }
 0x7ce   :  { %v1327_v48 = vpop.xlane.xlu1 %1326 }
 0x7d2   :  { %v1323_v50 = vpop.xlane.xlu1 %1322 }
 0x7d3   :  { %v1449_v12 = vmul.f32 2.0, %v1323_v50 }
 0x7dc   :  { %1406 = vrot.lane.b32.xlu0 %v4748_v1, %s4019_s27 }
 0x7e0   :  { %1402 = vrot.lane.b32.xlu0 %v4750_v57, %s4019_s27 }
 0x7e2   :  { %1344 = vadd.xlane.f32.xlu1 %v1316_v59 }
 0x7e5   :  { %v1321_v42 = vpop.xlane.xlu0 %1320 }
 0x7e6   :  { %v1448_v40 = vmul.f32 2.0, %v1321_v42  ;;  %1350 = vadd.xlane.f32.xlu1 %v1319_v34 }
 0x7e8   :  { %v1464_v29 = vsub.f32 %v1432_v37, %v1448_v40  ;;  %v1397_v37 = vpop.permute.xlu1 %1396 }
 0x7e9   :  { %v1438_v25 = vadd.f32 %v1397_v37, %v1358_v20 }
 0x7ea   :  { %v1544_v59 = vmul.f32 %v4794_v62, %v1464_v29  ;;  %v1333_v29 = vpop.xlane.xlu0 %1332 }
 0x7ec   :  { %3715 = vtanh.f32 %v1544_v59  ;;  %v1393_v31 = vpop.permute.xlu1 %1392 }
 0x7ed   :  { %3717 = vtanh.f32 %v1546_v8  ;;  %v1454_v8 = vmul.f32 2.0, %v1333_v29  ;;  %v1436_v59 = vadd.f32 %v1393_v31, %v1356_v36 }
 0x7ee   :  { %v1399_v34 = vpop.permute.xlu0 %1398 }
 0x7f5   :  { %v1335_v38 = vpop.xlane.xlu1 %1334 }
 0x7f6   :  { %v3716_v42 = vpop.eup %3715 }
 0x7f7   :  { %1524 = vrot.lane.b32.xlu1 %v333_v46, %s4018_s25  ;;  %v3718_v40 = vpop.eup %3717 }
 0x7fb   :  { %1594 = vperm.xlu1 %3610, %v3716_v42   ;;  %v1470_v42 = vsub.f32 %v1438_v25, %v1454_v8  ;;  %v3635_v8 = vld [vmem:[#allocation5 + $0x40] sm:$0xff]   ;;  %v1353_v25 = vmul.f32 %v4732_v26, %v4624_v0 }
 0x7fc   :  { %3466 = vmatprep.subr.bf16.mxu0 %v3635_v8 }
 0x7fd   :  { %v1550_v56 = vmul.f32 %v4818_v28, %v1470_v42  ;;  %3467 = vmatpush3.bf16.msra.mxu0 %v3635_v8  ;;  %v1433_v23 = vadd.f32 %v1387_v44, %v1353_v25  ;;  %v1451_v42 = vmul.f32 2.0, %v1327_v48  ;;  %v1455_v48 = vmul.f32 2.0, %v1335_v38  ;;  %v3640_v8 = vld [vmem:[#allocation5 + $0x68] sm:$0xff]  }
 0x7ff   :  { %1338 = vadd.xlane.f32.xlu0 %v1313_v47  ;;  %1604 = vperm.xlu1 %3610, %v3718_v40   ;;  %v1331_v40 = vpop.xlane.xlu1 %1330 }
 0x800   :  { %v1453_v44 = vmul.f32 2.0, %v1331_v40  ;;  %v334_v40 = vld [vmem:[%s5613_s6 + $0x78] sm:$0xff] }
 0x803   :  { %1348 = vadd.xlane.f32.xlu0 %v1318_v41  ;;  %v1405_v10 = vpop.permute.xlu1 %1404 }
 0x807   :  { %v1401_v35 = vpop.permute.xlu1 %1400 }
 0x808   :  { %v1440_v31 = vadd.f32 %v1401_v35, %v1360_v2  ;;  %v1357_v35 = vmul.f32 %v4742_v15, %v4652_v19  ;;  %v3636_v2 = vld [vmem:[#allocation5 + $0x48] sm:$0xff]  }
 0x809   :  { %3468 = vmatprep.subr.bf16.mxu0 %v3636_v2 }
 0x80a   :  { %3469 = vmatpush3.bf16.msra.mxu0 %v3636_v2 }
 0x819   :  { %1414 = vrot.lane.b32.xlu0 %v4756_v61, %s4019_s27 }
 0x81d   :  { %1410 = vrot.lane.b32.xlu0 %v4758_v39, %s4019_s27 }
 0x81e   :  { %v1329_v5 = vpop.xlane.xlu0 %1328 }
 0x81f   :  { %v1452_v46 = vmul.f32 2.0, %v1329_v5 }
 0x821   :  { %v1468_v47 = vsub.f32 %v1436_v59, %v1452_v46  ;;  %v1355_v46 = vmul.f32 %v4730_v4, %v4637_v33  ;;  %v1359_v33 = vmul.f32 %v4740_v55, %v4664_v17  ;;  %v1362_v17 = vmul.f32 %v4744_v9, %v4674_v11  ;;  %v3641_v11 = vld [vmem:[#allocation5 + $0x70] sm:$0xff]  }
 0x823   :  { %v1548_v41 = vmul.f32 %v4798_v52, %v1468_v47  ;;  %v1465_v47 = vsub.f32 %v1433_v23, %v1449_v12  ;;  %v1439_v15 = vadd.f32 %v1399_v34, %v1359_v33  ;;  %v1442_v38 = vadd.f32 %v1405_v10, %v1362_v17  ;;  %v3642_v10 = vld [vmem:[#allocation5 + $0x78] sm:$0xff]  }
 0x825   :  { %3719 = vtanh.f32 %v1548_v41  ;;  %v1395_v41 = vpop.permute.xlu0 %1394  ;;  %v1545_v0 = vmul.f32 %v4802_v60, %v1465_v47 }
 0x826   :  { %3721 = vtanh.f32 %v1550_v56  ;;  %v1317_v56 = vmul.f32 %v4758_v39, %v4549_v43  ;;  %v1437_v26 = vadd.f32 %v1395_v41, %v1357_v35  ;;  %v1364_v41 = vmul.f32 %v4754_v13, %v4706_v49 }
 0x828   :  { %v1469_v19 = vsub.f32 %v1437_v26, %v1453_v44  ;;  %v1363_v44 = vmul.f32 %v4748_v1, %v4688_v24 }
 0x82a   :  { %v1549_v50 = vmul.f32 %v4814_v30, %v1469_v19 }
 0x82f   :  { %v3720_v22 = vpop.eup %3719 }
 0x830   :  { %1614 = vperm.xlu1 %3610, %v3720_v22   ;;  %v3722_v37 = vpop.eup %3721  ;;  %v1435_v22 = vadd.f32 %v4834_v51, %v1355_v46  ;;  %v1471_v51 = vsub.f32 %v1439_v15, %v1455_v48  ;;  %v1361_v48 = vmul.f32 %v4750_v57, %v4676_v14 }
 0x832   :  { %v1337_v29 = vpop.xlane.xlu1 %1336  ;;  %v1551_v55 = vmul.f32 %v4806_v58, %v1471_v51 }
 0x833   :  { %v1456_v20 = vmul.f32 2.0, %v1337_v29  ;;  %v3637_v29 = vld [vmem:[#allocation5 + $0x50] sm:$0xff]  }
 0x834   :  { %1624 = vperm.xlu1 %3610, %v3722_v37   ;;  %v1467_v37 = vsub.f32 %v1435_v22, %v1451_v42  ;;  %3470 = vmatprep.subr.bf16.mxu0 %v3637_v29 }
 0x835   :  { %v1472_v36 = vsub.f32 %v1440_v31, %v1456_v20  ;;  %3471 = vmatpush3.bf16.msra.mxu0 %v3637_v29  ;;  %v3638_v31 = vld [vmem:[#allocation5 + $0x58] sm:$0xff]   ;;  %v3639_v20 = vld [vmem:[#allocation5 + $0x60] sm:$0xff]  }
 0x836   :  { %v1547_v4 = vmul.f32 %v4796_v54, %v1467_v37  ;;  %3472 = vmatprep.subr.bf16.mxu0 %v3638_v31  ;;  %v1343_v23 = vpop.xlane.xlu1 %1342 }
 0x837   :  { %v1552_v5 = vmul.f32 %v4822_v27, %v1472_v36  ;;  %v1459_v19 = vmul.f32 2.0, %v1343_v23 }
 0x839   :  { %3723 = vtanh.f32 %v1552_v5  ;;  %3473 = vmatpush3.bf16.msra.mxu0 %v3638_v31 }
 0x83a   :  { %3725 = vtanh.f32 %v1545_v0  ;;  %3474 = vmatprep.subr.bf16.mxu0 %v3639_v20  ;;  %v1413_v42 = vpop.permute.xlu1 %1412 }
 0x83b   :  { %3727 = vtanh.f32 %v1547_v4 }
 0x83c   :  { %1346 = vadd.xlane.f32.xlu0 %v1317_v56  ;;  %3729 = vtanh.f32 %v1549_v50 }
 0x83d   :  { %3731 = vtanh.f32 %v1551_v55  ;;  %3475 = vmatpush3.bf16.msra.mxu0 %v3639_v20 }
 0x83e   :  { %3476 = vmatprep.subr.bf16.mxu0 %v3640_v8  ;;  %v1409_v47 = vpop.permute.xlu1 %1408 }
 0x83f   :  { %v1444_v22 = vadd.f32 %v1409_v47, %v1364_v41  ;;  %v5761_v41 = vld [vmem:[#allocation51_spill] sm:$0xff] }
 0x841   :  { %3477 = vmatpush3.bf16.msra.mxu0 %v3640_v8 }
 0x842   :  { %3478 = vmatprep.subr.bf16.mxu0 %v3641_v11 }
 0x843   :  { %v3724_v59 = vpop.eup %3723 }
 0x844   :  { %1634 = vperm.xlu1 %3610, %v3724_v59   ;;  %v3726_v5 = vpop.eup %3725 }
 0x845   :  { %v3728_v9 = vpop.eup %3727  ;;  %3479 = vmatpush3.bf16.msra.mxu0 %v3641_v11 }
 0x846   :  { %v3730_v12 = vpop.eup %3729  ;;  %3480 = vmatprep.subr.bf16.mxu0 %v3642_v10 }
 0x847   :  { %v3732_v59 = vpop.eup %3731 }
 0x849   :  { %3481 = vmatpush3.bf16.msra.mxu0 %v3642_v10 }
 0x852   :  { %1526 = vrot.lane.b32.xlu0 %v334_v40, %s4018_s25  ;;  %v1366_v40 = vmul.f32 %v4752_v63, %v4698_v3 }
 0x853   :  { %v1341_v34 = vpop.xlane.xlu0 %1340 }
 0x854   :  { %v1458_v36 = vmul.f32 2.0, %v1341_v34  ;;  %v1446_v17 = vadd.f32 %v1413_v42, %v1366_v40  ;;  %v5771_v40 = vld [vmem:[#allocation37_spill] sm:$0xff] }
 0x856   :  { %v1474_v56 = vsub.f32 %v1442_v38, %v1458_v36  ;;  %1599 = vperm.xlu0 %3609, %v3726_v5   ;;  %v1367_v5 = vmul.f32 %v4756_v61, %v4712_v18  ;;  %v5763_v61 = vld [vmem:[#allocation35_spill] sm:$0xff] }
 0x857   :  { %v1407_v26 = vpop.permute.xlu0 %1406 }
 0x858   :  { %v1554_v25 = vmul.f32 %v4824_v6, %v1474_v56  ;;  %v1443_v4 = vadd.f32 %v1407_v26, %v1363_v44  ;;  %v5759_v56 = vld [vmem:[#allocation49_spill] sm:$0xff] }
 0x85a   :  { %3733 = vtanh.f32 %v1554_v25  ;;  %1609 = vperm.xlu0 %3609, %v3728_v9   ;;  %v1475_v51 = vsub.f32 %v1443_v4, %v1459_v19  ;;  %v1365_v25 = vmul.f32 %v4758_v39, %v5759_v56  ;;  %v5767_v4 = vld [vmem:[#allocation34_spill] sm:$0xff] }
 0x85b   :  { %v1403_v33 = vpop.permute.xlu0 %1402 }
 0x85c   :  { %v1441_v13 = vadd.f32 %v1403_v33, %v1361_v48  ;;  %v1555_v1 = vmul.f32 %v4816_v53, %v1475_v51  ;;  %v5766_v33 = vld [vmem:[#allocation16_spill] sm:$0xff] }
 0x85d   :  { %v1578_v48 = vsub.f32 %v5767_v4, %v5766_v33  ;;  %v5787_v4 = vld [vmem:[#allocation43_spill] sm:$0xff] }
 0x85e   :  { %1619 = vperm.xlu0 %3609, %v3730_v12  }
 0x862   :  { %1629 = vperm.xlu0 %3609, %v3732_v59  }
 0x864   :  { %v3734_v46 = vpop.eup %3733 }
 0x865   :  { %1644 = vperm.xlu1 %3610, %v3734_v46  }
 0x86f   :  { %v1345_v35 = vpop.xlane.xlu1 %1344 }
 0x870   :  { %v1460_v2 = vmul.f32 2.0, %v1345_v35 }
 0x872   :  { %v1476_v29 = vsub.f32 %v1444_v22, %v1460_v2  ;;  %v5762_v2 = vld [vmem:[#allocation17_spill] sm:$0xff] }
 0x873   :  { %v1351_v50 = vpop.xlane.xlu1 %1350  ;;  %v1576_v18 = vsub.f32 %v5763_v61, %v5762_v2 }
 0x874   :  { %v1556_v37 = vmul.f32 %v4832_v7, %v1476_v29  ;;  %v1463_v23 = vmul.f32 2.0, %v1351_v50  ;;  %v5770_v50 = vld [vmem:[#allocation18_spill] sm:$0xff] }
 0x876   :  { %3735 = vtanh.f32 %v1556_v37  ;;  %v5764_v37 = vld [vmem:[#allocation19_spill] sm:$0xff] }
 0x877   :  { %v4898_v14 = vpop.permute.xlu1 %1524 }
 0x87b   :  { %v1595_v46 = vpop.permute.xlu1 %1594 }
 0x87c   :  { %v1672_v39 = vmul.f32 %v1595_v46, %v1576_v18 }
 0x87f   :  { %v1605_v29 = vpop.permute.xlu1 %1604 }
 0x880   :  { %v3736_v0 = vpop.eup %3735 }
 0x881   :  { %1654 = vperm.xlu1 %3610, %v3736_v0   ;;  %v5765_v0 = vld [vmem:[#allocation36_spill] sm:$0xff] }
 0x882   :  { %v1577_v26 = vsub.f32 %v5765_v0, %v5764_v37 }
 0x88c   :  { %v1339_v49 = vpop.xlane.xlu0 %1338 }
 0x88d   :  { %v1457_v15 = vmul.f32 2.0, %v1339_v49 }
 0x88f   :  { %v1473_v31 = vsub.f32 %v1441_v13, %v1457_v15  ;;  %v4916_v13 = vadd.f32 %v1672_v39, %v5762_v2  ;;  %v1674_v15 = vmul.f32 %v1605_v29, %v1578_v48  ;;  %v5783_v2 = vld [vmem:[#allocation41_spill] sm:$0xff] }
 0x890   :  { %v1349_v20 = vpop.xlane.xlu0 %1348 }
 0x891   :  { %v1553_v55 = vmul.f32 %v4812_v16, %v1473_v31  ;;  %v1462_v24 = vmul.f32 2.0, %v1349_v20  ;;  %5768 = vst [vmem:[#allocation17_spill] sm:$0xff] %v4916_v13  ;;  %v1579_v31 = vsub.f32 %v5771_v40, %v5770_v50 }
 0x893   :  { %3737 = vtanh.f32 %v1553_v55  ;;  %v1478_v34 = vsub.f32 %v1446_v17, %v1462_v24  ;;  %v5772_v55 = vld [vmem:[#allocation21_spill] sm:$0xff]  ;;  %v5773_v24 = vld [vmem:[#allocation39_spill] sm:$0xff] }
 0x894   :  { %3739 = vtanh.f32 %v1555_v1  ;;  %v1415_v63 = vpop.permute.xlu0 %1414  ;;  %v1580_v1 = vsub.f32 %v5773_v24, %v5772_v55 }
 0x895   :  { %v1558_v57 = vmul.f32 %v4898_v14, %v1478_v34  ;;  %v1447_v9 = vadd.f32 %v1415_v63, %v1367_v5  ;;  %v5776_v63 = vld [vmem:[#allocation23_spill] sm:$0xff] }
 0x897   :  { %3741 = vtanh.f32 %v1558_v57  ;;  %v1479_v47 = vsub.f32 %v1447_v9, %v1463_v23  ;;  %v5778_v9 = vld [vmem:[#allocation20_spill] sm:$0xff] }
 0x898   :  { %v1411_v8 = vpop.permute.xlu0 %1410 }
 0x899   :  { %v1445_v12 = vadd.f32 %v1411_v8, %v1365_v25  ;;  %v5777_v8 = vld [vmem:[#allocation40_spill] sm:$0xff] }
 0x89a   :  { %v1581_v5 = vsub.f32 %v5777_v8, %v5776_v63 }
 0x89d   :  { %v3738_v38 = vpop.eup %3737 }
 0x89e   :  { %1639 = vperm.xlu0 %3609, %v3738_v38   ;;  %v3740_v36 = vpop.eup %3739  ;;  %v4928_v38 = vadd.f32 %v5766_v33, %v1674_v15  ;;  %v5786_v33 = vld [vmem:[#allocation25_spill] sm:$0xff] }
 0x89f   :  { %v1584_v48 = vsub.f32 %v5787_v4, %v5786_v33  ;;  %v5803_v4 = vld [vmem:[#allocation30_spill] sm:$0xff] }
 0x8a0   :  { %5774 = vst [vmem:[#allocation19_spill] sm:$0xff] %v4928_v38 }
 0x8a1   :  { %v3742_v3 = vpop.eup %3741 }
 0x8a2   :  { %1649 = vperm.xlu0 %3609, %v3740_v36   ;;  %1664 = vperm.xlu1 %3610, %v3742_v3  }
 0x8af   :  { %v1615_v49 = vpop.permute.xlu1 %1614 }
 0x8b0   :  { %v1676_v36 = vmul.f32 %v1615_v49, %v1580_v1  ;;  %v5788_v49 = vld [vmem:[#allocation27_spill] sm:$0xff] }
 0x8b1   :  { %v1585_v15 = vsub.f32 %v4529_v32, %v5788_v49 }
 0x8b2   :  { %v4940_v46 = vadd.f32 %v1676_v36, %v5772_v55  ;;  %v5794_v36 = vld [vmem:[#allocation44_spill] sm:$0xff] }
 0x8b3   :  { %v1625_v56 = vpop.permute.xlu1 %1624 }
 0x8b4   :  { %5780 = vst [vmem:[#allocation16_spill] sm:$0xff] %v4940_v46 }
 0x8c9   :  { %v1347_v11 = vpop.xlane.xlu0 %1346 }
 0x8ca   :  { %v1461_v10 = vmul.f32 2.0, %v1347_v11 }
 0x8cc   :  { %v1477_v59 = vsub.f32 %v1445_v12, %v1461_v10  ;;  %v5779_v12 = vld [vmem:[#allocation38_spill] sm:$0xff] }
 0x8cd   :  { %v4905_v42 = vpop.permute.xlu0 %1526  ;;  %v1582_v10 = vsub.f32 %v5779_v12, %v5778_v9  ;;  %v5797_v12 = vld [vmem:[#allocation29_spill] sm:$0xff] }
 0x8ce   :  { %5760 = vst [vmem:[#allocation49_spill] sm:$0xff] %v4905_v42  ;;  %v1557_v35 = vmul.f32 %v5761_v41, %v1477_v59  ;;  %v1559_v22 = vmul.f32 %v4905_v42, %v1479_v47 }
 0x8cf   :  { %v1678_v47 = vmul.f32 %v1625_v56, %v1582_v10  ;;  %v5798_v10 = vld [vmem:[#allocation45_spill] sm:$0xff] }
 0x8d0   :  { %3743 = vtanh.f32 %v1557_v35 }
 0x8d1   :  { %3745 = vtanh.f32 %v1559_v22  ;;  %v5782_v22 = vld [vmem:[#allocation22_spill] sm:$0xff] }
 0x8d2   :  { %v1583_v61 = vsub.f32 %v5783_v2, %v5782_v22 }
 0x8d5   :  { %v1600_v44 = vpop.permute.xlu0 %1599 }
 0x8d6   :  { %v1673_v19 = vmul.f32 %v1600_v44, %v1577_v26  ;;  %v1635_v44 = vpop.permute.xlu1 %1634 }
 0x8d8   :  { %v4919_v51 = vadd.f32 %v1673_v19, %v5764_v37  ;;  %v4950_v37 = vadd.f32 %v5778_v9, %v1678_v47  ;;  %v1680_v19 = vmul.f32 %v1635_v44, %v1584_v48  ;;  %v5799_v47 = vld [vmem:[#allocation31_spill] sm:$0xff]  ;;  %v1591_v48 = vsub.f32 %v4551_v45, %v5803_v4 }
 0x8d9   :  { %v1610_v20 = vpop.permute.xlu0 %1609 }
 0x8da   :  { %5769 = vst [vmem:[#allocation35_spill] sm:$0xff] %v4919_v51  ;;  %v3744_v17 = vpop.eup %3743  ;;  %v1675_v34 = vmul.f32 %v1610_v20, %v1579_v31  ;;  %v1704_v57 = vpack.c.bf16 %v4919_v51, %v4916_v13  ;;  %5784 = vst [vmem:[#allocation18_spill] sm:$0xff] %v4950_v37  ;;  %v5789_v31 = vld [vmem:[#allocation24_spill] sm:$0xff]  ;;  %v5790_v20 = vld [vmem:[#allocation42_spill] sm:$0xff]  ;;  %v4964_v24 = vadd.f32 %v1680_v19, %v5786_v33 }
 0x8db   :  { %1659 = vperm.xlu0 %3609, %v3744_v17   ;;  %v3746_v11 = vpop.eup %3745  ;;  %v1586_v17 = vsub.f32 %v5790_v20, %v5789_v31 }
 0x8dc   :  { %v4931_v3 = vadd.f32 %v5770_v50, %v1675_v34  ;;  %3482 = vmatprep.mubr.bf16.mxu0 %v1704_v57  ;;  %5791 = vst [vmem:[#allocation21_spill] sm:$0xff] %v4964_v24  ;;  %v5793_v57 = vld [vmem:[#allocation26_spill] sm:$0xff] }
 0x8dd   :  { %v1620_v25 = vpop.permute.xlu0 %1619 }
 0x8de   :  { %5775 = vst [vmem:[#allocation36_spill] sm:$0xff] %v4931_v3  ;;  %v1705_v23 = vpack.c.bf16 %v4931_v3, %v4928_v38  ;;  %v1677_v59 = vmul.f32 %v1620_v25, %v1581_v5  ;;  %v3861_v38 = vld [vmem:[#allocation7 + $0x18] sm:$0xff]  }
 0x8df   :  { %1669 = vperm.xlu0 %3609, %v3746_v11  }
 0x8e0   :  { %v4943_v35 = vadd.f32 %v1677_v59, %v5776_v63  ;;  %3483 = vmatmul.mubr.bf16.vlgmr.msra.gmra.mrb[32].mxu0 %v1705_v23  ;;  %v1587_v63 = vsub.f32 %v5794_v36, %v5793_v57  ;;  %v1588_v23 = vsub.f32 %v5798_v10, %v5797_v12 }
 0x8e1   :  { %v1630_v18 = vpop.permute.xlu0 %1629 }
 0x8e2   :  { %5781 = vst [vmem:[#allocation34_spill] sm:$0xff] %v4943_v35  ;;  %v1679_v29 = vmul.f32 %v1630_v18, %v1583_v61  ;;  %v1706_v39 = vpack.c.bf16 %v4943_v35, %v4940_v46  ;;  %v5800_v18 = vld [vmem:[#allocation28_spill] sm:$0xff] }
 0x8e4   :  { %v4953_v0 = vadd.f32 %v5782_v22, %v1679_v29  ;;  %3486 = vmatprep.mubr.bf16.mxu0 %v1706_v39  ;;  %v1645_v50 = vpop.permute.xlu1 %1644  ;;  %v1589_v22 = vsub.f32 %v4549_v43, %v5799_v47  ;;  %v1590_v29 = vsub.f32 %v4541_v21, %v5800_v18 }
 0x8e5   :  { %v1682_v1 = vmul.f32 %v1645_v50, %v1586_v17  ;;  %v5807_v17 = vld [vmem:[#allocation32_spill] sm:$0xff] }
 0x8e6   :  { %5785 = vst [vmem:[#allocation37_spill] sm:$0xff] %v4953_v0  ;;  %v1707_v26 = vpack.c.bf16 %v4953_v0, %v4950_v37 }
 0x8e7   :  { %v4974_v56 = vadd.f32 %v5789_v31, %v1682_v1 }
 0x8e8   :  { %3487 = vmatmul.mubr.bf16.gmra.mrb[36].mxu0 %v1707_v26 }
 0x8e9   :  { %5795 = vst [vmem:[#allocation23_spill] sm:$0xff] %v4974_v56 }
 0x900   :  { %v1655_v9 = vpop.permute.xlu1 %1654 }
 0x901   :  { %v1684_v59 = vmul.f32 %v1655_v9, %v1588_v23 }
 0x903   :  { %v4988_v26 = vadd.f32 %v1684_v59, %v5797_v12 }
 0x905   :  { %5801 = vst [vmem:[#allocation20_spill] sm:$0xff] %v4988_v26 }
 0x91d   :  { %v1640_v40 = vpop.permute.xlu0 %1639 }
 0x91e   :  { %v1681_v55 = vmul.f32 %v1640_v40, %v1585_v15  ;;  %v5806_v40 = vld [vmem:[#allocation46_spill] sm:$0xff] }
 0x920   :  { %v4967_v34 = vadd.f32 %v1681_v55, %v5788_v49 }
 0x921   :  { %v1650_v8 = vpop.permute.xlu0 %1649  ;;  %v1665_v2 = vpop.permute.xlu1 %1664 }
 0x922   :  { %5792 = vst [vmem:[#allocation39_spill] sm:$0xff] %v4967_v34  ;;  %v1683_v5 = vmul.f32 %v1650_v8, %v1587_v63  ;;  %v1708_v32 = vpack.c.bf16 %v4967_v34, %v4964_v24  ;;  %v1686_v44 = vmul.f32 %v1665_v2, %v1590_v29 }
 0x924   :  { %v4977_v25 = vadd.f32 %v5793_v57, %v1683_v5  ;;  %3490 = vmatprep.mubr.bf16.mxu0 %v1708_v32  ;;  %v4998_v15 = vadd.f32 %v5800_v18, %v1686_v44 }
 0x926   :  { %5796 = vst [vmem:[#allocation40_spill] sm:$0xff] %v4977_v25  ;;  %v1709_v11 = vpack.c.bf16 %v4977_v25, %v4974_v56  ;;  %5804 = vst [vmem:[#allocation22_spill] sm:$0xff] %v4998_v15 }
 0x928   :  { %3491 = vmatmul.mubr.bf16.gmra.mrb[40].mxu0 %v1709_v11 }
 0x95a   :  { %v1660_v61 = vpop.permute.xlu0 %1659 }
 0x95b   :  { %v1685_v39 = vmul.f32 %v1660_v61, %v1589_v22 }
 0x95d   :  { %v4991_v33 = vadd.f32 %v1685_v39, %v5799_v47 }
 0x95e   :  { %v1670_v19 = vpop.permute.xlu0 %1669 }
 0x95f   :  { %5802 = vst [vmem:[#allocation38_spill] sm:$0xff] %v4991_v33  ;;  %v1687_v49 = vmul.f32 %v1670_v19, %v1591_v48  ;;  %v1710_v43 = vpack.c.bf16 %v4991_v33, %v4988_v26 }
 0x961   :  { %v5001_v21 = vadd.f32 %v5803_v4, %v1687_v49  ;;  %3494 = vmatprep.mubr.bf16.mxu0 %v1710_v43 }
 0x963   :  { %5805 = vst [vmem:[#allocation41_spill] sm:$0xff] %v5001_v21  ;;  %v1711_v50 = vpack.c.bf16 %v5001_v21, %v4998_v15 }
 0x965   :  { %3495 = vmatmul.mubr.bf16.gmra.mrb[44].mxu0 %v1711_v50 }
 0x966   :  { %3546 = vmatprep.mubr.bf16.mxu0 %v5806_v40 }
 0x9b3   :  { %v5006_v31 = vpop.f32.mrb[32].mxu0 }
 0x9b4   :  { %1910 = vrot.lane.b32.xlu1 %v5006_v31, %s4017_s0  ;;  %v5010_v45 = vpop.f32.mrb[33].mxu0  ;;  %v1876_v55 = vmul.f32 %v5006_v31, %v5807_v17 }
 0x9b5   :  { %v5012_v20 = vpop.f32.mrb[34].mxu0  ;;  %v1874_v36 = vmul.f32 %v5807_v17, %v5010_v45 }
 0x9b6   :  { %v1877_v1 = vmul.f32 %v5012_v20, %v5807_v17  ;;  %v5018_v57 = vpop.f32.mrb[35].mxu0 }
 0x9b7   :  { %v1875_v63 = vmul.f32 %v5807_v17, %v5018_v57  ;;  %1908 = vrot.lane.b32.xlu0 %v5018_v57, %s4017_s0 }
 0x9b8   :  { %1906 = vrot.lane.b32.xlu1 %v5010_v45, %s4017_s0  ;;  %v2287_v8 = vpack.c.bf16 %v1877_v1, %v1876_v55 }
 0x9b9   :  { %v2286_v5 = vpack.c.bf16 %v1875_v63, %v1874_v36 }
 0x9bb   :  { %1912 = vrot.lane.b32.xlu0 %v5012_v20, %s4017_s0  ;;  %v5030_v32 = vpop.f32.mrb[36].mxu0  ;;  %3498 = vmatprep.subr.bf16.mxu1 %v2286_v5 }
 0x9bc   :  { %3499 = vmatpush3.bf16.msra.mxu1 %v2286_v5  ;;  %1918 = vrot.lane.b32.xlu1 %v5030_v32, %s4017_s0  ;;  %v1827_v11 = vpop.f32.mrb[37].mxu0  ;;  %v1880_v12 = vmul.f32 %v5030_v32, %v5807_v17 }
 0x9bd   :  { %v3489_v9 = vpop.f32.mrb[38].mxu0  ;;  %3500 = vmatprep.subr.bf16.mxu1 %v2287_v8  ;;  %v1878_v59 = vmul.f32 %v5807_v17, %v1827_v11 }
 0x9be   :  { %v1881_v10 = vmul.f32 %v3489_v9, %v5807_v17  ;;  %v1830_v23 = vpop.f32.mrb[39].mxu0 }
 0x9bf   :  { %v1879_v47 = vmul.f32 %v5807_v17, %v1830_v23  ;;  %1916 = vrot.lane.b32.xlu0 %v1830_v23, %s4017_s0 }
 0x9c0   :  { %3501 = vmatpush3.bf16.msra.mxu1 %v2287_v8  ;;  %1914 = vrot.lane.b32.xlu1 %v1827_v11, %s4017_s0  ;;  %v2289_v22 = vpack.c.bf16 %v1881_v10, %v1880_v12 }
 0x9c1   :  { %v2288_v2 = vpack.c.bf16 %v1879_v47, %v1878_v59 }
 0x9c3   :  { %1920 = vrot.lane.b32.xlu0 %v3489_v9, %s4017_s0  ;;  %3502 = vmatprep.subr.bf16.mxu1 %v2288_v2 }
 0x9c4   :  { %3503 = vmatpush3.bf16.msra.mxu1 %v2288_v2 }
 0x9c5   :  { %3504 = vmatprep.subr.bf16.mxu1 %v2289_v22 }
 0x9c8   :  { %3505 = vmatpush3.bf16.msra.mxu1 %v2289_v22 }
 0x9fb   :  { %v3492_v61 = vpop.f32.mrb[40].mxu0 }
 0x9fc   :  { %1926 = vrot.lane.b32.xlu1 %v3492_v61, %s4017_s0  ;;  %v1843_v18 = vpop.f32.mrb[41].mxu0  ;;  %v1884_v39 = vmul.f32 %v3492_v61, %v5807_v17 }
 0x9fd   :  { %v3493_v29 = vpop.f32.mrb[42].mxu0  ;;  %v1882_v48 = vmul.f32 %v5807_v17, %v1843_v18 }
 0x9fe   :  { %v1885_v44 = vmul.f32 %v3493_v29, %v5807_v17  ;;  %v1846_v4 = vpop.f32.mrb[43].mxu0 }
 0x9ff   :  { %v1883_v19 = vmul.f32 %v5807_v17, %v1846_v4  ;;  %1924 = vrot.lane.b32.xlu0 %v1846_v4, %s4017_s0 }
 0xa00   :  { %1922 = vrot.lane.b32.xlu1 %v1843_v18, %s4017_s0  ;;  %v2291_v49 = vpack.c.bf16 %v1885_v44, %v1884_v39 }
 0xa01   :  { %v2290_v43 = vpack.c.bf16 %v1883_v19, %v1882_v48 }
 0xa03   :  { %1928 = vrot.lane.b32.xlu0 %v3493_v29, %s4017_s0  ;;  %3506 = vmatprep.subr.bf16.mxu1 %v2290_v43 }
 0xa04   :  { %3507 = vmatpush3.bf16.msra.mxu1 %v2290_v43 }
 0xa05   :  { %3508 = vmatprep.subr.bf16.mxu1 %v2291_v49 }
 0xa08   :  { %3509 = vmatpush3.bf16.msra.mxu1 %v2291_v49 }
 0xa38   :  { %v3496_v50 = vpop.f32.mrb[44].mxu0 }
 0xa39   :  { %1934 = vrot.lane.b32.xlu1 %v3496_v50, %s4017_s0  ;;  %v1859_v40 = vpop.f32.mrb[45].mxu0  ;;  %v1888_v1 = vmul.f32 %v3496_v50, %v5807_v17 }
 0xa3a   :  { %v3497_v55 = vpop.f32.mrb[46].mxu0  ;;  %v1886_v8 = vmul.f32 %v5807_v17, %v1859_v40 }
 0xa3b   :  { %v1889_v36 = vmul.f32 %v3497_v55, %v5807_v17  ;;  %v1862_v63 = vpop.f32.mrb[47].mxu0 }
 0xa3c   :  { %v1887_v5 = vmul.f32 %v5807_v17, %v1862_v63  ;;  %1932 = vrot.lane.b32.xlu0 %v1862_v63, %s4017_s0 }
 0xa3d   :  { %1930 = vrot.lane.b32.xlu1 %v1859_v40, %s4017_s0  ;;  %v2293_v12 = vpack.c.bf16 %v1889_v36, %v1888_v1 }
 0xa3e   :  { %v2292_v10 = vpack.c.bf16 %v1887_v5, %v1886_v8 }
 0xa40   :  { %1936 = vrot.lane.b32.xlu0 %v3497_v55, %s4017_s0  ;;  %3510 = vmatprep.subr.bf16.mxu1 %v2292_v10 }
 0xa41   :  { %1987 = vperm.xlu1 %3610, %v5010_v45   ;;  %3511 = vmatpush3.bf16.msra.mxu1 %v2292_v10  ;;  %v1911_v45 = vpop.permute.xlu1 %1910 }
 0xa42   :  { %3512 = vmatprep.subr.bf16.mxu1 %v2293_v12 }
 0xa44   :  { %1991 = vperm.xlu0 %3609, %v5018_v57  }
 0xa45   :  { %1995 = vperm.xlu1 %3610, %v5006_v31   ;;  %3513 = vmatpush3.bf16.msra.mxu1 %v2293_v12  ;;  %v1907_v17 = vpop.permute.xlu1 %1906  ;;  %v1909_v31 = vpop.permute.xlu0 %1908 }
 0xa48   :  { %1999 = vperm.xlu0 %3609, %v5012_v20  }
 0xa49   :  { %2003 = vperm.xlu1 %3610, %v1827_v11   ;;  %v1919_v20 = vpop.permute.xlu1 %1918  ;;  %v1913_v57 = vpop.permute.xlu0 %1912 }
 0xa4c   :  { %2007 = vperm.xlu0 %3609, %v1830_v23  }
 0xa4d   :  { %2011 = vperm.xlu1 %3610, %v5030_v32   ;;  %v1915_v11 = vpop.permute.xlu1 %1914  ;;  %v1917_v32 = vpop.permute.xlu0 %1916 }
 0xa50   :  { %2015 = vperm.xlu0 %3609, %v3489_v9  }
 0xa51   :  { %2019 = vperm.xlu1 %3610, %v1843_v18   ;;  %v1921_v23 = vpop.permute.xlu0 %1920 }
 0xa54   :  { %2023 = vperm.xlu0 %3609, %v1846_v4  }
 0xa55   :  { %2027 = vperm.xlu1 %3610, %v3492_v61  }
 0xa58   :  { %2031 = vperm.xlu0 %3609, %v3493_v29  }
 0xa59   :  { %2035 = vperm.xlu1 %3610, %v1859_v40  }
 0xa5c   :  { %2047 = vperm.xlu0 %3609, %v3497_v55   ;;  %v5808_v55 = vld [vmem:[#allocation33_spill] sm:$0xff] }
 0xa5d   :  { %2043 = vperm.xlu1 %3610, %v3496_v50   ;;  %v5809_v1 = vsub.s32 0, %v5808_v55  ;;  %v3846_v55 = vld [vmem:[#allocation8 + $0x18] sm:$0xff] }
 0xa60   :  { %2039 = vperm.xlu0 %3609, %v1862_v63  }
 0xa6e   :  { %v1927_v9 = vpop.permute.xlu1 %1926 }
 0xa71   :  { %v1925_v47 = vpop.permute.xlu0 %1924 }
 0xa72   :  { %v1923_v59 = vpop.permute.xlu1 %1922 }
 0xa75   :  { %v1929_v2 = vpop.permute.xlu0 %1928 }
 0xa86   :  { %1954 = vxpose.xlu1.b32.start [1/16] (narrow) %v1907_v17, 8 }
 0xa8a   :  { %1955 = vxpose.xlu1.b32.cont [2/16] (narrow) %v1909_v31, 8 }
 0xa8e   :  { %1956 = vxpose.xlu1.b32.cont [3/16] (narrow) %v1911_v45, 8 }
 0xa92   :  { %1957 = vxpose.xlu1.b32.cont [4/16] (narrow) %v1913_v57, 8 }
 0xa96   :  { %1958 = vxpose.xlu1.b32.cont [5/16] (narrow) %v1915_v11, 8 }
 0xa9a   :  { %1959 = vxpose.xlu1.b32.cont [6/16] (narrow) %v1917_v32, 8 }
 0xa9e   :  { %1960 = vxpose.xlu1.b32.cont [7/16] (narrow) %v1919_v20, 8  ;;  %v3843_v20 = vld [vmem:[#allocation8] sm:$0xff] }
 0xaa2   :  { %1961 = vxpose.xlu1.b32.cont [8/16] (narrow) %v1921_v23, 8  ;;  %v3844_v23 = vld [vmem:[#allocation8 + $0x8] sm:$0xff] }
 0xaa6   :  { %1962 = vxpose.xlu1.b32.cont [9/16] (narrow) %v1923_v59, 8 }
 0xaaa   :  { %1963 = vxpose.xlu1.b32.cont [10/16] (narrow) %v1925_v47, 8 }
 0xaab   :  { %v1935_v22 = vpop.permute.xlu1 %1934 }
 0xaae   :  { %1964 = vxpose.xlu1.b32.cont [11/16] (narrow) %v1927_v9, 8  ;;  %v1933_v18 = vpop.permute.xlu0 %1932 }
 0xaaf   :  { %v1931_v61 = vpop.permute.xlu1 %1930 }
 0xab2   :  { %1965 = vxpose.xlu1.b32.cont [12/16] (narrow) %v1929_v2, 8  ;;  %v1937_v29 = vpop.permute.xlu0 %1936 }
 0xab6   :  { %1966 = vxpose.xlu1.b32.cont [13/16] (narrow) %v1931_v61, 8 }
 0xaba   :  { %1967 = vxpose.xlu1.b32.cont [14/16] (narrow) %v1933_v18, 8  ;;  %v3845_v18 = vld [vmem:[#allocation8 + $0x10] sm:$0xff] }
 0xabe   :  { %1968 = vxpose.xlu1.b32.cont [15/16] (narrow) %v1935_v22, 8 }
 0xac0   :  { %v1988_v39 = vpop.permute.xlu1 %1987 }
 0xac2   :  { %1969 = vxpose.xlu1.b32.end [16/16] (narrow) %v1937_v29, 8 }
 0xac3   :  { %v1992_v63 = vpop.permute.xlu0 %1991 }
 0xac4   :  { %v1996_v44 = vpop.permute.xlu1 %1995 }
 0xac7   :  { %v2000_v31 = vpop.permute.xlu0 %1999 }
 0xac8   :  { %v2004_v4 = vpop.permute.xlu1 %2003 }
 0xacb   :  { %v2008_v61 = vpop.permute.xlu0 %2007 }
 0xacc   :  { %v2012_v48 = vpop.permute.xlu1 %2011 }
 0xad0   :  { %v2020_v19 = vpop.permute.xlu1 %2019 }
 0xad4   :  { %v5063_v49 = vpop.permute.xlu1 %2027 }
 0xad8   :  { %v5065_v43 = vpop.permute.xlu1 %2035 }
 0xadc   :  { %v5067_v50 = vpop.permute.xlu1 %2043 }
 0xb06   :  { %v1970_v40 = vpop.trf.xlu1 }
 0xb07   :  { %v5071_v36 = vrot.slane %v1970_v40, %v5809_v1 }
 0xb09   :  { %v2054_v8 = vadd.f32 %v5071_v36, %v1988_v39  ;;  %v2055_v5 = vadd.f32 %v5071_v36, %v1992_v63  ;;  %v2056_v45 = vadd.f32 %v5071_v36, %v1996_v44  ;;  %v2057_v9 = vadd.f32 %v5071_v36, %v2000_v31 }
 0xb0a   :  { %v2058_v2 = vadd.f32 %v5071_v36, %v2004_v4  ;;  %v2059_v40 = vadd.f32 %v5071_v36, %v2008_v61  ;;  %v2060_v4 = vadd.f32 %v5071_v36, %v2012_v48  ;;  %v2062_v48 = vadd.f32 %v5071_v36, %v2020_v19 }
 0xb0b   :  { %vm2070_vm3 = vcmp.gt.f32.partialorder %v2054_v8, 0.0  ;;  %v2086_v12 = vmul.f32 0.2, %v2054_v8  ;;  %v2087_v10 = vmul.f32 0.2, %v2055_v5  ;;  %vm2071_vm4 = vcmp.gt.f32.partialorder %v2055_v5, 0.0 }
 0xb0c   :  { %v2088_v32 = vmul.f32 0.2, %v2056_v45  ;;  %vm2072_vm5 = vcmp.gt.f32.partialorder %v2056_v45, 0.0  ;;  %v2089_v22 = vmul.f32 0.2, %v2057_v9  ;;  %vm2073_vm6 = vcmp.gt.f32.partialorder %v2057_v9, 0.0 }
 0xb0d   :  { %v2102_v17 = vsel %vm2070_vm3, %v2054_v8, %v2086_v12  ;;  %v2103_v11 = vsel %vm2071_vm4, %v2055_v5, %v2087_v10  ;;  %v2090_v44 = vmul.f32 0.2, %v2058_v2  ;;  %vm2074_vm7 = vcmp.gt.f32.partialorder %v2058_v2, 0.0  ;;  %v2016_v5 = vpop.permute.xlu0 %2015  ;;  %v3847_v12 = vld [vmem:[#allocation8 + $0x20] sm:$0xff] }
 0xb0e   :  { %v5076_v57 = vadd.f32 %v3843_v20, %v2102_v17  ;;  %v5080_v59 = vadd.f32 %v3844_v23, %v2103_v11  ;;  %v2104_v47 = vsel %vm2072_vm5, %v2056_v45, %v2088_v32  ;;  %v2105_v39 = vsel %vm2073_vm6, %v2057_v9, %v2089_v22  ;;  %v3848_v20 = vld [vmem:[#allocation8 + $0x28] sm:$0xff] }
 0xb0f   :  { %v5084_v29 = vadd.f32 %v3845_v18, %v2104_v47  ;;  %v5088_v1 = vadd.f32 %v3846_v55, %v2105_v39  ;;  %v2106_v63 = vsel %vm2074_vm7, %v2058_v2, %v2090_v44  ;;  %v2091_v8 = vmul.f32 0.2, %v2059_v40  ;;  %v3849_v47 = vld [vmem:[#allocation8 + $0x30] sm:$0xff]  ;;  %v3850_v44 = vld [vmem:[#allocation8 + $0x38] sm:$0xff] }
 0xb10   :  { %2134 = vmax.xlane.f32.xlu0 %v5076_v57  ;;  %vm2075_vm8 = vcmp.gt.f32.partialorder %v2059_v40, 0.0  ;;  %v5092_v10 = vadd.f32 %v3847_v12, %v2106_v63  ;;  %v2092_v17 = vmul.f32 0.2, %v2060_v4  ;;  %v2061_v31 = vadd.f32 %v5071_v36, %v2016_v5 }
 0xb11   :  { %v2107_v45 = vsel %vm2075_vm8, %v2059_v40, %v2091_v8  ;;  %vm2076_vm9 = vcmp.gt.f32.partialorder %v2060_v4, 0.0  ;;  %v2024_v23 = vpop.permute.xlu0 %2023  ;;  %v2094_v61 = vmul.f32 0.2, %v2062_v48  ;;  %vm2078_vm11 = vcmp.gt.f32.partialorder %v2062_v48, 0.0  ;;  %v3851_v8 = vld [vmem:[#allocation8 + $0x40] sm:$0xff] }
 0xb12   :  { %v5096_v11 = vadd.f32 %v3848_v20, %v2107_v45  ;;  %v2108_v32 = vsel %vm2076_vm9, %v2060_v4, %v2092_v17  ;;  %v2093_v9 = vmul.f32 0.2, %v2061_v31  ;;  %vm2077_vm10 = vcmp.gt.f32.partialorder %v2061_v31, 0.0 }
 0xb13   :  { %v5100_v22 = vadd.f32 %v3849_v47, %v2108_v32  ;;  %v2063_v18 = vadd.f32 %v5071_v36, %v2024_v23  ;;  %v2110_v55 = vsel %vm2078_vm11, %v2062_v48, %v2094_v61  ;;  %v2064_v63 = vadd.f32 %v5071_v36, %v5063_v49  ;;  %v3853_v23 = vld [vmem:[#allocation8 + $0x50] sm:$0xff] }
 0xb14   :  { %2136 = vmax.xlane.f32.xlu0 %v5080_v59  ;;  %v2109_v2 = vsel %vm2077_vm10, %v2061_v31, %v2093_v9  ;;  %v5109_v4 = vadd.f32 %v3851_v8, %v2110_v55  ;;  %v3852_v31 = vld [vmem:[#allocation8 + $0x48] sm:$0xff]  ;;  %v2066_v49 = vadd.f32 %v5071_v36, %v5065_v43  ;;  %v2068_v43 = vadd.f32 %v5071_v36, %v5067_v50  ;;  %v3857_v50 = vld [vmem:[#allocation8 + $0x70] sm:$0xff] }
 0xb15   :  { %v2032_v39 = vpop.permute.xlu0 %2031  ;;  %v5104_v40 = vadd.f32 %v3850_v44, %v2109_v2  ;;  %v2095_v19 = vmul.f32 0.2, %v2063_v18  ;;  %vm2079_vm12 = vcmp.gt.f32.partialorder %v2063_v18, 0.0  ;;  %v2096_v12 = vmul.f32 0.2, %v2064_v63 }
 0xb16   :  { %v2065_v45 = vadd.f32 %v5071_v36, %v2032_v39  ;;  %vm2080_vm13 = vcmp.gt.f32.partialorder %v2064_v63, 0.0  ;;  %v2098_v61 = vmul.f32 0.2, %v2066_v49  ;;  %vm2082_vm15 = vcmp.gt.f32.partialorder %v2066_v49, 0.0  ;;  %v3854_v39 = vld [vmem:[#allocation8 + $0x58] sm:$0xff] }
 0xb17   :  { %v2111_v5 = vsel %vm2079_vm12, %v2063_v18, %v2095_v19  ;;  %v2112_v32 = vsel %vm2080_vm13, %v2064_v63, %v2096_v12  ;;  %v3855_v63 = vld [vmem:[#allocation8 + $0x60] sm:$0xff]  ;;  %v2100_v12 = vmul.f32 0.2, %v2068_v43  ;;  %vm2084_vm1 = vcmp.gt.f32.partialorder %v2068_v43, 0.0 }
 0xb18   :  { %2138 = vmax.xlane.f32.xlu0 %v5084_v29  ;;  %v5113_v20 = vadd.f32 %v3852_v31, %v2111_v5  ;;  %v2097_v9 = vmul.f32 0.2, %v2065_v45  ;;  %vm2081_vm14 = vcmp.gt.f32.partialorder %v2065_v45, 0.0  ;;  %v5118_v47 = vadd.f32 %v3853_v23, %v2112_v32  ;;  %v3856_v31 = vld [vmem:[#allocation8 + $0x68] sm:$0xff] }
 0xb19   :  { %v2048_v17 = vpop.permute.xlu0 %2047  ;;  %v2114_v55 = vsel %vm2082_vm15, %v2066_v49, %v2098_v61 }
 0xb1a   :  { %v2113_v2 = vsel %vm2081_vm14, %v2065_v45, %v2097_v9  ;;  %v5127_v8 = vadd.f32 %v3855_v63, %v2114_v55  ;;  %v2069_v45 = vadd.f32 %v5071_v36, %v2048_v17  ;;  %v2116_v9 = vsel %vm2084_vm1, %v2068_v43, %v2100_v12 }
 0xb1b   :  { %v5122_v44 = vadd.f32 %v3854_v39, %v2113_v2  ;;  %v3858_v2 = vld [vmem:[#allocation8 + $0x78] sm:$0xff] }
 0xb1c   :  { %2140 = vmax.xlane.f32.xlu0 %v5088_v1  ;;  %v2101_v49 = vmul.f32 0.2, %v2069_v45  ;;  %vm2085_vm2 = vcmp.gt.f32.partialorder %v2069_v45, 0.0 }
 0xb1d   :  { %v2040_v48 = vpop.permute.xlu0 %2039 }
 0xb1e   :  { %v2067_v18 = vadd.f32 %v5071_v36, %v2040_v48  ;;  %v5134_v48 = vadd.f32 %v3857_v50, %v2116_v9  ;;  %v2117_v23 = vsel %vm2085_vm2, %v2069_v45, %v2101_v49 }
 0xb1f   :  { %v5137_v61 = vadd.f32 %v3858_v2, %v2117_v23 }
 0xb20   :  { %2142 = vmax.xlane.f32.xlu0 %v5092_v10  ;;  %v2099_v19 = vmul.f32 0.2, %v2067_v18  ;;  %vm2083_vm0 = vcmp.gt.f32.partialorder %v2067_v18, 0.0 }
 0xb22   :  { %v2115_v5 = vsel %vm2083_vm0, %v2067_v18, %v2099_v19 }
 0xb23   :  { %v5131_v32 = vadd.f32 %v3856_v31, %v2115_v5 }
 0xb24   :  { %2144 = vmax.xlane.f32.xlu0 %v5096_v11 }
 0xb28   :  { %2146 = vmax.xlane.f32.xlu0 %v5100_v22 }
 0xb2c   :  { %2148 = vmax.xlane.f32.xlu0 %v5104_v40 }
 0xb30   :  { %2150 = vmax.xlane.f32.xlu0 %v5109_v4 }
 0xb34   :  { %2152 = vmax.xlane.f32.xlu0 %v5113_v20 }
 0xb38   :  { %2154 = vmax.xlane.f32.xlu0 %v5118_v47 }
 0xb3c   :  { %2156 = vmax.xlane.f32.xlu0 %v5122_v44 }
 0xb40   :  { %2158 = vmax.xlane.f32.xlu0 %v5127_v8 }
 0xb44   :  { %2160 = vmax.xlane.f32.xlu0 %v5131_v32 }
 0xb48   :  { %2162 = vmax.xlane.f32.xlu0 %v5134_v48 }
 0xb4c   :  { %2164 = vmax.xlane.f32.xlu0 %v5137_v61 }
 0xb9d   :  { %v2135_v36 = vpop.xlane.xlu0 %2134 }
 0xb9e   :  { %v2166_v17 = vsub.f32 %v5076_v57, %v2135_v36 }
 0xba0   :  { %v2182_v18 = vmul.f32 1.442695, %v2166_v17 }
 0xba1   :  { %v2137_v39 = vpop.xlane.xlu0 %2136 }
 0xba2   :  { %3747 = vpow2.f32 %v2182_v18  ;;  %v2167_v55 = vsub.f32 %v5080_v59, %v2137_v39 }
 0xba4   :  { %v2184_v19 = vmul.f32 1.442695, %v2167_v55 }
 0xba5   :  { %v2139_v43 = vpop.xlane.xlu0 %2138 }
 0xba6   :  { %3749 = vpow2.f32 %v2184_v19  ;;  %v2168_v63 = vsub.f32 %v5084_v29, %v2139_v43 }
 0xba8   :  { %v2186_v5 = vmul.f32 1.442695, %v2168_v63 }
 0xba9   :  { %v2141_v12 = vpop.xlane.xlu0 %2140 }
 0xbaa   :  { %3751 = vpow2.f32 %v2186_v5  ;;  %v2169_v45 = vsub.f32 %v5088_v1, %v2141_v12 }
 0xbac   :  { %v5144_v31 = vpop.eup %3747  ;;  %v2188_v9 = vmul.f32 1.442695, %v2169_v45 }
 0xbad   :  { %2214 = vadd.xlane.f32.xlu0 %v5144_v31  ;;  %v2143_v57 = vpop.xlane.xlu0 %2142 }
 0xbae   :  { %3753 = vpow2.f32 %v2188_v9  ;;  %v2170_v49 = vsub.f32 %v5092_v10, %v2143_v57 }
 0xbb0   :  { %v5148_v59 = vpop.eup %3749  ;;  %v2190_v50 = vmul.f32 1.442695, %v2170_v49 }
 0xbb1   :  { %2216 = vadd.xlane.f32.xlu0 %v5148_v59  ;;  %v2145_v29 = vpop.xlane.xlu0 %2144 }
 0xbb2   :  { %3755 = vpow2.f32 %v2190_v50  ;;  %v2171_v23 = vsub.f32 %v5096_v11, %v2145_v29 }
 0xbb4   :  { %v5152_v2 = vpop.eup %3751  ;;  %v2192_v1 = vmul.f32 1.442695, %v2171_v23 }
 0xbb5   :  { %2218 = vadd.xlane.f32.xlu1 %v5152_v2  ;;  %v2147_v36 = vpop.xlane.xlu0 %2146 }
 0xbb6   :  { %3757 = vpow2.f32 %v2192_v1  ;;  %v2172_v17 = vsub.f32 %v5100_v22, %v2147_v36 }
 0xbb8   :  { %v5156_v18 = vpop.eup %3753  ;;  %v2194_v10 = vmul.f32 1.442695, %v2172_v17 }
 0xbb9   :  { %2220 = vadd.xlane.f32.xlu0 %v5156_v18  ;;  %v2149_v39 = vpop.xlane.xlu0 %2148 }
 0xbba   :  { %3759 = vpow2.f32 %v2194_v10  ;;  %v2173_v55 = vsub.f32 %v5104_v40, %v2149_v39 }
 0xbbc   :  { %v5160_v19 = vpop.eup %3755  ;;  %v2196_v11 = vmul.f32 1.442695, %v2173_v55 }
 0xbbd   :  { %2222 = vadd.xlane.f32.xlu0 %v5160_v19  ;;  %v2151_v43 = vpop.xlane.xlu0 %2150 }
 0xbbe   :  { %3761 = vpow2.f32 %v2196_v11  ;;  %v2174_v63 = vsub.f32 %v5109_v4, %v2151_v43 }
 0xbc0   :  { %v5164_v5 = vpop.eup %3757  ;;  %v2198_v22 = vmul.f32 1.442695, %v2174_v63 }
 0xbc1   :  { %2224 = vadd.xlane.f32.xlu0 %v5164_v5  ;;  %v2153_v12 = vpop.xlane.xlu0 %2152 }
 0xbc2   :  { %3763 = vpow2.f32 %v2198_v22  ;;  %v2175_v45 = vsub.f32 %v5113_v20, %v2153_v12 }
 0xbc4   :  { %v5168_v9 = vpop.eup %3759  ;;  %v2200_v40 = vmul.f32 1.442695, %v2175_v45 }
 0xbc5   :  { %2226 = vadd.xlane.f32.xlu0 %v5168_v9  ;;  %v2155_v57 = vpop.xlane.xlu0 %2154 }
 0xbc6   :  { %3765 = vpow2.f32 %v2200_v40  ;;  %v2176_v49 = vsub.f32 %v5118_v47, %v2155_v57 }
 0xbc8   :  { %v5172_v50 = vpop.eup %3761  ;;  %v2202_v4 = vmul.f32 1.442695, %v2176_v49 }
 0xbc9   :  { %2228 = vadd.xlane.f32.xlu0 %v5172_v50  ;;  %v2157_v29 = vpop.xlane.xlu0 %2156 }
 0xbca   :  { %3767 = vpow2.f32 %v2202_v4  ;;  %v2177_v23 = vsub.f32 %v5122_v44, %v2157_v29 }
 0xbcc   :  { %v5176_v1 = vpop.eup %3763  ;;  %v2204_v20 = vmul.f32 1.442695, %v2177_v23 }
 0xbcd   :  { %2230 = vadd.xlane.f32.xlu0 %v5176_v1  ;;  %v2159_v36 = vpop.xlane.xlu0 %2158 }
 0xbce   :  { %3769 = vpow2.f32 %v2204_v20  ;;  %v2178_v17 = vsub.f32 %v5127_v8, %v2159_v36 }
 0xbd0   :  { %v5180_v10 = vpop.eup %3765  ;;  %v2206_v47 = vmul.f32 1.442695, %v2178_v17 }
 0xbd1   :  { %2232 = vadd.xlane.f32.xlu0 %v5180_v10  ;;  %v2161_v39 = vpop.xlane.xlu0 %2160 }
 0xbd2   :  { %3771 = vpow2.f32 %v2206_v47  ;;  %v2179_v55 = vsub.f32 %v5131_v32, %v2161_v39 }
 0xbd4   :  { %v5184_v11 = vpop.eup %3767  ;;  %v2208_v44 = vmul.f32 1.442695, %v2179_v55 }
 0xbd5   :  { %2234 = vadd.xlane.f32.xlu0 %v5184_v11  ;;  %v2163_v43 = vpop.xlane.xlu0 %2162 }
 0xbd6   :  { %3773 = vpow2.f32 %v2208_v44  ;;  %v2180_v63 = vsub.f32 %v5134_v48, %v2163_v43 }
 0xbd8   :  { %v5188_v22 = vpop.eup %3769  ;;  %v2210_v8 = vmul.f32 1.442695, %v2180_v63 }
 0xbd9   :  { %2236 = vadd.xlane.f32.xlu0 %v5188_v22  ;;  %v2165_v12 = vpop.xlane.xlu0 %2164 }
 0xbda   :  { %3775 = vpow2.f32 %v2210_v8  ;;  %v2181_v45 = vsub.f32 %v5137_v61, %v2165_v12 }
 0xbdc   :  { %v5192_v40 = vpop.eup %3771  ;;  %v2212_v32 = vmul.f32 1.442695, %v2181_v45 }
 0xbdd   :  { %2238 = vadd.xlane.f32.xlu0 %v5192_v40 }
 0xbde   :  { %3777 = vpow2.f32 %v2212_v32 }
 0xbe0   :  { %v5195_v57 = vpop.eup %3773 }
 0xbe1   :  { %2240 = vadd.xlane.f32.xlu1 %v5195_v57 }
 0xbe4   :  { %v5198_v48 = vpop.eup %3775 }
 0xbe5   :  { %2242 = vadd.xlane.f32.xlu0 %v5198_v48 }
 0xbe8   :  { %v5201_v49 = vpop.eup %3777 }
 0xbe9   :  { %2244 = vadd.xlane.f32.xlu1 %v5201_v49 }
 0xc3a   :  { %v2215_v4 = vpop.xlane.xlu0 %2214 }
 0xc3b   :  { %3779 = vrcp.f32 %v2215_v4 }
 0xc3e   :  { %v2217_v61 = vpop.xlane.xlu0 %2216 }
 0xc3f   :  { %3781 = vrcp.f32 %v2217_v61 }
 0xc42   :  { %v2219_v29 = vpop.xlane.xlu1 %2218 }
 0xc43   :  { %3783 = vrcp.f32 %v2219_v29 }
 0xc45   :  { %v3780_v20 = vpop.eup %3779 }
 0xc46   :  { %v2221_v23 = vpop.xlane.xlu0 %2220  ;;  %v2262_v47 = vmul.f32 %v3780_v20, %v5144_v31 }
 0xc47   :  { %3785 = vrcp.f32 %v2221_v23 }
 0xc49   :  { %v3782_v36 = vpop.eup %3781 }
 0xc4a   :  { %v2223_v17 = vpop.xlane.xlu0 %2222  ;;  %v2263_v39 = vmul.f32 %v3782_v36, %v5148_v59 }
 0xc4b   :  { %3787 = vrcp.f32 %v2223_v17 }
 0xc4c   :  { %v2278_v55 = vpack.c.bf16 %v2263_v39, %v2262_v47 }
 0xc4d   :  { %v3784_v43 = vpop.eup %3783 }
 0xc4e   :  { %3514 = vmatprep.mubr.bf16.mxu1 %v2278_v55  ;;  %v2225_v44 = vpop.xlane.xlu0 %2224  ;;  %v2264_v8 = vmul.f32 %v3784_v43, %v5152_v2 }
 0xc4f   :  { %3789 = vrcp.f32 %v2225_v44 }
 0xc51   :  { %v3786_v63 = vpop.eup %3785 }
 0xc52   :  { %v2265_v12 = vmul.f32 %v3786_v63, %v5156_v18  ;;  %v2227_v45 = vpop.xlane.xlu0 %2226 }
 0xc53   :  { %3791 = vrcp.f32 %v2227_v45 }
 0xc54   :  { %v2279_v32 = vpack.c.bf16 %v2265_v12, %v2264_v8 }
 0xc55   :  { %v3788_v61 = vpop.eup %3787 }
 0xc56   :  { %3515 = vmatmul.mubr.bf16.vlgmr.msra.gmra.mrb[32].mxu1 %v2279_v32  ;;  %v2229_v4 = vpop.xlane.xlu0 %2228  ;;  %v2266_v29 = vmul.f32 %v3788_v61, %v5160_v19 }
 0xc57   :  { %3793 = vrcp.f32 %v2229_v4 }
 0xc59   :  { %v3790_v31 = vpop.eup %3789 }
 0xc5a   :  { %v2231_v59 = vpop.xlane.xlu0 %2230  ;;  %v2267_v23 = vmul.f32 %v3790_v31, %v5164_v5 }
 0xc5b   :  { %3795 = vrcp.f32 %v2231_v59 }
 0xc5c   :  { %v2280_v20 = vpack.c.bf16 %v2267_v23, %v2266_v29 }
 0xc5d   :  { %v3792_v2 = vpop.eup %3791 }
 0xc5e   :  { %3518 = vmatprep.mubr.bf16.mxu1 %v2280_v20  ;;  %v2233_v36 = vpop.xlane.xlu0 %2232  ;;  %v2268_v47 = vmul.f32 %v3792_v2, %v5168_v9 }
 0xc5f   :  { %3797 = vrcp.f32 %v2233_v36 }
 0xc61   :  { %v3794_v18 = vpop.eup %3793 }
 0xc62   :  { %v2235_v17 = vpop.xlane.xlu0 %2234  ;;  %v2269_v39 = vmul.f32 %v3794_v18, %v5172_v50 }
 0xc63   :  { %3799 = vrcp.f32 %v2235_v17  ;;  %v5223_v17 = vld [vmem:[%s5610_s3 + $0x1] ss:$0 sm:$0xff] }
 0xc64   :  { %v2281_v55 = vpack.c.bf16 %v2269_v39, %v2268_v47 }
 0xc65   :  { %v3796_v43 = vpop.eup %3795 }
 0xc66   :  { %3519 = vmatmul.mubr.bf16.gmra.mrb[36].mxu1 %v2281_v55  ;;  %v2237_v44 = vpop.xlane.xlu0 %2236  ;;  %v2270_v63 = vmul.f32 %v3796_v43, %v5176_v1 }
 0xc67   :  { %3801 = vrcp.f32 %v2237_v44 }
 0xc69   :  { %v3798_v19 = vpop.eup %3797 }
 0xc6a   :  { %v2239_v5 = vpop.xlane.xlu0 %2238  ;;  %v2271_v8 = vmul.f32 %v3798_v19, %v5180_v10 }
 0xc6b   :  { %3803 = vrcp.f32 %v2239_v5 }
 0xc6c   :  { %v2282_v12 = vpack.c.bf16 %v2271_v8, %v2270_v63 }
 0xc6d   :  { %v3800_v32 = vpop.eup %3799 }
 0xc6e   :  { %v2241_v45 = vpop.xlane.xlu1 %2240  ;;  %3522 = vmatprep.mubr.bf16.mxu1 %v2282_v12  ;;  %v2272_v4 = vmul.f32 %v3800_v32, %v5184_v11 }
 0xc6f   :  { %3805 = vrcp.f32 %v2241_v45 }
 0xc71   :  { %v3802_v9 = vpop.eup %3801 }
 0xc72   :  { %v2243_v50 = vpop.xlane.xlu0 %2242  ;;  %v2273_v61 = vmul.f32 %v3802_v9, %v5188_v22 }
 0xc73   :  { %3807 = vrcp.f32 %v2243_v50 }
 0xc74   :  { %v2283_v31 = vpack.c.bf16 %v2273_v61, %v2272_v4 }
 0xc75   :  { %v3804_v29 = vpop.eup %3803 }
 0xc76   :  { %v2245_v59 = vpop.xlane.xlu1 %2244  ;;  %3523 = vmatmul.mubr.bf16.gmra.mrb[40].mxu1 %v2283_v31  ;;  %v2274_v10 = vmul.f32 %v3804_v29, %v5192_v40 }
 0xc77   :  { %3809 = vrcp.f32 %v2245_v59 }
 0xc79   :  { %v3806_v1 = vpop.eup %3805 }
 0xc7a   :  { %v2275_v23 = vmul.f32 %v3806_v1, %v5195_v57 }
 0xc7c   :  { %v2284_v20 = vpack.c.bf16 %v2275_v23, %v2274_v10 }
 0xc7d   :  { %v3808_v36 = vpop.eup %3807 }
 0xc7e   :  { %3526 = vmatprep.mubr.bf16.mxu1 %v2284_v20  ;;  %v2276_v18 = vmul.f32 %v3808_v36, %v5198_v48 }
 0xc81   :  { %v3810_v2 = vpop.eup %3809 }
 0xc82   :  { %v2277_v11 = vmul.f32 %v3810_v2, %v5201_v49 }
 0xc84   :  { %v2285_v22 = vpack.c.bf16 %v2277_v11, %v2276_v18 }
 0xc86   :  { %3527 = vmatmul.mubr.bf16.gmra.mrb[44].mxu1 %v2285_v22 }
 0xd29   :  { %v3516_v47 = vpop.f32.mrb[32].mxu1 }
 0xd2a   :  { %v2345_v40 = vadd.f32 %v3516_v47, %v5223_v17  ;;  %v2336_v39 = vpop.f32.mrb[33].mxu1 }
 0xd2b   :  { %v2337_v57 = vadd.f32 %v5223_v17, %v2336_v39  ;;  %v3517_v55 = vpop.f32.mrb[34].mxu1 }
 0xd2c   :  { %v5227_v44 = vmax.f32 %v2345_v40, 0.0  ;;  %v2339_v43 = vpop.f32.mrb[35].mxu1  ;;  %v2348_v48 = vadd.f32 %v3517_v55, %v5223_v17 }
 0xd2d   :  { %v2340_v49 = vadd.f32 %v5223_v17, %v2339_v43  ;;  %v5231_v19 = vmax.f32 %v2337_v57, 0.0 }
 0xd2e   :  { %5810 = vst [vmem:[#allocation25_spill] sm:$0xff] %v5227_v44  ;;  %v2417_v5 = vmul.f32 %v5227_v44, %v5227_v44  ;;  %v5237_v8 = vmax.f32 %v2348_v48, 0.0 }
 0xd2f   :  { %5811 = vst [vmem:[#allocation43_spill] sm:$0xff] %v5231_v19  ;;  %v5235_v63 = vmax.f32 %v2340_v49, 0.0  ;;  %v2415_v45 = vmul.f32 %v5231_v19, %v5231_v19 }
 0xd30   :  { %2435 = vadd.xlane.f32.xlu0 %v2417_v5  ;;  %5813 = vst [vmem:[#allocation24_spill] sm:$0xff] %v5237_v8  ;;  %v2418_v32 = vmul.f32 %v5237_v8, %v5237_v8 }
 0xd31   :  { %5812 = vst [vmem:[#allocation27_spill] sm:$0xff] %v5235_v63  ;;  %v2416_v12 = vmul.f32 %v5235_v63, %v5235_v63 }
 0xd33   :  { %2433 = vadd.xlane.f32.xlu1 %v2416_v12 }
 0xd34   :  { %2431 = vadd.xlane.f32.xlu0 %v2415_v45 }
 0xd37   :  { %2437 = vadd.xlane.f32.xlu1 %v2418_v32 }
 0xd39   :  { %v3520_v9 = vpop.f32.mrb[36].mxu1 }
 0xd3a   :  { %v2361_v50 = vadd.f32 %v3520_v9, %v5223_v17  ;;  %v2352_v4 = vpop.f32.mrb[37].mxu1 }
 0xd3b   :  { %v2353_v61 = vadd.f32 %v5223_v17, %v2352_v4  ;;  %v3521_v31 = vpop.f32.mrb[38].mxu1 }
 0xd3c   :  { %v5247_v59 = vmax.f32 %v2361_v50, 0.0  ;;  %v2355_v29 = vpop.f32.mrb[39].mxu1  ;;  %v2364_v1 = vadd.f32 %v3521_v31, %v5223_v17 }
 0xd3d   :  { %v2356_v10 = vadd.f32 %v5223_v17, %v2355_v29  ;;  %v5251_v23 = vmax.f32 %v2353_v61, 0.0 }
 0xd3e   :  { %5814 = vst [vmem:[#allocation42_spill] sm:$0xff] %v5247_v59  ;;  %v2421_v20 = vmul.f32 %v5247_v59, %v5247_v59  ;;  %v5257_v2 = vmax.f32 %v2364_v1, 0.0 }
 0xd3f   :  { %5815 = vst [vmem:[#allocation26_spill] sm:$0xff] %v5251_v23  ;;  %v5255_v36 = vmax.f32 %v2356_v10, 0.0  ;;  %v2419_v11 = vmul.f32 %v5251_v23, %v5251_v23 }
 0xd40   :  { %2443 = vadd.xlane.f32.xlu0 %v2421_v20  ;;  %5817 = vst [vmem:[#allocation29_spill] sm:$0xff] %v5257_v2  ;;  %v2422_v22 = vmul.f32 %v5257_v2, %v5257_v2 }
 0xd41   :  { %5816 = vst [vmem:[#allocation44_spill] sm:$0xff] %v5255_v36  ;;  %v2420_v18 = vmul.f32 %v5255_v36, %v5255_v36 }
 0xd43   :  { %2441 = vadd.xlane.f32.xlu1 %v2420_v18 }
 0xd44   :  { %2439 = vadd.xlane.f32.xlu0 %v2419_v11 }
 0xd47   :  { %2445 = vadd.xlane.f32.xlu1 %v2422_v22 }
 0xd49   :  { %v3524_v47 = vpop.f32.mrb[40].mxu1 }
 0xd4a   :  { %v2377_v40 = vadd.f32 %v3524_v47, %v5223_v17  ;;  %v2368_v39 = vpop.f32.mrb[41].mxu1 }
 0xd4b   :  { %v2369_v57 = vadd.f32 %v5223_v17, %v2368_v39  ;;  %v3525_v55 = vpop.f32.mrb[42].mxu1 }
 0xd4c   :  { %v5267_v43 = vmax.f32 %v2377_v40, 0.0  ;;  %v2371_v48 = vpop.f32.mrb[43].mxu1  ;;  %v2380_v49 = vadd.f32 %v3525_v55, %v5223_v17 }
 0xd4d   :  { %v2372_v5 = vadd.f32 %v5223_v17, %v2371_v48  ;;  %v5271_v12 = vmax.f32 %v2369_v57, 0.0 }
 0xd4e   :  { %5818 = vst [vmem:[#allocation45_spill] sm:$0xff] %v5267_v43  ;;  %v2425_v45 = vmul.f32 %v5267_v43, %v5267_v43  ;;  %v5277_v9 = vmax.f32 %v2380_v49, 0.0 }
 0xd4f   :  { %5819 = vst [vmem:[#allocation31_spill] sm:$0xff] %v5271_v12  ;;  %v5275_v32 = vmax.f32 %v2372_v5, 0.0  ;;  %v2423_v4 = vmul.f32 %v5271_v12, %v5271_v12 }
 0xd50   :  { %2451 = vadd.xlane.f32.xlu0 %v2425_v45  ;;  %5821 = vst [vmem:[#allocation30_spill] sm:$0xff] %v5277_v9  ;;  %v2426_v61 = vmul.f32 %v5277_v9, %v5277_v9 }
 0xd51   :  { %5820 = vst [vmem:[#allocation28_spill] sm:$0xff] %v5275_v32  ;;  %v2424_v50 = vmul.f32 %v5275_v32, %v5275_v32 }
 0xd53   :  { %2449 = vadd.xlane.f32.xlu1 %v2424_v50  ;;  %v5825_v50 = vld [vmem:[#allocation47_spill] sm:$0xff] }
 0xd54   :  { %2447 = vadd.xlane.f32.xlu0 %v2423_v4 }
 0xd57   :  { %2453 = vadd.xlane.f32.xlu1 %v2426_v61 }
 0xd59   :  { %v3528_v31 = vpop.f32.mrb[44].mxu1 }
 0xd5a   :  { %v2393_v29 = vadd.f32 %v3528_v31, %v5223_v17  ;;  %v2384_v1 = vpop.f32.mrb[45].mxu1 }
 0xd5b   :  { %v2385_v10 = vadd.f32 %v5223_v17, %v2384_v1  ;;  %v3529_v20 = vpop.f32.mrb[46].mxu1 }
 0xd5c   :  { %v5287_v18 = vmax.f32 %v2393_v29, 0.0  ;;  %v2387_v11 = vpop.f32.mrb[47].mxu1  ;;  %v2396_v22 = vadd.f32 %v3529_v20, %v5223_v17 }
 0xd5d   :  { %v2388_v47 = vadd.f32 %v5223_v17, %v2387_v11  ;;  %v5291_v40 = vmax.f32 %v2385_v10, 0.0 }
 0xd5e   :  { %5822 = vst [vmem:[#allocation46_spill] sm:$0xff] %v5287_v18  ;;  %v2429_v39 = vmul.f32 %v5287_v18, %v5287_v18  ;;  %v5297_v55 = vmax.f32 %v2396_v22, 0.0  ;;  %v5826_v22 = vld [vmem:[#allocation48_spill] sm:$0xff] }
 0xd5f   :  { %5823 = vst [vmem:[#allocation32_spill] sm:$0xff] %v5291_v40  ;;  %v5295_v57 = vmax.f32 %v2388_v47, 0.0  ;;  %v2427_v49 = vmul.f32 %v5291_v40, %v5291_v40 }
 0xd60   :  { %2459 = vadd.xlane.f32.xlu0 %v2429_v39  ;;  %5824 = vst [vmem:[#allocation33_spill] sm:$0xff] %v5297_v55  ;;  %v2430_v17 = vmul.f32 %v5297_v55, %v5297_v55 }
 0xd61   :  { %v2428_v48 = vmul.f32 %v5295_v57, %v5295_v57 }
 0xd63   :  { %2457 = vadd.xlane.f32.xlu1 %v2428_v48 }
 0xd64   :  { %2455 = vadd.xlane.f32.xlu0 %v2427_v49 }
 0xd67   :  { %2461 = vadd.xlane.f32.xlu1 %v2430_v17 }
 0xdbd   :  { %v5305_v5 = vpop.xlane.xlu0 %2435 }
 0xdbe   :  { %v2465_v4 = vmul.f32 %v5825_v50, %v5305_v5 }
 0xdc0   :  { %v5307_v45 = vpop.xlane.xlu1 %2433  ;;  %v2481_v11 = vadd.f32 %v2465_v4, %v5227_v44 }
 0xdc1   :  { %v2464_v61 = vmul.f32 %v5825_v50, %v5307_v45  ;;  %v5313_v31 = vpop.xlane.xlu0 %2431 }
 0xdc2   :  { %v2463_v29 = vmul.f32 %v5825_v50, %v5313_v31  ;;  %v2497_v21 = vadd.f32 %v5826_v22, %v2481_v11 }
 0xdc3   :  { %v2480_v1 = vadd.f32 %v2464_v61, %v5235_v63 }
 0xdc4   :  { %v2479_v10 = vadd.f32 %v2463_v29, %v5231_v19  ;;  %v5319_v20 = vpop.xlane.xlu1 %2437 }
 0xdc5   :  { %v2496_v47 = vadd.f32 %v5826_v22, %v2480_v1  ;;  %v2466_v39 = vmul.f32 %v5825_v50, %v5319_v20 }
 0xdc6   :  { %v2495_v48 = vadd.f32 %v5826_v22, %v2479_v10 }
 0xdc7   :  { %v2482_v49 = vadd.f32 %v2466_v39, %v5237_v8 }
 0xdc8   :  { %v2511_v17 = vpack.c.bf16 %v2496_v47, %v2495_v48 }
 0xdc9   :  { %v2498_v61 = vadd.f32 %v5826_v22, %v2482_v49 }
 0xdca   :  { %3530 = vmatprep.subr.bf16.mxu0 %v2511_v17 }
 0xdcb   :  { %3531 = vmatpush3.bf16.msra.mxu0 %v2511_v17  ;;  %v2512_v29 = vpack.c.bf16 %v2498_v61, %v2497_v21 }
 0xdcd   :  { %3532 = vmatprep.subr.bf16.mxu0 %v2512_v29  ;;  %v5329_v15 = vpop.xlane.xlu0 %2443 }
 0xdce   :  { %v2469_v1 = vmul.f32 %v5825_v50, %v5329_v15 }
 0xdcf   :  { %3533 = vmatpush3.bf16.msra.mxu0 %v2512_v29 }
 0xdd0   :  { %v5331_v4 = vpop.xlane.xlu1 %2441  ;;  %v2485_v49 = vadd.f32 %v2469_v1, %v5247_v59 }
 0xdd1   :  { %v2468_v10 = vmul.f32 %v5825_v50, %v5331_v4  ;;  %v5337_v47 = vpop.xlane.xlu0 %2439 }
 0xdd2   :  { %v2467_v11 = vmul.f32 %v5825_v50, %v5337_v47  ;;  %v2501_v25 = vadd.f32 %v5826_v22, %v2485_v49 }
 0xdd3   :  { %v2484_v39 = vadd.f32 %v2468_v10, %v5255_v36 }
 0xdd4   :  { %v2483_v21 = vadd.f32 %v2467_v11, %v5251_v23  ;;  %v5343_v48 = vpop.xlane.xlu1 %2445 }
 0xdd5   :  { %v2500_v17 = vadd.f32 %v5826_v22, %v2484_v39  ;;  %v2470_v61 = vmul.f32 %v5825_v50, %v5343_v48 }
 0xdd6   :  { %v2499_v29 = vadd.f32 %v5826_v22, %v2483_v21 }
 0xdd7   :  { %v2486_v33 = vadd.f32 %v2470_v61, %v5257_v2 }
 0xdd8   :  { %v2513_v26 = vpack.c.bf16 %v2500_v17, %v2499_v29 }
 0xdd9   :  { %v2502_v10 = vadd.f32 %v5826_v22, %v2486_v33 }
 0xdda   :  { %3534 = vmatprep.subr.bf16.mxu0 %v2513_v26 }
 0xddb   :  { %3535 = vmatpush3.bf16.msra.mxu0 %v2513_v26  ;;  %v2514_v11 = vpack.c.bf16 %v2502_v10, %v2501_v25 }
 0xddd   :  { %3536 = vmatprep.subr.bf16.mxu0 %v2514_v11  ;;  %v5353_v56 = vpop.xlane.xlu0 %2451 }
 0xdde   :  { %v2473_v39 = vmul.f32 %v5825_v50, %v5353_v56 }
 0xddf   :  { %3537 = vmatpush3.bf16.msra.mxu0 %v2514_v11 }
 0xde0   :  { %v5355_v1 = vpop.xlane.xlu1 %2449  ;;  %v2489_v61 = vadd.f32 %v2473_v39, %v5267_v43 }
 0xde1   :  { %v2472_v21 = vmul.f32 %v5825_v50, %v5355_v1  ;;  %v5361_v17 = vpop.xlane.xlu0 %2447 }
 0xde2   :  { %v2471_v33 = vmul.f32 %v5825_v50, %v5361_v17  ;;  %v2505_v0 = vadd.f32 %v5826_v22, %v2489_v61 }
 0xde3   :  { %v2488_v26 = vadd.f32 %v2472_v21, %v5275_v32 }
 0xde4   :  { %v2487_v25 = vadd.f32 %v2471_v33, %v5271_v12  ;;  %v5367_v49 = vpop.xlane.xlu1 %2453 }
 0xde5   :  { %v2504_v29 = vadd.f32 %v5826_v22, %v2488_v26  ;;  %v2474_v10 = vmul.f32 %v5825_v50, %v5367_v49 }
 0xde6   :  { %v2503_v11 = vadd.f32 %v5826_v22, %v2487_v25 }
 0xde7   :  { %v2490_v34 = vadd.f32 %v2474_v10, %v5277_v9 }
 0xde8   :  { %v2515_v24 = vpack.c.bf16 %v2504_v29, %v2503_v11 }
 0xde9   :  { %v2506_v21 = vadd.f32 %v5826_v22, %v2490_v34 }
 0xdea   :  { %3538 = vmatprep.subr.bf16.mxu0 %v2515_v24 }
 0xdeb   :  { %3539 = vmatpush3.bf16.msra.mxu0 %v2515_v24  ;;  %v2516_v33 = vpack.c.bf16 %v2506_v21, %v2505_v0 }
 0xded   :  { %3540 = vmatprep.subr.bf16.mxu0 %v2516_v33  ;;  %v5377_v37 = vpop.xlane.xlu0 %2459 }
 0xdee   :  { %v2477_v26 = vmul.f32 %v5825_v50, %v5377_v37 }
 0xdef   :  { %3541 = vmatpush3.bf16.msra.mxu0 %v2516_v33 }
 0xdf0   :  { %v5379_v39 = vpop.xlane.xlu1 %2457  ;;  %v2493_v10 = vadd.f32 %v2477_v26, %v5287_v18  ;;  %v3859_v26 = vld [vmem:[#allocation7 + $0x8] sm:$0xff]  }
 0xdf1   :  { %5827 = vst [vmem:[#allocation47_spill] sm:$0xff] %v5379_v39  ;;  %v2476_v25 = vmul.f32 %v5825_v50, %v5379_v39  ;;  %v5385_v29 = vpop.xlane.xlu0 %2455 }
 0xdf2   :  { %v2475_v34 = vmul.f32 %v5825_v50, %v5385_v29  ;;  %v2509_v3 = vadd.f32 %v5826_v22, %v2493_v10  ;;  %v3865_v10 = vld [vmem:[#allocation7 + $0x38] sm:$0xff]  }
 0xdf3   :  { %v2492_v24 = vadd.f32 %v2476_v25, %v5295_v57 }
 0xdf4   :  { %v2491_v0 = vadd.f32 %v2475_v34, %v5291_v40  ;;  %v5391_v61 = vpop.xlane.xlu1 %2461 }
 0xdf5   :  { %5828 = vst [vmem:[#allocation48_spill] sm:$0xff] %v5391_v61  ;;  %v2508_v11 = vadd.f32 %v5826_v22, %v2492_v24  ;;  %v2478_v21 = vmul.f32 %v5825_v50, %v5391_v61  ;;  %v3860_v24 = vld [vmem:[#allocation7 + $0x10] sm:$0xff]   ;;  %v3862_v50 = vld [vmem:[#allocation7 + $0x20] sm:$0xff]  }
 0xdf6   :  { %v2507_v33 = vadd.f32 %v5826_v22, %v2491_v0  ;;  %v3863_v0 = vld [vmem:[#allocation7 + $0x28] sm:$0xff]  }
 0xdf7   :  { %v2494_v35 = vadd.f32 %v2478_v21, %v5297_v55 }
 0xdf8   :  { %v2517_v46 = vpack.c.bf16 %v2508_v11, %v2507_v33  ;;  %v3864_v11 = vld [vmem:[#allocation7 + $0x30] sm:$0xff]  }
 0xdf9   :  { %v2510_v25 = vadd.f32 %v5826_v22, %v2494_v35 }
 0xdfa   :  { %3542 = vmatprep.subr.bf16.mxu0 %v2517_v46 }
 0xdfb   :  { %3543 = vmatpush3.bf16.msra.mxu0 %v2517_v46  ;;  %v2518_v34 = vpack.c.bf16 %v2510_v25, %v2509_v3 }
 0xdfd   :  { %3544 = vmatprep.subr.bf16.mxu0 %v2518_v34 }
 0xdff   :  { %3545 = vmatpush3.bf16.msra.mxu0 %v2518_v34 }
 0xe02   :  { %3547 = vmatmul.mubr.bf16.vlgmr.msra.gmra.mrb[48].mxu0 %v3859_v26 }
 0xe03   :  { %3550 = vmatprep.mubr.bf16.mxu0 %v3860_v24 }
 0xe0a   :  { %3551 = vmatmul.mubr.bf16.gmra.mrb[52].mxu0 %v3861_v38 }
 0xe0b   :  { %3554 = vmatprep.mubr.bf16.mxu0 %v3862_v50 }
 0xe12   :  { %3555 = vmatmul.mubr.bf16.gmra.mrb[56].mxu0 %v3863_v0 }
 0xe13   :  { %3558 = vmatprep.mubr.bf16.mxu0 %v3864_v11 }
 0xe1a   :  { %3559 = vmatmul.mubr.bf16.gmra.mrb[60].mxu0 %v3865_v10 }
 0xed5   :  { %v5401_v35 = vpop.f32.mrb[48].mxu0 }
 0xed6   :  { %2700 = vrot.lane.b32.xlu1 %v5401_v35, %s4019_s27  ;;  %v2553_v3 = vpop.f32.mrb[49].mxu0  ;;  %v2618_v42 = vmul.f32 %v5401_v35, %v5227_v44  ;;  %v5829_v44 = vld [vmem:[#allocation50_spill] sm:$0xff] }
 0xed7   :  { %2696 = vrot.lane.b32.xlu0 %v2553_v3, %s4019_s27  ;;  %v3549_v46 = vpop.f32.mrb[50].mxu0  ;;  %v2616_v61 = vmul.f32 %v2553_v3, %v5231_v19 }
 0xed8   :  { %v5406_v22 = vpop.f32.mrb[51].mxu0  ;;  %v2619_v13 = vmul.f32 %v3549_v46, %v5237_v8 }
 0xed9   :  { %v2617_v41 = vmul.f32 %v5406_v22, %v5235_v63 }
 0xeda   :  { %2698 = vrot.lane.b32.xlu1 %v5406_v22, %s4019_s27 }
 0xedd   :  { %v5410_v38 = vpop.f32.mrb[52].mxu0 }
 0xede   :  { %v5412_v21 = vpop.f32.mrb[53].mxu0 }
 0xedf   :  { %v5414_v33 = vpop.f32.mrb[54].mxu0 }
 0xee0   :  { %v5416_v25 = vpop.f32.mrb[55].mxu0 }
 0xee5   :  { %v5418_v34 = vpop.f32.mrb[56].mxu0 }
 0xee6   :  { %v5420_v26 = vpop.f32.mrb[57].mxu0 }
 0xee7   :  { %v5422_v24 = vpop.f32.mrb[58].mxu0 }
 0xee8   :  { %v5424_v50 = vpop.f32.mrb[59].mxu0 }
 0xeed   :  { %v5426_v0 = vpop.f32.mrb[60].mxu0 }
 0xeee   :  { %v5428_v11 = vpop.f32.mrb[61].mxu0 }
 0xeef   :  { %v5430_v10 = vpop.f32.mrb[62].mxu0 }
 0xef0   :  { %v5432_v51 = vpop.f32.mrb[63].mxu0 }
 0xef6   :  { %2636 = vadd.xlane.f32.xlu0 %v2618_v42  ;;  %v2623_v42 = vmul.f32 %v5414_v33, %v5257_v2 }
 0xefe   :  { %2638 = vadd.xlane.f32.xlu1 %v2619_v13  ;;  %v2621_v13 = vmul.f32 %v5416_v25, %v5255_v36 }
 0xf02   :  { %2634 = vadd.xlane.f32.xlu1 %v2617_v41  ;;  %v2622_v41 = vmul.f32 %v5410_v38, %v5247_v59 }
 0xf0c   :  { %2702 = vrot.lane.b32.xlu0 %v3549_v46, %s4019_s27 }
 0xf13   :  { %2708 = vrot.lane.b32.xlu1 %v5410_v38, %s4019_s27 }
 0xf17   :  { %2706 = vrot.lane.b32.xlu1 %v5416_v25, %s4019_s27 }
 0xf2b   :  { %2632 = vadd.xlane.f32.xlu0 %v2616_v61  ;;  %v2624_v61 = vmul.f32 %v5420_v26, %v5271_v12 }
 0xf3b   :  { %2646 = vadd.xlane.f32.xlu1 %v2623_v42 }
 0xf3f   :  { %2642 = vadd.xlane.f32.xlu1 %v2621_v13  ;;  %v2667_v13 = vmul.f32 %v3549_v46, %v5319_v20  ;;  %v2626_v20 = vmul.f32 %v5418_v34, %v5267_v43 }
 0xf41   :  { %2704 = vrot.lane.b32.xlu0 %v5412_v21, %s4019_s27 }
 0xf48   :  { %v2701_v12 = vpop.permute.xlu1 %2700 }
 0xf49   :  { %v2697_v42 = vpop.permute.xlu0 %2696 }
 0xf50   :  { %2716 = vrot.lane.b32.xlu1 %v5418_v34, %s4019_s27 }
 0xf60   :  { %2644 = vadd.xlane.f32.xlu0 %v2622_v41  ;;  %v2620_v41 = vmul.f32 %v5412_v21, %v5251_v23 }
 0xf74   :  { %2648 = vadd.xlane.f32.xlu1 %v2624_v61  ;;  %v2627_v61 = vmul.f32 %v5422_v24, %v5277_v9 }
 0xf76   :  { %2710 = vrot.lane.b32.xlu0 %v5414_v33, %s4019_s27 }
 0xf83   :  { %v2637_v2 = vpop.xlane.xlu0 %2636 }
 0xf84   :  { %v2762_v43 = vmul.f32 2.0, %v2637_v2  ;;  %v2625_v2 = vmul.f32 %v5424_v50, %v5275_v32 }
 0xf85   :  { %2714 = vrot.lane.b32.xlu1 %v5424_v50, %s4019_s27 }
 0xf87   :  { %v2703_v36 = vpop.permute.xlu0 %2702 }
 0xf88   :  { %v5462_v8 = vadd.f32 %v2703_v36, %v2667_v13  ;;  %v2628_v36 = vmul.f32 %v5428_v11, %v5291_v40  ;;  %v2631_v13 = vmul.f32 %v5430_v10, %v5297_v55 }
 0xf95   :  { %2640 = vadd.xlane.f32.xlu0 %v2620_v41  ;;  %v2664_v41 = vmul.f32 %v2553_v3, %v5313_v31 }
 0xf97   :  { %v2744_v9 = vadd.f32 %v2697_v42, %v2664_v41  ;;  %v2699_v42 = vpop.permute.xlu1 %2698 }
 0xfa9   :  { %2654 = vadd.xlane.f32.xlu1 %v2627_v61 }
 0xfab   :  { %2712 = vrot.lane.b32.xlu0 %v5420_v26, %s4019_s27 }
 0xfb8   :  { %v2633_v46 = vpop.xlane.xlu0 %2632 }
 0xfb9   :  { %v2760_v61 = vmul.f32 2.0, %v2633_v46  ;;  %v2670_v46 = vmul.f32 %v5410_v38, %v5329_v15 }
 0xfba   :  { %2720 = vrot.lane.b32.xlu1 %v5428_v11, %s4019_s27 }
 0xfbb   :  { %v2776_v59 = vsub.f32 %v2744_v9, %v2760_v61  ;;  %v2639_v9 = vpop.xlane.xlu1 %2638 }
 0xfca   :  { %2652 = vadd.xlane.f32.xlu0 %v2626_v20  ;;  %v2666_v20 = vmul.f32 %v5401_v35, %v5305_v5 }
 0xfcc   :  { %v2746_v40 = vadd.f32 %v2701_v12, %v2666_v20 }
 0xfce   :  { %v2778_v23 = vsub.f32 %v2746_v40, %v2762_v43  ;;  %v2705_v43 = vpop.permute.xlu0 %2704 }
 0xfd0   :  { %v2794_v55 = vmul.f32 %v2778_v23, %v5829_v44  ;;  %v2635_v44 = vpop.xlane.xlu1 %2634 }
 0xfde   :  { %2656 = vadd.xlane.f32.xlu1 %v2628_v36  ;;  %v2792_v36 = vmul.f32 %v2776_v59, %v4794_v62  ;;  %v2630_v62 = vmul.f32 %v5426_v0, %v5287_v18  ;;  %v2709_v59 = vpop.permute.xlu1 %2708  ;;  %v2672_v18 = vmul.f32 %v5420_v26, %v5361_v17 }
 0xfdf   :  { %v2750_v20 = vadd.f32 %v2709_v59, %v2670_v46  ;;  %v2629_v59 = vmul.f32 %v5432_v51, %v5295_v57  ;;  %v2669_v46 = vmul.f32 %v5416_v25, %v5331_v4  ;;  %v3649_v25 = vld [vmem:[#allocation10 + $0x30] sm:$0xff]  }
 0xfe0   :  { %2718 = vrot.lane.b32.xlu0 %v5422_v24, %s4019_s27  ;;  %3811 = vtanh.f32 %v2792_v36 }
 0xfe1   :  { %3813 = vtanh.f32 %v2794_v55 }
 0xfe2   :  { %2662 = vadd.xlane.f32.xlu1 %v2631_v13  ;;  %v2707_v23 = vpop.permute.xlu1 %2706  ;;  %v2668_v13 = vmul.f32 %v5412_v21, %v5337_v47 }
 0xfe4   :  { %v2748_v36 = vadd.f32 %v2705_v43, %v2668_v13 }
 0xfe6   :  { %v2647_v12 = vpop.xlane.xlu1 %2646 }
 0xfea   :  { %v3812_v31 = vpop.eup %3811  ;;  %v2643_v55 = vpop.xlane.xlu1 %2642 }
 0xfeb   :  { %v3814_v3 = vpop.eup %3813  ;;  %v2765_v13 = vmul.f32 2.0, %v2643_v55 }
 0xfed   :  { %v2645_v40 = vpop.xlane.xlu0 %2644 }
 0xfee   :  { %v5493_v35 = vpop.permute.xlu1 %2716  ;;  %v2766_v41 = vmul.f32 2.0, %v2645_v40 }
 0xff1   :  { %v2711_v5 = vpop.permute.xlu0 %2710 }
 0xff3   :  { %2724 = vrot.lane.b32.xlu1 %v5426_v0, %s4019_s27 }
 0xff7   :  { %2842 = vperm.xlu1 %3610, %v3812_v31  }
 0xffb   :  { %2852 = vperm.xlu1 %3610, %v3814_v3  }
 0xfff   :  { %2650 = vadd.xlane.f32.xlu0 %v2625_v2  ;;  %v2782_v2 = vsub.f32 %v2750_v20, %v2766_v41  ;;  %v2767_v41 = vmul.f32 2.0, %v2647_v12 }
0x1001   :  { %v2649_v3 = vpop.xlane.xlu1 %2648  ;;  %v2798_v15 = vmul.f32 %v2782_v2, %v4818_v28 }
0x1002   :  { %v2768_v63 = vmul.f32 2.0, %v2649_v3 }
0x1003   :  { %2660 = vadd.xlane.f32.xlu0 %v2630_v62 }
0x1005   :  { %v2715_v2 = vpop.permute.xlu1 %2714 }
0x1019   :  { %2722 = vrot.lane.b32.xlu0 %v5432_v51, %s4019_s27 }
0x1022   :  { %v2641_v61 = vpop.xlane.xlu0 %2640 }
0x1023   :  { %v2764_v31 = vmul.f32 2.0, %v2641_v61  ;;  %v3646_v61 = vld [vmem:[#allocation10 + $0x18] sm:$0xff]  }
0x1025   :  { %v2780_v62 = vsub.f32 %v2748_v36, %v2764_v31  ;;  %v3650_v36 = vld [vmem:[#allocation10 + $0x38] sm:$0xff]  }
0x1026   :  { %v2713_v32 = vpop.permute.xlu0 %2712 }
0x1027   :  { %v2796_v19 = vmul.f32 %v2780_v62, %v4798_v52  ;;  %v2752_v39 = vadd.f32 %v2713_v32, %v2672_v18  ;;  %v2665_v52 = vmul.f32 %v5406_v22, %v5307_v45  ;;  %v2761_v32 = vmul.f32 2.0, %v2635_v44 }
0x1028   :  { %v2763_v18 = vmul.f32 2.0, %v2639_v9  ;;  %v2749_v45 = vadd.f32 %v2707_v23, %v2669_v46  ;;  %v2671_v22 = vmul.f32 %v5414_v33, %v5343_v48  ;;  %v3647_v48 = vld [vmem:[#allocation10 + $0x20] sm:$0xff]   ;;  %v2674_v23 = vmul.f32 %v5418_v34, %v5353_v56 }
0x1029   :  { %3815 = vtanh.f32 %v2796_v19  ;;  %v2784_v47 = vsub.f32 %v2752_v39, %v2768_v63  ;;  %v2745_v28 = vadd.f32 %v2699_v42, %v2665_v52  ;;  %v3643_v19 = vld [vmem:[#allocation10] sm:$0xff]   ;;  %v3644_v63 = vld [vmem:[#allocation10 + $0x8] sm:$0xff]   ;;  %v3645_v39 = vld [vmem:[#allocation10 + $0x10] sm:$0xff]  }
0x102a   :  { %3817 = vtanh.f32 %v2798_v15  ;;  %3562 = vmatprep.subr.bf16.mxu1 %v3643_v19  ;;  %v2779_v26 = vsub.f32 %v5462_v8, %v2763_v18  ;;  %v2781_v9 = vsub.f32 %v2749_v45, %v2765_v13  ;;  %v2751_v44 = vadd.f32 %v2711_v5, %v2671_v22 }
0x102b   :  { %v2800_v38 = vmul.f32 %v2784_v47, %v4822_v27  ;;  %v2777_v27 = vsub.f32 %v2745_v28, %v2761_v32  ;;  %3563 = vmatpush3.bf16.msra.mxu1 %v3643_v19  ;;  %v2754_v55 = vadd.f32 %v5493_v35, %v2674_v23  ;;  %v2676_v35 = vmul.f32 %v5428_v11, %v5385_v29 }
0x102c   :  { %3564 = vmatprep.subr.bf16.mxu1 %v3644_v63  ;;  %v2795_v42 = vmul.f32 %v2779_v26, %v4796_v54  ;;  %v2783_v8 = vsub.f32 %v2751_v44, %v2767_v41  ;;  %v3648_v54 = vld [vmem:[#allocation10 + $0x28] sm:$0xff]   ;;  %v2673_v28 = vmul.f32 %v5424_v50, %v5355_v1  ;;  %v5831_v41 = vld [vmem:[#allocation48_spill] sm:$0xff] }
0x102d   :  { %3819 = vtanh.f32 %v2800_v38  ;;  %v2793_v40 = vmul.f32 %v2777_v27, %v4802_v60  ;;  %v2797_v60 = vmul.f32 %v2781_v9, %v4814_v30 }
0x102e   :  { %v2799_v4 = vmul.f32 %v2783_v8, %v4806_v58  ;;  %v2753_v11 = vadd.f32 %v2715_v2, %v2673_v28 }
0x102f   :  { %3565 = vmatpush3.bf16.msra.mxu1 %v3644_v63  ;;  %3821 = vtanh.f32 %v2793_v40 }
0x1030   :  { %3566 = vmatprep.subr.bf16.mxu1 %v3645_v39  ;;  %3823 = vtanh.f32 %v2795_v42 }
0x1031   :  { %3825 = vtanh.f32 %v2797_v60  ;;  %v2679_v60 = vmul.f32 %v5430_v10, %v5831_v41 }
0x1032   :  { %3827 = vtanh.f32 %v2799_v4  ;;  %v5832_v4 = vld [vmem:[#allocation51_spill] sm:$0xff] }
0x1033   :  { %v3816_v21 = vpop.eup %3815  ;;  %3567 = vmatpush3.bf16.msra.mxu1 %v3645_v39 }
0x1034   :  { %2862 = vperm.xlu1 %3610, %v3816_v21   ;;  %v3818_v43 = vpop.eup %3817  ;;  %3568 = vmatprep.subr.bf16.mxu1 %v3646_v61 }
0x1036   :  { %v2655_v56 = vpop.xlane.xlu1 %2654 }
0x1037   :  { %v3820_v17 = vpop.eup %3819  ;;  %3569 = vmatpush3.bf16.msra.mxu1 %v3646_v61  ;;  %v2771_v19 = vmul.f32 2.0, %v2655_v56 }
0x1038   :  { %2872 = vperm.xlu1 %3610, %v3818_v43   ;;  %2658 = vadd.xlane.f32.xlu0 %v2629_v59 }
0x1039   :  { %v3822_v33 = vpop.eup %3821  ;;  %3570 = vmatprep.subr.bf16.mxu1 %v3647_v48 }
0x103a   :  { %v3824_v30 = vpop.eup %3823  ;;  %v2721_v34 = vpop.permute.xlu1 %2720 }
0x103b   :  { %3571 = vmatpush3.bf16.msra.mxu1 %v3647_v48  ;;  %v3826_v5 = vpop.eup %3825  ;;  %v2756_v47 = vadd.f32 %v2721_v34, %v2676_v35 }
0x103c   :  { %2882 = vperm.xlu1 %3610, %v3820_v17   ;;  %3572 = vmatprep.subr.bf16.mxu1 %v3648_v54  ;;  %v3828_v3 = vpop.eup %3827  ;;  %v2675_v17 = vmul.f32 %v5422_v24, %v5367_v49 }
0x103f   :  { %3573 = vmatpush3.bf16.msra.mxu1 %v3648_v54 }
0x1040   :  { %3574 = vmatprep.subr.bf16.mxu1 %v3649_v25 }
0x1043   :  { %3575 = vmatpush3.bf16.msra.mxu1 %v3649_v25  ;;  %v5833_v25 = vld [vmem:[#allocation17_spill] sm:$0xff] }
0x1044   :  { %3576 = vmatprep.subr.bf16.mxu1 %v3650_v36 }
0x1047   :  { %3577 = vmatpush3.bf16.msra.mxu1 %v3650_v36 }
0x104e   :  { %2726 = vrot.lane.b32.xlu0 %v5430_v10, %s4019_s27 }
0x1052   :  { %2847 = vperm.xlu0 %3609, %v3822_v33  }
0x1056   :  { %2857 = vperm.xlu0 %3609, %v3824_v30   ;;  %v5834_v30 = vld [vmem:[#allocation43_spill] sm:$0xff] }
0x1057   :  { %v2653_v12 = vpop.xlane.xlu0 %2652  ;;  %v2824_v23 = vsub.f32 %v5834_v30, %v5833_v25 }
0x1058   :  { %v2770_v58 = vmul.f32 2.0, %v2653_v12  ;;  %v5835_v12 = vld [vmem:[#allocation49_spill] sm:$0xff] }
0x105a   :  { %v2786_v20 = vsub.f32 %v2754_v55, %v2770_v58  ;;  %2867 = vperm.xlu0 %3609, %v3826_v5   ;;  %v5836_v5 = vld [vmem:[#allocation35_spill] sm:$0xff] }
0x105b   :  { %v2719_v43 = vpop.permute.xlu0 %2718 }
0x105c   :  { %v2802_v31 = vmul.f32 %v2786_v20, %v4824_v6  ;;  %v2755_v32 = vadd.f32 %v2719_v43, %v2675_v17  ;;  %v5837_v20 = vld [vmem:[#allocation27_spill] sm:$0xff]  ;;  %v5842_v43 = vld [vmem:[#allocation16_spill] sm:$0xff]  ;;  %v5843_v17 = vld [vmem:[#allocation26_spill] sm:$0xff] }
0x105d   :  { %v2825_v36 = vsub.f32 %v5837_v20, %v5836_v5 }
0x105e   :  { %3829 = vtanh.f32 %v2802_v31  ;;  %2877 = vperm.xlu0 %3609, %v3828_v3   ;;  %v2787_v18 = vsub.f32 %v2755_v32, %v2771_v19  ;;  %v5838_v31 = vld [vmem:[#allocation19_spill] sm:$0xff]  ;;  %v5839_v3 = vld [vmem:[#allocation25_spill] sm:$0xff] }
0x105f   :  { %v2826_v2 = vsub.f32 %v5839_v3, %v5838_v31 }
0x1060   :  { %v2803_v24 = vmul.f32 %v2787_v18, %v4816_v53  ;;  %v5845_v18 = vld [vmem:[#allocation44_spill] sm:$0xff] }
0x1068   :  { %v3830_v62 = vpop.eup %3829 }
0x1069   :  { %2892 = vperm.xlu1 %3610, %v3830_v62  }
0x106b   :  { %v2657_v15 = vpop.xlane.xlu1 %2656 }
0x106c   :  { %v2772_v38 = vmul.f32 2.0, %v2657_v15 }
0x106e   :  { %v2788_v21 = vsub.f32 %v2756_v47, %v2772_v38  ;;  %v5840_v47 = vld [vmem:[#allocation36_spill] sm:$0xff] }
0x106f   :  { %v2663_v52 = vpop.xlane.xlu1 %2662  ;;  %v5841_v38 = vld [vmem:[#allocation24_spill] sm:$0xff] }
0x1070   :  { %v2804_v59 = vmul.f32 %v2788_v21, %v4832_v7  ;;  %v2678_v7 = vmul.f32 %v5426_v0, %v5377_v37  ;;  %v5830_v0 = vld [vmem:[#allocation47_spill] sm:$0xff]  ;;  %v2775_v61 = vmul.f32 2.0, %v2663_v52  ;;  %v2827_v21 = vsub.f32 %v5841_v38, %v5840_v47  ;;  %v5859_v38 = vld [vmem:[#allocation32_spill] sm:$0xff] }
0x1071   :  { %v2677_v42 = vmul.f32 %v5432_v51, %v5830_v0  ;;  %v2828_v52 = vsub.f32 %v5843_v17, %v5842_v43 }
0x1072   :  { %3831 = vtanh.f32 %v2804_v59 }
0x1073   :  { %v2725_v27 = vpop.permute.xlu1 %2724 }
0x1074   :  { %v2758_v40 = vadd.f32 %v2725_v27, %v2678_v7 }
0x107c   :  { %v3832_v6 = vpop.eup %3831 }
0x107d   :  { %2902 = vperm.xlu1 %3610, %v3832_v6  }
0x108c   :  { %v2651_v29 = vpop.xlane.xlu0 %2650 }
0x108d   :  { %v2769_v63 = vmul.f32 2.0, %v2651_v29 }
0x108f   :  { %v2785_v39 = vsub.f32 %v2753_v11, %v2769_v63  ;;  %v5844_v63 = vld [vmem:[#allocation34_spill] sm:$0xff] }
0x1090   :  { %v2661_v26 = vpop.xlane.xlu0 %2660  ;;  %v2829_v27 = vsub.f32 %v5845_v18, %v5844_v63 }
0x1091   :  { %v2801_v46 = vmul.f32 %v2785_v39, %v4812_v16  ;;  %v2774_v49 = vmul.f32 2.0, %v2661_v26 }
0x1093   :  { %3833 = vtanh.f32 %v2801_v46  ;;  %v2790_v13 = vsub.f32 %v2758_v40, %v2774_v49  ;;  %v5846_v40 = vld [vmem:[#allocation18_spill] sm:$0xff] }
0x1094   :  { %3835 = vtanh.f32 %v2803_v24  ;;  %v2723_v37 = vpop.permute.xlu0 %2722  ;;  %v5847_v46 = vld [vmem:[#allocation42_spill] sm:$0xff] }
0x1095   :  { %v2806_v1 = vmul.f32 %v2790_v13, %v4898_v14  ;;  %v2757_v9 = vadd.f32 %v2723_v37, %v2677_v42  ;;  %v2843_v14 = vpop.permute.xlu1 %2842  ;;  %v2830_v49 = vsub.f32 %v5847_v46, %v5846_v40  ;;  %v5849_v37 = vld [vmem:[#allocation29_spill] sm:$0xff] }
0x1096   :  { %v2920_v58 = vmul.f32 %v2843_v14, %v2824_v23  ;;  %v5850_v14 = vld [vmem:[#allocation21_spill] sm:$0xff]  ;;  %v5854_v23 = vld [vmem:[#allocation23_spill] sm:$0xff] }
0x1097   :  { %3837 = vtanh.f32 %v2806_v1 }
0x1098   :  { %v2936_v62 = vadd.f32 %v2920_v58, %v5833_v25 }
0x1099   :  { %v2853_v55 = vpop.permute.xlu1 %2852 }
0x109a   :  { %v2922_v35 = vmul.f32 %v2853_v55, %v2826_v2 }
0x109c   :  { %v2938_v19 = vadd.f32 %v2922_v35, %v5838_v31 }
0x109d   :  { %v3834_v50 = vpop.eup %3833 }
0x109e   :  { %2887 = vperm.xlu0 %3609, %v3834_v50   ;;  %v3836_v45 = vpop.eup %3835 }
0x10a1   :  { %v3838_v22 = vpop.eup %3837 }
0x10a2   :  { %2912 = vperm.xlu1 %3610, %v3838_v22   ;;  %2897 = vperm.xlu0 %3609, %v3836_v45   ;;  %v5848_v22 = vld [vmem:[#allocation37_spill] sm:$0xff] }
0x10a3   :  { %v2831_v0 = vsub.f32 %v5849_v37, %v5848_v22 }
0x10b3   :  { %v2863_v34 = vpop.permute.xlu1 %2862 }
0x10b4   :  { %v2924_v29 = vmul.f32 %v2863_v34, %v2828_v52 }
0x10b6   :  { %v2940_v1 = vadd.f32 %v2924_v29, %v5842_v43 }
0x10b7   :  { %v2873_v7 = vpop.permute.xlu1 %2872 }
0x10b8   :  { %v2926_v50 = vmul.f32 %v2873_v7, %v2830_v49  ;;  %v5864_v7 = vld [vmem:[#allocation33_spill] sm:$0xff] }
0x10c5   :  { %v2659_v16 = vpop.xlane.xlu0 %2658 }
0x10c6   :  { %v2773_v44 = vmul.f32 2.0, %v2659_v16 }
0x10c8   :  { %v2789_v53 = vsub.f32 %v2757_v9, %v2773_v44  ;;  %v2942_v44 = vadd.f32 %v2926_v50, %v5846_v40 }
0x10c9   :  { %v2727_v8 = vpop.permute.xlu0 %2726 }
0x10ca   :  { %v2805_v48 = vmul.f32 %v2789_v53, %v5832_v4  ;;  %v2759_v54 = vadd.f32 %v2727_v8, %v2679_v60  ;;  %v2883_v60 = vpop.permute.xlu1 %2882  ;;  %v5851_v8 = vld [vmem:[#allocation31_spill] sm:$0xff] }
0x10cc   :  { %3839 = vtanh.f32 %v2805_v48  ;;  %v2791_v33 = vsub.f32 %v2759_v54, %v2775_v61  ;;  %v2832_v61 = vsub.f32 %v5851_v8, %v5850_v14  ;;  %v5852_v48 = vld [vmem:[#allocation39_spill] sm:$0xff]  ;;  %v5853_v54 = vld [vmem:[#allocation28_spill] sm:$0xff] }
0x10ce   :  { %v2807_v51 = vmul.f32 %v2791_v33, %v5835_v12  ;;  %v2928_v4 = vmul.f32 %v2883_v60, %v2832_v61  ;;  %v2833_v33 = vsub.f32 %v5853_v54, %v5852_v48  ;;  %v5855_v12 = vld [vmem:[#allocation45_spill] sm:$0xff] }
0x10d0   :  { %3841 = vtanh.f32 %v2807_v51  ;;  %v2834_v51 = vsub.f32 %v5855_v12, %v5854_v23  ;;  %v2944_v58 = vadd.f32 %v2928_v4, %v5850_v14 }
0x10d1   :  { %v2848_v10 = vpop.permute.xlu0 %2847 }
0x10d2   :  { %v2921_v56 = vmul.f32 %v2848_v10, %v2825_v36  ;;  %v5856_v36 = vld [vmem:[#allocation40_spill] sm:$0xff]  ;;  %v5857_v10 = vld [vmem:[#allocation30_spill] sm:$0xff] }
0x10d3   :  { %v2835_v31 = vsub.f32 %v5857_v10, %v5856_v36 }
0x10d4   :  { %v2937_v15 = vadd.f32 %v2921_v56, %v5836_v5 }
0x10d5   :  { %v2858_v59 = vpop.permute.xlu0 %2857 }
0x10d6   :  { %v3840_v6 = vpop.eup %3839  ;;  %v2923_v32 = vmul.f32 %v2858_v59, %v2827_v21  ;;  %v2952_v28 = vpack.c.bf16 %v2937_v15, %v2936_v62 }
0x10d7   :  { %2907 = vperm.xlu0 %3609, %v3840_v6   ;;  %v5860_v6 = vld [vmem:[#allocation38_spill] sm:$0xff] }
0x10d8   :  { %v2939_v11 = vadd.f32 %v2923_v32, %v5840_v47  ;;  %3578 = vmatprep.mubr.bf16.mxu1 %v2952_v28  ;;  %v5858_v47 = vld [vmem:[#allocation20_spill] sm:$0xff]  ;;  %v2837_v43 = vsub.f32 %v5295_v57, %v5860_v6  ;;  %v5861_v32 = vld [vmem:[#allocation22_spill] sm:$0xff] }
0x10d9   :  { %v2868_v39 = vpop.permute.xlu0 %2867  ;;  %v2836_v21 = vsub.f32 %v5859_v38, %v5858_v47  ;;  %v5862_v28 = vld [vmem:[#allocation46_spill] sm:$0xff] }
0x10da   :  { %v3842_v26 = vpop.eup %3841  ;;  %v2953_v24 = vpack.c.bf16 %v2939_v11, %v2938_v19  ;;  %v2925_v13 = vmul.f32 %v2868_v39, %v2829_v27  ;;  %v2838_v19 = vsub.f32 %v5862_v28, %v5861_v32  ;;  %v5863_v27 = vld [vmem:[#allocation41_spill] sm:$0xff] }
0x10db   :  { %2917 = vperm.xlu0 %3609, %v3842_v26   ;;  %v2839_v39 = vsub.f32 %v5864_v7, %v5863_v27 }
0x10dc   :  { %v2941_v45 = vadd.f32 %v2925_v13, %v5844_v63  ;;  %3579 = vmatmul.mubr.bf16.vlgmr.msra.gmra.mrb[48].mxu1 %v2953_v24  ;;  %v3201_v13 = vld [vmem:[%s5615_s8] ss:$0 sm:$0xff]  ;;  %s4020_s8 = smov [#allocation11]  }
0x10dd   :  { %v2878_v42 = vpop.permute.xlu0 %2877  ;;  %s3149_s30 = sshll.u32 %s4020_s8, 4  ;;  %s3150_s30 = int_to_ptr.vmem [resolvable:$true] %s3149_s30 }
0x10de   :  { %v2927_v16 = vmul.f32 %v2878_v42, %v2831_v0  ;;  %v2954_v9 = vpack.c.bf16 %v2941_v45, %v2940_v1  ;;  %s3976_s4 = scalar_lea.vmem %s3150_s30, 2048  ;;  %p3981_p13 = scmp.lt.s32.totalorder %s3150_s30, %s3150_s30 }
0x10df   :  { %p3977_p12 = scmp.ne.s32.totalorder %s3150_s30, %s3976_s4  ;;  %p3982_p0 = scmp.lt.s32.totalorder %s3976_s4, %s3976_s4 }
0x10e0   :  { %v2943_v53 = vadd.f32 %v2927_v16, %v5848_v22  ;;  %3582 = vmatprep.mubr.bf16.mxu1 %v2954_v9 }
0x10e1   :  { %p3983_p1 = por %p3982_p0, %p3981_p13 }
0x10e2   :  { %v2955_v41 = vpack.c.bf16 %v2943_v53, %v2942_v44 }
0x10e3   :  { %p3984_p2 = pnand %p3983_p1, %p3977_p12 }
0x10e4   :  { %3583 = vmatmul.mubr.bf16.gmra.mrb[52].mxu1 %v2955_v41 }
0x10e8   :  { %v2893_v25 = vpop.permute.xlu1 %2892 }
0x10e9   :  { %v2930_v5 = vmul.f32 %v2893_v25, %v2834_v51 }
0x10eb   :  { %v2946_v34 = vadd.f32 %v2930_v5, %v5854_v23 }
0x10fc   :  { %v2903_v15 = vpop.permute.xlu1 %2902 }
0x10fd   :  { %v2932_v59 = vmul.f32 %v2903_v15, %v2836_v21 }
0x10ff   :  { %v2948_v11 = vadd.f32 %v2932_v59, %v5858_v47 }
0x111d   :  { %v2888_v30 = vpop.permute.xlu0 %2887 }
0x111e   :  { %v2929_v55 = vmul.f32 %v2888_v30, %v2833_v33 }
0x1120   :  { %v2945_v20 = vadd.f32 %v2929_v55, %v5852_v48 }
0x1121   :  { %v2898_v3 = vpop.permute.xlu0 %2897  ;;  %v2913_v17 = vpop.permute.xlu1 %2912 }
0x1122   :  { %v2931_v2 = vmul.f32 %v2898_v3, %v2835_v31  ;;  %v2956_v56 = vpack.c.bf16 %v2945_v20, %v2944_v58  ;;  %v2934_v63 = vmul.f32 %v2913_v17, %v2838_v19 }
0x1124   :  { %v2947_v62 = vadd.f32 %v2931_v2, %v5856_v36  ;;  %3586 = vmatprep.mubr.bf16.mxu1 %v2956_v56  ;;  %v2950_v49 = vadd.f32 %v2934_v63, %v5861_v32 }
0x1126   :  { %v2957_v35 = vpack.c.bf16 %v2947_v62, %v2946_v34 }
0x1128   :  { %3587 = vmatmul.mubr.bf16.gmra.mrb[56].mxu1 %v2957_v35 }
0x1156   :  { %v2908_v52 = vpop.permute.xlu0 %2907 }
0x1157   :  { %v2933_v29 = vmul.f32 %v2908_v52, %v2837_v43 }
0x1159   :  { %v2949_v18 = vadd.f32 %v2933_v29, %v5860_v6 }
0x115a   :  { %v2918_v26 = vpop.permute.xlu0 %2917 }
0x115b   :  { %v2935_v40 = vmul.f32 %v2918_v26, %v2839_v39  ;;  %v2958_v46 = vpack.c.bf16 %v2949_v18, %v2948_v11 }
0x115d   :  { %v2951_v57 = vadd.f32 %v2935_v40, %v5863_v27  ;;  %3590 = vmatprep.mubr.bf16.mxu1 %v2958_v46 }
0x115f   :  { %v2959_v24 = vpack.c.bf16 %v2951_v57, %v2950_v49 }
0x1161   :  { %3591 = vmatmul.mubr.bf16.gmra.mrb[60].mxu1 %v2959_v24 }
0x11af   :  { %v3580_v1 = vpop.f32.mrb[48].mxu1 }
0x11b0   :  { %v3074_v50 = vadd.f32 %v3580_v1, %v3201_v13  ;;  %v3065_v45 = vpop.f32.mrb[49].mxu1 }
0x11b1   :  { %v3066_v22 = vadd.f32 %v3201_v13, %v3065_v45  ;;  %v3581_v37 = vpop.f32.mrb[50].mxu1 }
0x11b2   :  { %3130 = vst [vmem:[#allocation11 + $0x10] sm:$0xff] %v3074_v50  ;;  %v3077_v0 = vadd.f32 %v3581_v37, %v3201_v13  ;;  %v3068_v42 = vpop.f32.mrb[51].mxu1 }
0x11b3   :  { %3128 = vst [vmem:[#allocation11] sm:$0xff] %v3066_v22  ;;  %v3069_v16 = vadd.f32 %v3201_v13, %v3068_v42 }
0x11b4   :  { %3131 = vst [vmem:[#allocation11 + $0x18] sm:$0xff] %v3077_v0 }
0x11b5   :  { %3129 = vst [vmem:[#allocation11 + $0x8] sm:$0xff] %v3069_v16 }
0x11b7   :  { %v3584_v9 = vpop.f32.mrb[52].mxu1 }
0x11b8   :  { %v3090_v44 = vadd.f32 %v3584_v9, %v3201_v13  ;;  %v3081_v53 = vpop.f32.mrb[53].mxu1 }
0x11b9   :  { %v3082_v41 = vadd.f32 %v3201_v13, %v3081_v53  ;;  %v3585_v60 = vpop.f32.mrb[54].mxu1 }
0x11ba   :  { %3134 = vst [vmem:[#allocation11 + $0x30] sm:$0xff] %v3090_v44  ;;  %v3093_v14 = vadd.f32 %v3585_v60, %v3201_v13  ;;  %v3084_v8 = vpop.f32.mrb[55].mxu1 }
0x11bb   :  { %3132 = vst [vmem:[#allocation11 + $0x20] sm:$0xff] %v3082_v41  ;;  %v3085_v61 = vadd.f32 %v3201_v13, %v3084_v8 }
0x11bc   :  { %3135 = vst [vmem:[#allocation11 + $0x38] sm:$0xff] %v3093_v14 }
0x11bd   :  { %3133 = vst [vmem:[#allocation11 + $0x28] sm:$0xff] %v3085_v61 }
0x11fb   :  { %v3588_v4 = vpop.f32.mrb[56].mxu1 }
0x11fc   :  { %v3106_v48 = vadd.f32 %v3588_v4, %v3201_v13  ;;  %v3097_v54 = vpop.f32.mrb[57].mxu1 }
0x11fd   :  { %v3098_v33 = vadd.f32 %v3201_v13, %v3097_v54  ;;  %v3589_v25 = vpop.f32.mrb[58].mxu1 }
0x11fe   :  { %3138 = vst [vmem:[#allocation11 + $0x50] sm:$0xff] %v3106_v48  ;;  %v3109_v30 = vadd.f32 %v3589_v25, %v3201_v13  ;;  %v3100_v23 = vpop.f32.mrb[59].mxu1 }
0x11ff   :  { %3136 = vst [vmem:[#allocation11 + $0x40] sm:$0xff] %v3098_v33  ;;  %v3101_v12 = vadd.f32 %v3201_v13, %v3100_v23 }
0x1200   :  { %3139 = vst [vmem:[#allocation11 + $0x58] sm:$0xff] %v3109_v30 }
0x1201   :  { %3137 = vst [vmem:[#allocation11 + $0x48] sm:$0xff] %v3101_v12 }
0x1234   :  { %v3592_v51 = vpop.f32.mrb[60].mxu1 }
0x1235   :  { %v3122_v55 = vadd.f32 %v3592_v51, %v3201_v13  ;;  %v3113_v58 = vpop.f32.mrb[61].mxu1 }
0x1236   :  { %v3114_v5 = vadd.f32 %v3201_v13, %v3113_v58  ;;  %v3593_v20 = vpop.f32.mrb[62].mxu1 }
0x1237   :  { %3142 = vst [vmem:[#allocation11 + $0x70] sm:$0xff] %v3122_v55  ;;  %v3125_v36 = vadd.f32 %v3593_v20, %v3201_v13  ;;  %v3116_v10 = vpop.f32.mrb[63].mxu1 }
0x1238   :  { %3140 = vst [vmem:[#allocation11 + $0x60] sm:$0xff] %v3114_v5  ;;  %v3117_v31 = vadd.f32 %v3201_v13, %v3116_v10 }
0x1239   :  { %3143 = vst [vmem:[#allocation11 + $0x78] sm:$0xff] %v3125_v36 }
0x123a   :  { %3141 = vst [vmem:[#allocation11 + $0x68] sm:$0xff] %v3117_v31 }
0x123b   :  { %3987 = shalt.err (!%p3984_p2)
}
0x123c   :  { %s3988_s13 = scalar_lea.hbm %s5616_s9, 2048 }
0x123d   :  { %p3989_p3 = scmp.ne.s32.totalorder %s5616_s9, %s3988_s13  ;;  %p3992_p4 = scmp.lt.u32.totalorder %s3988_s13, %s5616_s9 }
0x123f   :  { %p3994_p5 = pnand %p3992_p4, %p3989_p3 }
0x1241   :  { %3997 = shalt.err (!%p3994_p5)
}
0x1242   :  { %3155 = dma.vmem_to_hbm [thread:$0]  %s3150_s30, 2048, %s5616_s9, [#allocation4], %s4010_s2, %s4010_s2, %s4011_s10  }
0x1243   :  { %4004 = dma.done.wait [#allocation4], 2048  }
0x1244   :  { %4005 = vsyncadd [#allocation4], 4294965248 }
0x1245   :  { %3159 = vsyncpa [#allocation3], 1 }
0x1246   :  { %3160 = vsyncpa [#allocation6], 1 }
0x1247   :  { %3161 = vsyncpa [#allocation9], 1 }
0x1248   :  { %3162 = vsyncpa [#allocation4], 1 }

</bundles_post_ra>
